<compile_context>
chip_gen: v5e
topology: v5e:2x2
jax: 0.10.0
libtpu: 0.0.40
codegen_flags: <defaults>
</compile_context>

<pallas_src>
import jax
import jax.numpy as jnp
from jax.experimental import pallas as pl
from jax.experimental.pallas import tpu as pltpu


# --------------------------------------------------------------------------
# In-kernel helpers (operate on VMEM values; all shapes static)
# --------------------------------------------------------------------------
def _pad1_hw(y):
    """Zero-pad a (h, w, c) activation by 1 on both spatial dims (pure VMEM)."""
    h, w, c = y.shape
    zrow = jnp.zeros((1, w, c), y.dtype)
    y = jnp.concatenate([zrow, y, zrow], axis=0)           # (h+2, w, c)
    zcol = jnp.zeros((h + 2, 1, c), y.dtype)
    return jnp.concatenate([zcol, y, zcol], axis=1)        # (h+2, w+2, c)


def _conv3x3_relu_pool(x, w_flat, b):
    """3x3 conv (pad=1, stride=1) + bias + ReLU + 2x2 max-pool for one (h, w, cin) tile.

    w_flat: (9*cin, cout), row order (ky*3 + kx)*cin + ci -> ONE im2col MXU matmul.
    """
    h, w, cin = x.shape
    cout = w_flat.shape[1]
    xp = _pad1_hw(x)
    cols = []
    for ky in range(3):
        for kx in range(3):
            cols.append(xp[ky:ky + h, kx:kx + w, :].reshape(h * w, cin))
    patches = jnp.concatenate(cols, axis=1)                # (h*w, 9*cin)
    y = jnp.dot(patches, w_flat, preferred_element_type=jnp.float32) + b
    y = jnp.maximum(y, 0.0)                                # ReLU
    y = y.reshape(h, w, cout)
    # 2x2 max-pool, stride 2 (even h, w assumed).
    y = y.reshape(h // 2, 2, w, cout)
    y = jnp.maximum(y[:, 0, :, :], y[:, 1, :, :])
    y = y.reshape(h // 2, w // 2, 2, cout)
    return jnp.maximum(y[:, :, 0, :], y[:, :, 1, :])       # (h//2, w//2, cout)


# --------------------------------------------------------------------------
# Fused kernel: conv stack + FC head, one batch element per grid step
# --------------------------------------------------------------------------
def _fused_cnn_kernel(x_ref, wc1_ref, bc1_ref, wc2_ref, bc2_ref, wc3_ref, bc3_ref,
                      wf1_ref, bf1_ref, wf2_ref, bf2_ref, o_ref):
    y = x_ref[...]                                          # (H, W, 1)
    y = _conv3x3_relu_pool(y, wc1_ref[...], bc1_ref[...])   # (H/2, W/2, 8)
    y = _conv3x3_relu_pool(y, wc2_ref[...], bc2_ref[...])   # (H/4, W/4, 16)
    y = _conv3x3_relu_pool(y, wc3_ref[...], bc3_ref[...])   # (H/8, W/8, 32)

    # TODO(synk): nn.Dropout is identity in eval mode; training-mode RNG dropout not implemented.

    # FC head. wf1 rows are pre-permuted (host side) to NHWC order and zero-padded to
    # hidden=128, so the activation is consumed directly. The flatten is expressed as
    # Hf*Wf chunked (1, C) @ (C, 128) matmuls (avoids a lane-changing reshape).
    hf, wf, c3 = y.shape
    y2 = y.reshape(hf * wf, c3)                             # (Hf*Wf, 32)
    acc = bf1_ref[...]                                      # (1, 128)
    for p in range(hf * wf):
        acc = acc + jnp.dot(y2[p:p + 1, :], wf1_ref[p * c3:(p + 1) * c3, :],
                            preferred_element_type=jnp.float32)
    hdd = jnp.maximum(acc, 0.0)                             # ReLU, (1, 128)
    logits = jnp.dot(hdd, wf2_ref[...], preferred_element_type=jnp.float32) + bf2_ref[...]
    o_ref[...] = logits.astype(o_ref.dtype)                 # (1, num_classes)


def _full_spec(arr):
    n = arr.ndim
    return pl.BlockSpec(arr.shape, lambda b, _n=n: (0,) * _n)


def cnn_audio_classifier(x_nchw, kp):
    """x_nchw: (B, 1, H, W) float; kp: kernel-layout params from prepare_kernel_params."""
    B, C, H, W = x_nchw.shape
    assert C == 1 and H % 8 == 0 and W % 8 == 0
    # NCHW with C==1 -> NHWC is a pure reshape (no data movement).
    x = x_nchw.reshape(B, H, W, 1).astype(jnp.float32)
    num_classes = kp["wf2"].shape[1]

    args = (x, kp["wc1"], kp["bc1"], kp["wc2"], kp["bc2"], kp["wc3"], kp["bc3"],
            kp["wf1"], kp["bf1"], kp["wf2"], kp["bf2"])
    in_specs = [pl.BlockSpec((None, H, W, 1), lambda b: (b, 0, 0, 0))]
    in_specs += [_full_spec(a) for a in args[1:]]

    out = pl.pallas_call(
        _fused_cnn_kernel,
        out_shape=jax.ShapeDtypeStruct((B, 1, num_classes), jnp.float32),
        grid=(B,),
        in_specs=in_specs,
        out_specs=pl.BlockSpec((None, 1, num_classes), lambda b: (b, 0, 0)),
        compiler_params=pltpu.CompilerParams(dimension_semantics=("parallel",)),
    )(*args)
    return out.reshape(B, num_classes)


# --------------------------------------------------------------------------
# Parameters: PyTorch layout init + host-side repack into kernel layout
# --------------------------------------------------------------------------
def init_torch_params(key, input_channels=1, num_classes=4, h=16, w=16, hidden=100):
    """Parameters in PyTorch layout: conv (Cout, Cin, 3, 3), linear (out, in)."""
    ks = jax.random.split(key, 8)
    dims = [(input_channels, 8), (8, 16), (16, 32)]
    convs = []
    for i, (cin, cout) in enumerate(dims):
        wc = 0.1 * jax.random.normal(ks[i], (cout, cin, 3, 3), jnp.float32)
        bc = 0.01 * jax.random.normal(ks[3 + i], (cout,), jnp.float32)
        convs.append((wc, bc))
    hf, wf = h // 8, w // 8
    feat = 32 * hf * wf                                     # NCHW flatten order (C, Hf, Wf)
    w1 = 0.05 * jax.random.normal(ks[6], (hidden, feat), jnp.float32)
    b1 = jnp.zeros((hidden,), jnp.float32)
    w2 = 0.05 * jax.random.normal(ks[7], (num_classes, hidden), jnp.float32)
    b2 = jnp.zeros((num_classes,), jnp.float32)
    return {"convs": convs, "w1": w1, "b1": b1, "w2": w2, "b2": b2}


def prepare_kernel_params(tp, h, w, hidden_pad=128):
    """Host-side repack: conv weights -> (9*Cin, Cout) im2col layout; fold the NCHW
    flatten permutation into FC1; zero-pad hidden 100 -> 128 (identical numerics)."""
    out = {}
    for i, (wc, bc) in enumerate(tp["convs"], start=1):
        cout, cin = wc.shape[0], wc.shape[1]
        out[f"wc{i}"] = jnp.transpose(wc, (2, 3, 1, 0)).reshape(9 * cin, cout)
        out[f"bc{i}"] = bc.reshape(1, cout)
    hf, wf = h // 8, w // 8
    c3 = tp["convs"][-1][0].shape[0]                        # 32
    hidden, feat = tp["w1"].shape
    # FC1 column index (c, i, j) [NCHW flat] -> row index (i, j, c) [NHWC flat].
    w1 = tp["w1"].reshape(hidden, c3, hf, wf)
    w1 = jnp.transpose(w1, (2, 3, 1, 0)).reshape(feat, hidden)
    pad = hidden_pad - hidden
    out["wf1"] = jnp.concatenate([w1, jnp.zeros((feat, pad), jnp.float32)], axis=1)
    out["bf1"] = jnp.concatenate([tp["b1"], jnp.zeros((pad,), jnp.float32)]).reshape(1, hidden_pad)
    w2 = tp["w2"].T                                         # (hidden, num_classes)
    out["wf2"] = jnp.concatenate([w2, jnp.zeros((pad, w2.shape[1]), jnp.float32)], axis=0)
    out["bf2"] = tp["b2"].reshape(1, -1)
    return out


# --------------------------------------------------------------------------
# Pure-XLA reference (PyTorch semantics) for correctness checking
# --------------------------------------------------------------------------
def reference_forward(x_nchw, tp):
    y = x_nchw.astype(jnp.float32)
    for wc, bc in tp["convs"]:
        y = jax.lax.conv_general_dilated(
            y, wc, window_strides=(1, 1), padding=((1, 1), (1, 1)),
            dimension_numbers=("NCHW", "OIHW", "NCHW"))
        y = jnp.maximum(y + bc.reshape(1, -1, 1, 1), 0.0)
        b, c, hh, ww = y.shape
        y = y.reshape(b, c, hh // 2, 2, ww // 2, 2).max(axis=(3, 5))
    feats = y.reshape(y.shape[0], -1)                       # NCHW flatten (like nn.Flatten)
    hdd = jnp.maximum(feats @ tp["w1"].T + tp["b1"], 0.0)
    return hdd @ tp["w2"].T + tp["b2"]


if __name__ == "__main__":
    key = jax.random.PRNGKey(0)
    k_param, k_data = jax.random.split(key)

    B, C, H, W = 2, 1, 16, 16          # (batch, input_channels, n_mels, seq_len)
    x = jax.random.normal(k_data, (B, C, H, W), jnp.float32)
    tparams = init_torch_params(k_param, input_channels=C, num_classes=4, h=H, w=W)
    kparams = prepare_kernel_params(tparams, H, W)

    logits = jax.block_until_ready(jax.jit(cnn_audio_classifier)(x, kparams))
    assert logits.shape == (B, 4), logits.shape
    assert bool(jnp.all(jnp.isfinite(logits)))

    ref = jax.block_until_ready(reference_forward(x, tparams))
    assert jnp.allclose(logits, ref, atol=1e-3, rtol=1e-3), (logits, ref)

    print("KERNEL_OK")
</pallas_src>

<mosaic_0001>
module attributes {stable_mosaic.version = 11 : i64} {
  func.func @_fused_cnn_kernel(%arg0: i32, %arg1: memref<1x16x16x1xf32, #tpu.memory_space<vmem>>, %arg2: memref<9x8xf32, #tpu.memory_space<vmem>>, %arg3: memref<1x8xf32, #tpu.memory_space<vmem>>, %arg4: memref<72x16xf32, #tpu.memory_space<vmem>>, %arg5: memref<1x16xf32, #tpu.memory_space<vmem>>, %arg6: memref<144x32xf32, #tpu.memory_space<vmem>>, %arg7: memref<1x32xf32, #tpu.memory_space<vmem>>, %arg8: memref<128x128xf32, #tpu.memory_space<vmem>>, %arg9: memref<1x128xf32, #tpu.memory_space<vmem>>, %arg10: memref<128x4xf32, #tpu.memory_space<vmem>>, %arg11: memref<1x4xf32, #tpu.memory_space<vmem>>, %arg12: memref<1x1x4xf32, #tpu.memory_space<vmem>>) attributes {dimension_semantics = [#tpu.dimension_semantics<parallel>], iteration_bounds = array<i64: 2>, scalar_prefetch = 0 : i64, scratch_operands = 0 : i64, tpu.core_type = #tpu.core_type<tc>, window_params = [{transform_indices = @transform_0, window_bounds = array<i64: 1, 16, 16, 1>}, {pipeline_mode = #tpu.pipeline_mode<synchronous>, transform_indices = @transform_1, window_bounds = array<i64: 9, 8>}, {pipeline_mode = #tpu.pipeline_mode<synchronous>, transform_indices = @transform_2, window_bounds = array<i64: 1, 8>}, {pipeline_mode = #tpu.pipeline_mode<synchronous>, transform_indices = @transform_3, window_bounds = array<i64: 72, 16>}, {pipeline_mode = #tpu.pipeline_mode<synchronous>, transform_indices = @transform_4, window_bounds = array<i64: 1, 16>}, {pipeline_mode = #tpu.pipeline_mode<synchronous>, transform_indices = @transform_5, window_bounds = array<i64: 144, 32>}, {pipeline_mode = #tpu.pipeline_mode<synchronous>, transform_indices = @transform_6, window_bounds = array<i64: 1, 32>}, {pipeline_mode = #tpu.pipeline_mode<synchronous>, transform_indices = @transform_7, window_bounds = array<i64: 128, 128>}, {pipeline_mode = #tpu.pipeline_mode<synchronous>, transform_indices = @transform_8, window_bounds = array<i64: 1, 128>}, {pipeline_mode = #tpu.pipeline_mode<synchronous>, transform_indices = @transform_9, window_bounds = array<i64: 128, 4>}, {pipeline_mode = #tpu.pipeline_mode<synchronous>, transform_indices = @transform_10, window_bounds = array<i64: 1, 4>}, {transform_indices = @transform_11, window_bounds = array<i64: 1, 1, 4>}]} {
    %c0 = arith.constant 0 : index
    %c0_0 = arith.constant 0 : index
    %c0_1 = arith.constant 0 : index
    %c0_2 = arith.constant 0 : index
    %0 = vector.load %arg1[%c0, %c0_0, %c0_1, %c0_2] : memref<1x16x16x1xf32, #tpu.memory_space<vmem>>, vector<1x16x16x1xf32>
    %1 = vector.shape_cast %0 : vector<1x16x16x1xf32> to vector<16x16x1xf32>
    %c0_3 = arith.constant 0 : index
    %c0_4 = arith.constant 0 : index
    %2 = vector.load %arg2[%c0_3, %c0_4] : memref<9x8xf32, #tpu.memory_space<vmem>>, vector<9x8xf32>
    %c0_5 = arith.constant 0 : index
    %c0_6 = arith.constant 0 : index
    %3 = vector.load %arg3[%c0_5, %c0_6] : memref<1x8xf32, #tpu.memory_space<vmem>>, vector<1x8xf32>
    %cst = arith.constant 0.000000e+00 : f32
    %4 = vector.broadcast %cst : f32 to vector<1x16x1xf32>
    %5 = tpu.concatenate %4, %1, %4 in 0 : vector<1x16x1xf32>, vector<16x16x1xf32>, vector<1x16x1xf32> -> vector<18x16x1xf32>
    %cst_7 = arith.constant 0.000000e+00 : f32
    %6 = vector.broadcast %cst_7 : f32 to vector<18x1x1xf32>
    %7 = tpu.concatenate %6, %5, %6 in 1 : vector<18x1x1xf32>, vector<18x16x1xf32>, vector<18x1x1xf32> -> vector<18x18x1xf32>
    %8 = vector.extract_strided_slice %7 {offsets = [0, 0, 0], sizes = [16, 16, 1], strides = [1, 1, 1]} : vector<18x18x1xf32> to vector<16x16x1xf32>
    %9 = vector.shape_cast %8 : vector<16x16x1xf32> to vector<256x1xf32>
    %10 = vector.extract_strided_slice %7 {offsets = [0, 1, 0], sizes = [16, 16, 1], strides = [1, 1, 1]} : vector<18x18x1xf32> to vector<16x16x1xf32>
    %11 = vector.shape_cast %10 : vector<16x16x1xf32> to vector<256x1xf32>
    %12 = vector.extract_strided_slice %7 {offsets = [0, 2, 0], sizes = [16, 16, 1], strides = [1, 1, 1]} : vector<18x18x1xf32> to vector<16x16x1xf32>
    %13 = vector.shape_cast %12 : vector<16x16x1xf32> to vector<256x1xf32>
    %14 = vector.extract_strided_slice %7 {offsets = [1, 0, 0], sizes = [16, 16, 1], strides = [1, 1, 1]} : vector<18x18x1xf32> to vector<16x16x1xf32>
    %15 = vector.shape_cast %14 : vector<16x16x1xf32> to vector<256x1xf32>
    %16 = vector.extract_strided_slice %7 {offsets = [1, 1, 0], sizes = [16, 16, 1], strides = [1, 1, 1]} : vector<18x18x1xf32> to vector<16x16x1xf32>
    %17 = vector.shape_cast %16 : vector<16x16x1xf32> to vector<256x1xf32>
    %18 = vector.extract_strided_slice %7 {offsets = [1, 2, 0], sizes = [16, 16, 1], strides = [1, 1, 1]} : vector<18x18x1xf32> to vector<16x16x1xf32>
    %19 = vector.shape_cast %18 : vector<16x16x1xf32> to vector<256x1xf32>
    %20 = vector.extract_strided_slice %7 {offsets = [2, 0, 0], sizes = [16, 16, 1], strides = [1, 1, 1]} : vector<18x18x1xf32> to vector<16x16x1xf32>
    %21 = vector.shape_cast %20 : vector<16x16x1xf32> to vector<256x1xf32>
    %22 = vector.extract_strided_slice %7 {offsets = [2, 1, 0], sizes = [16, 16, 1], strides = [1, 1, 1]} : vector<18x18x1xf32> to vector<16x16x1xf32>
    %23 = vector.shape_cast %22 : vector<16x16x1xf32> to vector<256x1xf32>
    %24 = vector.extract_strided_slice %7 {offsets = [2, 2, 0], sizes = [16, 16, 1], strides = [1, 1, 1]} : vector<18x18x1xf32> to vector<16x16x1xf32>
    %25 = vector.shape_cast %24 : vector<16x16x1xf32> to vector<256x1xf32>
    %26 = tpu.concatenate %9, %11, %13, %15, %17, %19, %21, %23, %25 in 1 : vector<256x1xf32>, vector<256x1xf32>, vector<256x1xf32>, vector<256x1xf32>, vector<256x1xf32>, vector<256x1xf32>, vector<256x1xf32>, vector<256x1xf32>, vector<256x1xf32> -> vector<256x9xf32>
    %cst_8 = arith.constant dense<0.000000e+00> : vector<256x8xf32>
    %27 = tpu.matmul %26, %2, %cst_8 {dimension_numbers = #tpu.dot_dimension_numbers<[1], [0], [0], [1], [0, 0, 1, 1], [], []>} : vector<256x9xf32>, vector<9x8xf32>, vector<256x8xf32> -> vector<256x8xf32>
    %28 = vector.broadcast %3 : vector<1x8xf32> to vector<256x8xf32>
    %29 = arith.addf %27, %28 : vector<256x8xf32>
    %cst_9 = arith.constant 0.000000e+00 : f32
    %30 = vector.broadcast %cst_9 : f32 to vector<256x8xf32>
    %31 = arith.maximumf %29, %30 : vector<256x8xf32>
    %32 = vector.shape_cast %31 : vector<256x8xf32> to vector<16x16x8xf32>
    %33 = vector.shape_cast %32 : vector<16x16x8xf32> to vector<8x2x16x8xf32>
    %34 = vector.extract_strided_slice %33 {offsets = [0, 0, 0, 0], sizes = [8, 1, 16, 8], strides = [1, 1, 1, 1]} : vector<8x2x16x8xf32> to vector<8x1x16x8xf32>
    %35 = vector.shape_cast %34 : vector<8x1x16x8xf32> to vector<8x16x8xf32>
    %36 = vector.extract_strided_slice %33 {offsets = [0, 1, 0, 0], sizes = [8, 1, 16, 8], strides = [1, 1, 1, 1]} : vector<8x2x16x8xf32> to vector<8x1x16x8xf32>
    %37 = vector.shape_cast %36 : vector<8x1x16x8xf32> to vector<8x16x8xf32>
    %38 = arith.maximumf %35, %37 : vector<8x16x8xf32>
    %39 = vector.shape_cast %38 : vector<8x16x8xf32> to vector<8x8x2x8xf32>
    %40 = vector.extract_strided_slice %39 {offsets = [0, 0, 0, 0], sizes = [8, 8, 1, 8], strides = [1, 1, 1, 1]} : vector<8x8x2x8xf32> to vector<8x8x1x8xf32>
    %41 = vector.shape_cast %40 : vector<8x8x1x8xf32> to vector<8x8x8xf32>
    %42 = vector.extract_strided_slice %39 {offsets = [0, 0, 1, 0], sizes = [8, 8, 1, 8], strides = [1, 1, 1, 1]} : vector<8x8x2x8xf32> to vector<8x8x1x8xf32>
    %43 = vector.shape_cast %42 : vector<8x8x1x8xf32> to vector<8x8x8xf32>
    %44 = arith.maximumf %41, %43 : vector<8x8x8xf32>
    %c0_10 = arith.constant 0 : index
    %c0_11 = arith.constant 0 : index
    %45 = vector.load %arg4[%c0_10, %c0_11] : memref<72x16xf32, #tpu.memory_space<vmem>>, vector<72x16xf32>
    %c0_12 = arith.constant 0 : index
    %c0_13 = arith.constant 0 : index
    %46 = vector.load %arg5[%c0_12, %c0_13] : memref<1x16xf32, #tpu.memory_space<vmem>>, vector<1x16xf32>
    %cst_14 = arith.constant 0.000000e+00 : f32
    %47 = vector.broadcast %cst_14 : f32 to vector<1x8x8xf32>
    %48 = tpu.concatenate %47, %44, %47 in 0 : vector<1x8x8xf32>, vector<8x8x8xf32>, vector<1x8x8xf32> -> vector<10x8x8xf32>
    %cst_15 = arith.constant 0.000000e+00 : f32
    %49 = vector.broadcast %cst_15 : f32 to vector<10x1x8xf32>
    %50 = tpu.concatenate %49, %48, %49 in 1 : vector<10x1x8xf32>, vector<10x8x8xf32>, vector<10x1x8xf32> -> vector<10x10x8xf32>
    %51 = vector.extract_strided_slice %50 {offsets = [0, 0, 0], sizes = [8, 8, 8], strides = [1, 1, 1]} : vector<10x10x8xf32> to vector<8x8x8xf32>
    %52 = vector.shape_cast %51 : vector<8x8x8xf32> to vector<64x8xf32>
    %53 = vector.extract_strided_slice %50 {offsets = [0, 1, 0], sizes = [8, 8, 8], strides = [1, 1, 1]} : vector<10x10x8xf32> to vector<8x8x8xf32>
    %54 = vector.shape_cast %53 : vector<8x8x8xf32> to vector<64x8xf32>
    %55 = vector.extract_strided_slice %50 {offsets = [0, 2, 0], sizes = [8, 8, 8], strides = [1, 1, 1]} : vector<10x10x8xf32> to vector<8x8x8xf32>
    %56 = vector.shape_cast %55 : vector<8x8x8xf32> to vector<64x8xf32>
    %57 = vector.extract_strided_slice %50 {offsets = [1, 0, 0], sizes = [8, 8, 8], strides = [1, 1, 1]} : vector<10x10x8xf32> to vector<8x8x8xf32>
    %58 = vector.shape_cast %57 : vector<8x8x8xf32> to vector<64x8xf32>
    %59 = vector.extract_strided_slice %50 {offsets = [1, 1, 0], sizes = [8, 8, 8], strides = [1, 1, 1]} : vector<10x10x8xf32> to vector<8x8x8xf32>
    %60 = vector.shape_cast %59 : vector<8x8x8xf32> to vector<64x8xf32>
    %61 = vector.extract_strided_slice %50 {offsets = [1, 2, 0], sizes = [8, 8, 8], strides = [1, 1, 1]} : vector<10x10x8xf32> to vector<8x8x8xf32>
    %62 = vector.shape_cast %61 : vector<8x8x8xf32> to vector<64x8xf32>
    %63 = vector.extract_strided_slice %50 {offsets = [2, 0, 0], sizes = [8, 8, 8], strides = [1, 1, 1]} : vector<10x10x8xf32> to vector<8x8x8xf32>
    %64 = vector.shape_cast %63 : vector<8x8x8xf32> to vector<64x8xf32>
    %65 = vector.extract_strided_slice %50 {offsets = [2, 1, 0], sizes = [8, 8, 8], strides = [1, 1, 1]} : vector<10x10x8xf32> to vector<8x8x8xf32>
    %66 = vector.shape_cast %65 : vector<8x8x8xf32> to vector<64x8xf32>
    %67 = vector.extract_strided_slice %50 {offsets = [2, 2, 0], sizes = [8, 8, 8], strides = [1, 1, 1]} : vector<10x10x8xf32> to vector<8x8x8xf32>
    %68 = vector.shape_cast %67 : vector<8x8x8xf32> to vector<64x8xf32>
    %69 = tpu.concatenate %52, %54, %56, %58, %60, %62, %64, %66, %68 in 1 : vector<64x8xf32>, vector<64x8xf32>, vector<64x8xf32>, vector<64x8xf32>, vector<64x8xf32>, vector<64x8xf32>, vector<64x8xf32>, vector<64x8xf32>, vector<64x8xf32> -> vector<64x72xf32>
    %cst_16 = arith.constant dense<0.000000e+00> : vector<64x16xf32>
    %70 = tpu.matmul %69, %45, %cst_16 {dimension_numbers = #tpu.dot_dimension_numbers<[1], [0], [0], [1], [0, 0, 1, 1], [], []>} : vector<64x72xf32>, vector<72x16xf32>, vector<64x16xf32> -> vector<64x16xf32>
    %71 = vector.broadcast %46 : vector<1x16xf32> to vector<64x16xf32>
    %72 = arith.addf %70, %71 : vector<64x16xf32>
    %cst_17 = arith.constant 0.000000e+00 : f32
    %73 = vector.broadcast %cst_17 : f32 to vector<64x16xf32>
    %74 = arith.maximumf %72, %73 : vector<64x16xf32>
    %75 = vector.shape_cast %74 : vector<64x16xf32> to vector<8x8x16xf32>
    %76 = vector.shape_cast %75 : vector<8x8x16xf32> to vector<4x2x8x16xf32>
    %77 = vector.extract_strided_slice %76 {offsets = [0, 0, 0, 0], sizes = [4, 1, 8, 16], strides = [1, 1, 1, 1]} : vector<4x2x8x16xf32> to vector<4x1x8x16xf32>
    %78 = vector.shape_cast %77 : vector<4x1x8x16xf32> to vector<4x8x16xf32>
    %79 = vector.extract_strided_slice %76 {offsets = [0, 1, 0, 0], sizes = [4, 1, 8, 16], strides = [1, 1, 1, 1]} : vector<4x2x8x16xf32> to vector<4x1x8x16xf32>
    %80 = vector.shape_cast %79 : vector<4x1x8x16xf32> to vector<4x8x16xf32>
    %81 = arith.maximumf %78, %80 : vector<4x8x16xf32>
    %82 = vector.shape_cast %81 : vector<4x8x16xf32> to vector<4x4x2x16xf32>
    %83 = vector.extract_strided_slice %82 {offsets = [0, 0, 0, 0], sizes = [4, 4, 1, 16], strides = [1, 1, 1, 1]} : vector<4x4x2x16xf32> to vector<4x4x1x16xf32>
    %84 = vector.shape_cast %83 : vector<4x4x1x16xf32> to vector<4x4x16xf32>
    %85 = vector.extract_strided_slice %82 {offsets = [0, 0, 1, 0], sizes = [4, 4, 1, 16], strides = [1, 1, 1, 1]} : vector<4x4x2x16xf32> to vector<4x4x1x16xf32>
    %86 = vector.shape_cast %85 : vector<4x4x1x16xf32> to vector<4x4x16xf32>
    %87 = arith.maximumf %84, %86 : vector<4x4x16xf32>
    %c0_18 = arith.constant 0 : index
    %c0_19 = arith.constant 0 : index
    %88 = vector.load %arg6[%c0_18, %c0_19] : memref<144x32xf32, #tpu.memory_space<vmem>>, vector<144x32xf32>
    %c0_20 = arith.constant 0 : index
    %c0_21 = arith.constant 0 : index
    %89 = vector.load %arg7[%c0_20, %c0_21] : memref<1x32xf32, #tpu.memory_space<vmem>>, vector<1x32xf32>
    %cst_22 = arith.constant 0.000000e+00 : f32
    %90 = vector.broadcast %cst_22 : f32 to vector<1x4x16xf32>
    %91 = tpu.concatenate %90, %87, %90 in 0 : vector<1x4x16xf32>, vector<4x4x16xf32>, vector<1x4x16xf32> -> vector<6x4x16xf32>
    %cst_23 = arith.constant 0.000000e+00 : f32
    %92 = vector.broadcast %cst_23 : f32 to vector<6x1x16xf32>
    %93 = tpu.concatenate %92, %91, %92 in 1 : vector<6x1x16xf32>, vector<6x4x16xf32>, vector<6x1x16xf32> -> vector<6x6x16xf32>
    %94 = vector.extract_strided_slice %93 {offsets = [0, 0, 0], sizes = [4, 4, 16], strides = [1, 1, 1]} : vector<6x6x16xf32> to vector<4x4x16xf32>
    %95 = vector.shape_cast %94 : vector<4x4x16xf32> to vector<16x16xf32>
    %96 = vector.extract_strided_slice %93 {offsets = [0, 1, 0], sizes = [4, 4, 16], strides = [1, 1, 1]} : vector<6x6x16xf32> to vector<4x4x16xf32>
    %97 = vector.shape_cast %96 : vector<4x4x16xf32> to vector<16x16xf32>
    %98 = vector.extract_strided_slice %93 {offsets = [0, 2, 0], sizes = [4, 4, 16], strides = [1, 1, 1]} : vector<6x6x16xf32> to vector<4x4x16xf32>
    %99 = vector.shape_cast %98 : vector<4x4x16xf32> to vector<16x16xf32>
    %100 = vector.extract_strided_slice %93 {offsets = [1, 0, 0], sizes = [4, 4, 16], strides = [1, 1, 1]} : vector<6x6x16xf32> to vector<4x4x16xf32>
    %101 = vector.shape_cast %100 : vector<4x4x16xf32> to vector<16x16xf32>
    %102 = vector.extract_strided_slice %93 {offsets = [1, 1, 0], sizes = [4, 4, 16], strides = [1, 1, 1]} : vector<6x6x16xf32> to vector<4x4x16xf32>
    %103 = vector.shape_cast %102 : vector<4x4x16xf32> to vector<16x16xf32>
    %104 = vector.extract_strided_slice %93 {offsets = [1, 2, 0], sizes = [4, 4, 16], strides = [1, 1, 1]} : vector<6x6x16xf32> to vector<4x4x16xf32>
    %105 = vector.shape_cast %104 : vector<4x4x16xf32> to vector<16x16xf32>
    %106 = vector.extract_strided_slice %93 {offsets = [2, 0, 0], sizes = [4, 4, 16], strides = [1, 1, 1]} : vector<6x6x16xf32> to vector<4x4x16xf32>
    %107 = vector.shape_cast %106 : vector<4x4x16xf32> to vector<16x16xf32>
    %108 = vector.extract_strided_slice %93 {offsets = [2, 1, 0], sizes = [4, 4, 16], strides = [1, 1, 1]} : vector<6x6x16xf32> to vector<4x4x16xf32>
    %109 = vector.shape_cast %108 : vector<4x4x16xf32> to vector<16x16xf32>
    %110 = vector.extract_strided_slice %93 {offsets = [2, 2, 0], sizes = [4, 4, 16], strides = [1, 1, 1]} : vector<6x6x16xf32> to vector<4x4x16xf32>
    %111 = vector.shape_cast %110 : vector<4x4x16xf32> to vector<16x16xf32>
    %112 = tpu.concatenate %95, %97, %99, %101, %103, %105, %107, %109, %111 in 1 : vector<16x16xf32>, vector<16x16xf32>, vector<16x16xf32>, vector<16x16xf32>, vector<16x16xf32>, vector<16x16xf32>, vector<16x16xf32>, vector<16x16xf32>, vector<16x16xf32> -> vector<16x144xf32>
    %cst_24 = arith.constant dense<0.000000e+00> : vector<16x32xf32>
    %113 = tpu.matmul %112, %88, %cst_24 {dimension_numbers = #tpu.dot_dimension_numbers<[1], [0], [0], [1], [0, 0, 1, 1], [], []>} : vector<16x144xf32>, vector<144x32xf32>, vector<16x32xf32> -> vector<16x32xf32>
    %114 = vector.broadcast %89 : vector<1x32xf32> to vector<16x32xf32>
    %115 = arith.addf %113, %114 : vector<16x32xf32>
    %cst_25 = arith.constant 0.000000e+00 : f32
    %116 = vector.broadcast %cst_25 : f32 to vector<16x32xf32>
    %117 = arith.maximumf %115, %116 : vector<16x32xf32>
    %118 = vector.shape_cast %117 : vector<16x32xf32> to vector<4x4x32xf32>
    %119 = vector.shape_cast %118 : vector<4x4x32xf32> to vector<2x2x4x32xf32>
    %120 = vector.extract_strided_slice %119 {offsets = [0, 0, 0, 0], sizes = [2, 1, 4, 32], strides = [1, 1, 1, 1]} : vector<2x2x4x32xf32> to vector<2x1x4x32xf32>
    %121 = vector.shape_cast %120 : vector<2x1x4x32xf32> to vector<2x4x32xf32>
    %122 = vector.extract_strided_slice %119 {offsets = [0, 1, 0, 0], sizes = [2, 1, 4, 32], strides = [1, 1, 1, 1]} : vector<2x2x4x32xf32> to vector<2x1x4x32xf32>
    %123 = vector.shape_cast %122 : vector<2x1x4x32xf32> to vector<2x4x32xf32>
    %124 = arith.maximumf %121, %123 : vector<2x4x32xf32>
    %125 = vector.shape_cast %124 : vector<2x4x32xf32> to vector<2x2x2x32xf32>
    %126 = vector.extract_strided_slice %125 {offsets = [0, 0, 0, 0], sizes = [2, 2, 1, 32], strides = [1, 1, 1, 1]} : vector<2x2x2x32xf32> to vector<2x2x1x32xf32>
    %127 = vector.shape_cast %126 : vector<2x2x1x32xf32> to vector<2x2x32xf32>
    %128 = vector.extract_strided_slice %125 {offsets = [0, 0, 1, 0], sizes = [2, 2, 1, 32], strides = [1, 1, 1, 1]} : vector<2x2x2x32xf32> to vector<2x2x1x32xf32>
    %129 = vector.shape_cast %128 : vector<2x2x1x32xf32> to vector<2x2x32xf32>
    %130 = arith.maximumf %127, %129 : vector<2x2x32xf32>
    %131 = vector.shape_cast %130 : vector<2x2x32xf32> to vector<4x32xf32>
    %c0_26 = arith.constant 0 : index
    %c0_27 = arith.constant 0 : index
    %132 = vector.load %arg9[%c0_26, %c0_27] : memref<1x128xf32, #tpu.memory_space<vmem>>, vector<1x128xf32>
    %133 = vector.extract_strided_slice %131 {offsets = [0, 0], sizes = [1, 32], strides = [1, 1]} : vector<4x32xf32> to vector<1x32xf32>
    %c0_28 = arith.constant 0 : index
    %c0_29 = arith.constant 0 : index
    %134 = vector.load %arg8[%c0_28, %c0_29] : memref<128x128xf32, #tpu.memory_space<vmem>>, vector<32x128xf32>
    %cst_30 = arith.constant dense<0.000000e+00> : vector<1x128xf32>
    %135 = tpu.matmul %133, %134, %cst_30 {dimension_numbers = #tpu.dot_dimension_numbers<[1], [0], [0], [1], [0, 0, 1, 1], [], []>} : vector<1x32xf32>, vector<32x128xf32>, vector<1x128xf32> -> vector<1x128xf32>
    %136 = arith.addf %132, %135 : vector<1x128xf32>
    %137 = vector.extract_strided_slice %131 {offsets = [1, 0], sizes = [1, 32], strides = [1, 1]} : vector<4x32xf32> to vector<1x32xf32>
    %c32 = arith.constant 32 : index
    %c0_31 = arith.constant 0 : index
    %138 = vector.load %arg8[%c32, %c0_31] : memref<128x128xf32, #tpu.memory_space<vmem>>, vector<32x128xf32>
    %cst_32 = arith.constant dense<0.000000e+00> : vector<1x128xf32>
    %139 = tpu.matmul %137, %138, %cst_32 {dimension_numbers = #tpu.dot_dimension_numbers<[1], [0], [0], [1], [0, 0, 1, 1], [], []>} : vector<1x32xf32>, vector<32x128xf32>, vector<1x128xf32> -> vector<1x128xf32>
    %140 = arith.addf %136, %139 : vector<1x128xf32>
    %141 = vector.extract_strided_slice %131 {offsets = [2, 0], sizes = [1, 32], strides = [1, 1]} : vector<4x32xf32> to vector<1x32xf32>
    %c64 = arith.constant 64 : index
    %c0_33 = arith.constant 0 : index
    %142 = vector.load %arg8[%c64, %c0_33] : memref<128x128xf32, #tpu.memory_space<vmem>>, vector<32x128xf32>
    %cst_34 = arith.constant dense<0.000000e+00> : vector<1x128xf32>
    %143 = tpu.matmul %141, %142, %cst_34 {dimension_numbers = #tpu.dot_dimension_numbers<[1], [0], [0], [1], [0, 0, 1, 1], [], []>} : vector<1x32xf32>, vector<32x128xf32>, vector<1x128xf32> -> vector<1x128xf32>
    %144 = arith.addf %140, %143 : vector<1x128xf32>
    %145 = vector.extract_strided_slice %131 {offsets = [3, 0], sizes = [1, 32], strides = [1, 1]} : vector<4x32xf32> to vector<1x32xf32>
    %c96 = arith.constant 96 : index
    %c0_35 = arith.constant 0 : index
    %146 = vector.load %arg8[%c96, %c0_35] : memref<128x128xf32, #tpu.memory_space<vmem>>, vector<32x128xf32>
    %cst_36 = arith.constant dense<0.000000e+00> : vector<1x128xf32>
    %147 = tpu.matmul %145, %146, %cst_36 {dimension_numbers = #tpu.dot_dimension_numbers<[1], [0], [0], [1], [0, 0, 1, 1], [], []>} : vector<1x32xf32>, vector<32x128xf32>, vector<1x128xf32> -> vector<1x128xf32>
    %148 = arith.addf %144, %147 : vector<1x128xf32>
    %cst_37 = arith.constant 0.000000e+00 : f32
    %149 = vector.broadcast %cst_37 : f32 to vector<1x128xf32>
    %150 = arith.maximumf %148, %149 : vector<1x128xf32>
    %c0_38 = arith.constant 0 : index
    %c0_39 = arith.constant 0 : index
    %151 = vector.load %arg10[%c0_38, %c0_39] : memref<128x4xf32, #tpu.memory_space<vmem>>, vector<128x4xf32>
    %cst_40 = arith.constant dense<0.000000e+00> : vector<1x4xf32>
    %152 = tpu.matmul %150, %151, %cst_40 {dimension_numbers = #tpu.dot_dimension_numbers<[1], [0], [0], [1], [0, 0, 1, 1], [], []>} : vector<1x128xf32>, vector<128x4xf32>, vector<1x4xf32> -> vector<1x4xf32>
    %c0_41 = arith.constant 0 : index
    %c0_42 = arith.constant 0 : index
    %153 = vector.load %arg11[%c0_41, %c0_42] : memref<1x4xf32, #tpu.memory_space<vmem>>, vector<1x4xf32>
    %154 = arith.addf %152, %153 : vector<1x4xf32>
    %c0_43 = arith.constant 0 : index
    %c0_44 = arith.constant 0 : index
    %c0_45 = arith.constant 0 : index
    %155 = vector.load %arg12[%c0_43, %c0_44, %c0_45] : memref<1x1x4xf32, #tpu.memory_space<vmem>>, vector<1x1x4xf32>
    %156 = vector.shape_cast %155 : vector<1x1x4xf32> to vector<1x4xf32>
    %157 = vector.shape_cast %154 : vector<1x4xf32> to vector<1x1x4xf32>
    tpu.vector_store %arg12[%c0_43, %c0_44, %c0_45], %157 {strides = array<i32>} : memref<1x1x4xf32, #tpu.memory_space<vmem>>, vector<1x1x4xf32>,
    return
  }
  func.func @transform_0(%arg0: i32) -> (i32, i32, i32, i32) {
    %c0_i32 = arith.constant 0 : i32
    %c0_i32_0 = arith.constant 0 : i32
    %c0_i32_1 = arith.constant 0 : i32
    %c0_i32_2 = arith.constant 0 : i32
    return %arg0, %c0_i32, %c0_i32_0, %c0_i32_1 : i32, i32, i32, i32
  }
  func.func @transform_1(%arg0: i32) -> (i32, i32) {
    %c0_i32 = arith.constant 0 : i32
    %c0_i32_0 = arith.constant 0 : i32
    %c0_i32_1 = arith.constant 0 : i32
    return %c0_i32, %c0_i32_0 : i32, i32
  }
  func.func @transform_2(%arg0: i32) -> (i32, i32) {
    %c0_i32 = arith.constant 0 : i32
    %c0_i32_0 = arith.constant 0 : i32
    %c0_i32_1 = arith.constant 0 : i32
    return %c0_i32, %c0_i32_0 : i32, i32
  }
  func.func @transform_3(%arg0: i32) -> (i32, i32) {
    %c0_i32 = arith.constant 0 : i32
    %c0_i32_0 = arith.constant 0 : i32
    %c0_i32_1 = arith.constant 0 : i32
    return %c0_i32, %c0_i32_0 : i32, i32
  }
  func.func @transform_4(%arg0: i32) -> (i32, i32) {
    %c0_i32 = arith.constant 0 : i32
    %c0_i32_0 = arith.constant 0 : i32
    %c0_i32_1 = arith.constant 0 : i32
    return %c0_i32, %c0_i32_0 : i32, i32
  }
  func.func @transform_5(%arg0: i32) -> (i32, i32) {
    %c0_i32 = arith.constant 0 : i32
    %c0_i32_0 = arith.constant 0 : i32
    %c0_i32_1 = arith.constant 0 : i32
    return %c0_i32, %c0_i32_0 : i32, i32
  }
  func.func @transform_6(%arg0: i32) -> (i32, i32) {
    %c0_i32 = arith.constant 0 : i32
    %c0_i32_0 = arith.constant 0 : i32
    %c0_i32_1 = arith.constant 0 : i32
    return %c0_i32, %c0_i32_0 : i32, i32
  }
  func.func @transform_7(%arg0: i32) -> (i32, i32) {
    %c0_i32 = arith.constant 0 : i32
    %c0_i32_0 = arith.constant 0 : i32
    %c0_i32_1 = arith.constant 0 : i32
    return %c0_i32, %c0_i32_0 : i32, i32
  }
  func.func @transform_8(%arg0: i32) -> (i32, i32) {
    %c0_i32 = arith.constant 0 : i32
    %c0_i32_0 = arith.constant 0 : i32
    %c0_i32_1 = arith.constant 0 : i32
    return %c0_i32, %c0_i32_0 : i32, i32
  }
  func.func @transform_9(%arg0: i32) -> (i32, i32) {
    %c0_i32 = arith.constant 0 : i32
    %c0_i32_0 = arith.constant 0 : i32
    %c0_i32_1 = arith.constant 0 : i32
    return %c0_i32, %c0_i32_0 : i32, i32
  }
  func.func @transform_10(%arg0: i32) -> (i32, i32) {
    %c0_i32 = arith.constant 0 : i32
    %c0_i32_0 = arith.constant 0 : i32
    %c0_i32_1 = arith.constant 0 : i32
    return %c0_i32, %c0_i32_0 : i32, i32
  }
  func.func @transform_11(%arg0: i32) -> (i32, i32, i32) {
    %c0_i32 = arith.constant 0 : i32
    %c0_i32_0 = arith.constant 0 : i32
    %c0_i32_1 = arith.constant 0 : i32
    return %arg0, %c0_i32, %c0_i32_0 : i32, i32, i32
  }
}

</mosaic_0001>

<bundles_post_ra>
// kernel: cnn_audio_classifier.1
= control target key start
LH: loop header
LB: loop body
LE: loop exit
PB: predicated region body
PF: predicated region fallthrough
CT: control target
= control target key end

     0   :  { %s6583_s0 = inlined_call_operand.vmem [shape: f32[2,16,16,1], index: 0, kind: input, shape index: {}]   ;;  %s6584_s1 = inlined_call_operand.vmem [shape: f32[9,8], index: 1, kind: input, shape index: {}]   ;;  %s6585_s2 = inlined_call_operand.vmem [shape: f32[1,8], index: 2, kind: input, shape index: {}]   ;;  %s6586_s3 = inlined_call_operand.vmem [shape: f32[72,16], index: 3, kind: input, shape index: {}]   ;;  %s6587_s4 = inlined_call_operand.vmem [shape: f32[1,16], index: 4, kind: input, shape index: {}]   ;;  %s6588_s5 = inlined_call_operand.vmem [shape: f32[144,32], index: 5, kind: input, shape index: {}]   ;;  %s6589_s6 = inlined_call_operand.vmem [shape: f32[1,32], index: 6, kind: input, shape index: {}]   ;;  %s6590_s7 = inlined_call_operand.vmem [shape: f32[128,128], index: 7, kind: input, shape index: {}]   ;;  %s6591_s8 = inlined_call_operand.vmem [shape: f32[1,128], index: 8, kind: input, shape index: {}]   ;;  %s6592_s9 = inlined_call_operand.vmem [shape: f32[128,4], index: 9, kind: input, shape index: {}]   ;;  %s6593_s10 = inlined_call_operand.vmem [shape: f32[1,4], index: 10, kind: input, shape index: {}]   ;;  %s6594_s11 = inlined_call_operand.hbm [shape: f32[2,1,4], index: 11, kind: output, shape index: {}]  }
   0x1   :  { %6666 = sst [smem:[#allocation25_spill]] %s6583_s0 }
   0x2   :  { %6667 = sst [smem:[#allocation26_spill]] %s6584_s1 }
   0x3   :  { %16 = vsyncpa [#allocation3], 0 }
   0x4   :  { %18 = vsyncpa [#allocation3 + $0x1], 0  ;;  %s4154_s17 = smov 0   ;;  %s4156_s18 = smov 0  }
   0x5   :  { %s4158_s19 = smov 0   ;;  %s4160_s20 = smov 0  }
   0x6 LB: > { %s4175_s21 = sadd.s32 4294967295, %s4073_s20   ;;  %s3785_s22 = sadd.s32 4294967294, %s4073_s20   ;;  %s4073_s20 = sphi %s4160_s20, %s6810_s20   ;;  %s4069_s19 = sphi %s4158_s19, %s6809_s19   ;;  %s4065_s18 = sphi %s4156_s18, %s6808_s18   ;;  %s4061_s17 = sphi %s4154_s17, %s6807_s17  }
   0x7   : > { %s4179_s23 = sadd.s32 1, %s4073_s20   ;;  %s267_s24 = sadd.s32 1, %s4069_s19 }
   0x8   : > { %s264_s25 = ssub.s32 %s4073_s20, %s4179_s23  ;;  %p277_p0 = scmp.ne.s32.totalorder %s4069_s19, %s4065_s18 }
   0x9   : > { %p265_p1 = scmp.eq.s32.totalorder %s264_s25, 0  ;;  %p278_p2 = scmp.eq.s32.totalorder %s4175_s21, 1 }
   0xa   : > { %p283_p3 = scmp.ne.s32.totalorder %s4065_s18, %s4061_s17  ;;  %p284_p4 = scmp.eq.s32.totalorder %s3785_s22, 1 }
   0xb   : > { %s4190_s26 = scalar_select %p265_p1, %s4069_s19, %s267_s24  }
   0xc   : > { %p4192_p5 = por %p278_p2, %p277_p0  ;;  %p4196_p6 = por %p284_p4, %p283_p3 }
   0xd   : > { %p3788_p7 = scmp.ge.s32.totalorder %s4073_s20, 1  ;;  %p340_p8 = scmp.lt.s32.totalorder %s4073_s20, 3 }
   0xf   : > { %p341_p9 = pnand %p3788_p7, %p340_p8 }
  0x11   : > { %344 = sbr.rel (%p341_p9) target bundleno = 1845 (0x735), region = 64 }
  0x16   : > { %vm452_vm0 = vcmask 1040384   ;;  %p379_p10 = scmp.lt.s32.totalorder %s4175_s21, 1  ;;  %v4075_v0 = vmov 0.0   ;;  %vm6647_vm1 = vcmask 1044480   ;;  %vm618_vm2 = vcmask 1046528   ;;  %s6674_s0 = sld [smem:[#allocation25_spill]] }
  0x17   : > { %v4203_v1 = vrot.slane %v4075_v0, 7  ;;  %vm6648_vm3 = vcmask 1045504   ;;  %s4076_s15 = smov 1   ;;  %s6595_s16 = smov 6   ;;  %vm1560_vm4 = vcmask 7168   ;;  %vm1593_vm5 = vcmask 15360  }
  0x18   : > { %s380_s29 = scalar_select %p379_p10, %s4175_s21, 1  ;;  %vm1626_vm6 = vcmask 23552   ;;  %vm1659_vm7 = vcmask 31744   ;;  %vm1692_vm8 = vcmask 39936   ;;  %vm1725_vm9 = vcmask 48128  }
  0x19   : > { %6670 = vst [vmem:[#allocation5_spill] sm:$0xff] %v4203_v1  ;;  %v4208_v2 = vsel %vm452_vm0, 0.0, %v4203_v1  ;;  %v4212_v3 = vsel %vm452_vm0, %v4203_v1, 0.0  ;;  %v620_v4 = vrot.slane %v4203_v1, 1  ;;  %v701_v8 = vrot.slane %v4203_v1, 2  ;;  %s4078_s22 = smov 3  }
  0x1a   : > { %6671 = vst [vmem:[#allocation6_spill] sm:$0xff] %v4208_v2  ;;  %v6603_v5 = vrot.slane %v4208_v2, 1  ;;  %v6604_v6 = vrot.slane %v4212_v3, 1  ;;  %v4219_v7 = vsel %vm6647_vm1, %v4208_v2, 0.0  ;;  %s3934_s30 = sshll.u32 %s380_s29, 8  ;;  %v6602_v11 = vrot.slane %v4212_v3, 2 }
  0x1b   : > { %6672 = vst [vmem:[#allocation7_spill] sm:$0xff] %v4212_v3  ;;  %v6601_v14 = vrot.slane %v4208_v2, 2  ;;  %s4079_s24 = smov 2   ;;  %s6599_s25 = smov 5   ;;  %vm1758_vm10 = vcmask 56320   ;;  %vm1791_vm11 = vcmask 64512  }
  0x1c   : > { %6673 = vst [vmem:[#allocation8_spill] sm:$0xff] %v4219_v7  ;;  %s4225_s14 = scalar_lea.vmem %s6674_s0, %s3934_s30  ;;  %v4231_v9 = vsel %vm618_vm2, %v6603_v5, %v620_v4  ;;  %v4236_v10 = vsel %vm618_vm2, %v620_v4, %v6604_v6  ;;  %v4266_v25 = vsel %vm6648_vm3, %v701_v8, %v6602_v11  ;;  %s4081_s29 = smov 4   ;;  %vm6649_vm12 = vcmask 72704  }
  0x1d   : > { %3328 = vst [vmem:[#allocation1] ss:$2 sm:$0xff] %v4219_v7  ;;  %v386_v12 = vld [vmem:[%s4225_s14 + $0x10] sm:$0xff]  ;;  %v384_v13 = vld [vmem:[%s4225_s14] sm:$0xff]  ;;  %v3997_v15 = vpack.i.bf16 %v4236_v10, %v4231_v9  ;;  %v385_v17 = vld [vmem:[%s4225_s14 + $0x8] sm:$0xff]  ;;  %v4261_v24 = vsel %vm6648_vm3, %v6601_v14, %v701_v8  ;;  %s6597_s30 = smov 7  }
  0x1e   : > { %6675 = vst [vmem:[#allocation9_spill] sm:$0xff] %v4231_v9  ;;  %v458_v16 = vrot.slane %v386_v12, 7  ;;  %v387_v18 = vld [vmem:[%s4225_s14 + $0x18] sm:$0xff]  ;;  %v455_v19 = vrot.slane %v384_v13, 7  ;;  %v456_v20 = vrot.slane %v385_v17, 7  ;;  %v4002_v31 = vpack.i.bf16 %v4266_v25, %v4261_v24  ;;  %s4083_s12 = smov 8  }
  0x1f   : > { %6676 = vst [vmem:[#allocation10_spill] sm:$0xff] %v4236_v10  ;;  %3998 = vrot.lane.b32.xlu0 %v3997_v15, %s4076_s15  ;;  %v459_v26 = vrot.slane %v387_v18, 7  ;;  %v388_v51 = vld [vmem:[%s4225_s14 + $0x20] sm:$0xff]  ;;  %v389_v52 = vld [vmem:[%s4225_s14 + $0x28] sm:$0xff]  ;;  %v390_v13 = vld [vmem:[%s4225_s14 + $0x30] sm:$0xff]  ;;  %s6679_s1 = sld [smem:[#allocation26_spill]] }
  0x20   : > { %v4248_v21 = vsel %vm452_vm0, 0.0, %v458_v16  ;;  %v4253_v22 = vsel %vm452_vm0, 0.0, %v455_v19  ;;  %v4256_v23 = vsel %vm452_vm0, %v455_v19, %v456_v20  ;;  %6677 = vst [vmem:[#allocation11_spill] sm:$0xff] %v4261_v24  ;;  %v570_v40 = vsel %vm452_vm0, %v456_v20, 0.0  ;;  %v4365_v15 = vld [vmem:[%s4225_s14 + $0x38] sm:$0xff]  ;;  %v408_v24 = vld [vmem:[%s4225_s14 + $0xc0] sm:$0xff] }
  0x21   : > { %1272 = vrot.lane.b32.xlu2 %v4248_v21, %s6595_s16  ;;  %6678 = vst [vmem:[#allocation12_spill] sm:$0xff] %v4266_v25  ;;  %984 = vrot.lane.b32.xlu1 %v4253_v22, %s4078_s22  ;;  %v705_v27 = vrot.slane %v4253_v22, 2  ;;  %v706_v28 = vrot.slane %v4256_v23, 2  ;;  %v624_v29 = vrot.slane %v4253_v22, 1  ;;  %v625_v30 = vrot.slane %v4256_v23, 1  ;;  %v4796_v6 = vld [vmem:[%s4225_s14 + $0x58] sm:$0xff] }
  0x22   : > { %v4277_v32 = vsel %vm452_vm0, %v458_v16, %v459_v26  ;;  %v629_v35 = vrot.slane %v4248_v21, 1  ;;  %v710_v37 = vrot.slane %v4248_v21, 2  ;;  %v627_v42 = vrot.slane %v570_v40, 1  ;;  %s6757_s13 = smov 24  }
  0x23   : > { %v707_v33 = vsel %vm6648_vm3, %v705_v27, %v706_v28  ;;  %v626_v34 = vsel %vm618_vm2, %v624_v29, %v625_v30  ;;  %v630_v36 = vrot.slane %v4277_v32, 1  ;;  %v711_v38 = vrot.slane %v4277_v32, 2  ;;  %v396_v27 = vld [vmem:[%s4225_s14 + $0x60] sm:$0xff] }
  0x24   : > { %v708_v43 = vrot.slane %v570_v40, 2  ;;  %v628_v44 = vsel %vm618_vm2, %v625_v30, %v627_v42  ;;  %v571_v45 = vsel %vm452_vm0, %v459_v26, 0.0  ;;  %v461_v53 = vrot.slane %v388_v51, 7 }
  0x25   : > { %v631_v39 = vsel %vm618_vm2, %v629_v35, %v630_v36  ;;  %v712_v41 = vsel %vm6648_vm3, %v710_v37, %v711_v38  ;;  %v632_v47 = vrot.slane %v571_v45, 1  ;;  %v713_v48 = vrot.slane %v571_v45, 2  ;;  %v398_v45 = vld [vmem:[%s4225_s14 + $0x70] sm:$0xff] }
  0x26   : > { %v709_v46 = vsel %vm6648_vm3, %v706_v28, %v708_v43  ;;  %v462_v54 = vrot.slane %v389_v52, 7  ;;  %v4319_v56 = vsel %vm452_vm0, 0.0, %v461_v53  ;;  %v464_v16 = vrot.slane %v390_v13, 7  ;;  %v4386_v28 = vld [vmem:[%s4225_s14 + $0x68] sm:$0xff]  ;;  %v416_v43 = vld [vmem:[%s6679_s1] sm:$0xff] }
  0x27   : > { %4003 = vrot.lane.b32.xlu0 %v4002_v31, %s4079_s24  ;;  %v4303_v49 = vsel %vm618_vm2, %v630_v36, %v632_v47  ;;  %v4306_v50 = vsel %vm6648_vm3, %v711_v38, %v713_v48  ;;  %v634_v57 = vrot.slane %v4319_v56, 1  ;;  %v715_v60 = vrot.slane %v4319_v56, 2  ;;  %v4445_v48 = vld [vmem:[%s4225_s14 + $0x78] sm:$0xff] }
  0x28   : > { %v4316_v55 = vsel %vm452_vm0, %v461_v53, %v462_v54  ;;  %v572_v63 = vsel %vm452_vm0, %v462_v54, 0.0  ;;  %v465_v17 = vrot.slane %v4365_v15, 7  ;;  %v4376_v19 = vsel %vm452_vm0, 0.0, %v464_v16  ;;  %v4484_v15 = vld [vmem:[%s4225_s14 + $0x88] sm:$0xff] }
  0x29   : > { %1176 = vrot.lane.b32.xlu2 %v707_v33, %s6599_s25  ;;  %1080 = vrot.lane.b32.xlu1 %v626_v34, %s4081_s29  ;;  %v635_v58 = vrot.slane %v4316_v55, 1  ;;  %v716_v61 = vrot.slane %v4316_v55, 2  ;;  %v718_v0 = vrot.slane %v572_v63, 2  ;;  %v637_v4 = vrot.slane %v572_v63, 1 }
  0x2a   : > { %v4373_v18 = vsel %vm452_vm0, %v464_v16, %v465_v17  ;;  %v639_v20 = vrot.slane %v4376_v19, 1  ;;  %v720_v30 = vrot.slane %v4376_v19, 2  ;;  %v477_v52 = vrot.slane %v4445_v48, 7 }
  0x2b   : > { %v4328_v59 = vsel %vm618_vm2, %v634_v57, %v635_v58  ;;  %v4338_v62 = vsel %vm6648_vm3, %v715_v60, %v716_v61  ;;  %v4352_v8 = vsel %vm6648_vm3, %v716_v61, %v718_v0  ;;  %v4355_v12 = vsel %vm618_vm2, %v635_v58, %v637_v4  ;;  %v400_v4 = vld [vmem:[%s4225_s14 + $0x80] sm:$0xff] }
  0x2c   : > { %v640_v26 = vrot.slane %v4373_v18, 1  ;;  %v721_v31 = vrot.slane %v4373_v18, 2  ;;  %v573_v16 = vsel %vm452_vm0, %v465_v17, 0.0  ;;  %v480_v17 = vrot.slane %v4484_v15, 7 }
  0x2d   : > { %v471_v7 = vrot.slane %v4796_v6, 7  ;;  %vm6650_vm13 = vcmask 1041409   ;;  %vm2596_vm14 = vcmask 1042434   ;;  %vm2598_vm15 = vcmask 1043459  }
  0x2e   : > { %v4398_v35 = vsel %vm618_vm2, %v639_v20, %v640_v26  ;;  %v4403_v36 = vsel %vm6648_vm3, %v720_v30, %v721_v31  ;;  %vm6653_vm1 = vcmask 1044484  }
  0x2f   : > { %1368 = vrot.lane.b32.xlu0 %v631_v39, %s6597_s30 }
  0x31   : > { %986 = vrot.lane.b32.xlu2 %v4256_v23, %s4078_s22  ;;  %1464 = vrot.lane.b32.xlu1 %v712_v41, %s4083_s12 }
  0x37   : > { %1082 = vrot.lane.b32.xlu0 %v628_v44, %s4081_s29 }
  0x39   : > { %1274 = vrot.lane.b32.xlu2 %v4277_v32, %s6595_s16  ;;  %1178 = vrot.lane.b32.xlu1 %v709_v46, %s6599_s25 }
  0x3f   : > { %1370 = vrot.lane.b32.xlu0 %v4303_v49, %s6597_s30 }
  0x41   : > { %796 = vrot.lane.b32.xlu2 %v626_v34, %s4076_s15  ;;  %1466 = vrot.lane.b32.xlu1 %v4306_v50, %s4083_s12  ;;  %v474_v34 = vrot.slane %v4386_v28, 7 }
  0x47   : > { %892 = vrot.lane.b32.xlu0 %v707_v33, %s4079_s24  ;;  %v473_v33 = vrot.slane %v396_v27, 7 }
  0x49   : > { %1084 = vrot.lane.b32.xlu2 %v631_v39, %s4081_s29  ;;  %988 = vrot.lane.b32.xlu1 %v4248_v21, %s4078_s22  ;;  %v4410_v37 = vsel %vm452_vm0, %v473_v33, %v474_v34  ;;  %v4413_v38 = vsel %vm452_vm0, 0.0, %v473_v33  ;;  %v479_v33 = vrot.slane %v400_v4, 7 }
  0x4a   : > { %v655_v42 = vrot.slane %v4410_v37, 1  ;;  %v736_v47 = vrot.slane %v4410_v37, 2 }
  0x4b   : > { %v4506_v14 = vsel %vm452_vm0, 0.0, %v479_v33 }
  0x4c   : > { %v745_v28 = vrot.slane %v4506_v14, 2 }
  0x4f   : > { %1180 = vrot.lane.b32.xlu0 %v712_v41, %s6599_s25 }
  0x51   : > { %1372 = vrot.lane.b32.xlu2 %v4328_v59, %s6597_s30  ;;  %1276 = vrot.lane.b32.xlu1 %v4319_v56, %s6595_s16 }
  0x57   : > { %1468 = vrot.lane.b32.xlu0 %v4338_v62, %s4083_s12 }
  0x59   : > { %894 = vrot.lane.b32.xlu2 %v709_v46, %s4079_s24  ;;  %798 = vrot.lane.b32.xlu1 %v628_v44, %s4076_s15  ;;  %v735_v46 = vrot.slane %v4413_v38, 2 }
  0x5f   : > { %990 = vrot.lane.b32.xlu0 %v4277_v32, %s4078_s22 }
  0x61   : > { %1182 = vrot.lane.b32.xlu2 %v4306_v50, %s6599_s25  ;;  %1086 = vrot.lane.b32.xlu1 %v4303_v49, %s4081_s29 }
  0x67   : > { %1278 = vrot.lane.b32.xlu0 %v4316_v55, %s6595_s16 }
  0x69   : > { %1470 = vrot.lane.b32.xlu2 %v4352_v8, %s4083_s12  ;;  %1374 = vrot.lane.b32.xlu1 %v4355_v12, %s6597_s30 }
  0x6f   : > { %800 = vrot.lane.b32.xlu0 %v631_v39, %s4076_s15  ;;  %v417_v39 = vld [vmem:[%s6679_s1 + $0x8] sm:$0x1] }
  0x70   : > { %3791 = vmatpush.msk.msra.mxu0 %vm452_vm0, %v417_v39  ;;  %3935 = vmatpush.msk.msra.mxu2 %vm452_vm0, %v417_v39 }
  0x71   : > { %992 = vrot.lane.b32.xlu2 %v4319_v56, %s4078_s22  ;;  %896 = vrot.lane.b32.xlu1 %v712_v41, %s4079_s24  ;;  %v654_v41 = vrot.slane %v4413_v38, 1 }
  0x72   : > { %3936 = vmatpush.msk.msra.mxu3 %vm452_vm0, %v417_v39  ;;  %1942 = vmatpush.msra.mxu0 %v416_v43 }
  0x73   : > { %3937 = vmatpush.msra.mxu2 %v416_v43  ;;  %v4435_v44 = vsel %vm618_vm2, %v654_v41, %v655_v42 }
  0x74   : > { %3938 = vmatpush.msra.mxu3 %v416_v43  ;;  %v642_v43 = vrot.slane %v573_v16, 1 }
  0x77   : > { %1088 = vrot.lane.b32.xlu0 %v4328_v59, %s4081_s29 }
  0x79   : > { %1280 = vrot.lane.b32.xlu2 %v4376_v19, %s6595_s16  ;;  %1184 = vrot.lane.b32.xlu1 %v4338_v62, %s6599_s25  ;;  %s6681_s16 = smov 5   ;;  %s6682_s25 = smov 6  }
  0x7b   : > { %v4390_v29 = vpop.permute.xlu2 %1272 }
  0x7f   : > { %1376 = vrot.lane.b32.xlu0 %v4398_v35, %s6597_s30  ;;  %s6685_s30 = smov 7  }
  0x81   : > { %802 = vrot.lane.b32.xlu2 %v4303_v49, %s4076_s15  ;;  %1472 = vrot.lane.b32.xlu1 %v4403_v36, %s4083_s12  ;;  %v476_v49 = vrot.slane %v398_v45, 7 }
  0x83   : > { %v4422_v40 = vpop.permute.xlu2 %1176  ;;  %v4458_v53 = vsel %vm452_vm0, 0.0, %v476_v49  ;;  %v4465_v54 = vsel %vm452_vm0, %v476_v49, %v477_v52 }
  0x84   : > { %v659_v60 = vrot.slane %v4458_v53, 1  ;;  %v660_v61 = vrot.slane %v4465_v54, 1  ;;  %v740_v20 = vrot.slane %v4458_v53, 2  ;;  %v741_v27 = vrot.slane %v4465_v54, 2 }
  0x86   : > { %v4478_v0 = vsel %vm618_vm2, %v659_v60, %v660_v61  ;;  %v4502_v60 = vsel %vm6648_vm3, %v740_v20, %v741_v27 }
  0x87   : > { %898 = vrot.lane.b32.xlu0 %v4306_v50, %s4079_s24  ;;  %v4455_v50 = vsel %vm6648_vm3, %v735_v46, %v736_v47  ;;  %6680 = vst [vmem:[#allocation13_spill] sm:$0xff] %v4478_v0 }
  0x88   : > { %6683 = vst [vmem:[#allocation14_spill] sm:$0xff] %v4502_v60 }
  0x89   : > { %994 = vrot.lane.b32.xlu2 %v4316_v55, %s4078_s22  ;;  %820 = vrot.lane.b32.xlu1 %v4435_v44, %s4076_s15 }
  0x8b   : > { %v4449_v51 = vpop.permute.xlu2 %986 }
  0x8f   : > { %916 = vrot.lane.b32.xlu0 %v4455_v50, %s4079_s24 }
  0x91   : > { %1012 = vrot.lane.b32.xlu2 %v4458_v53, %s4078_s22  ;;  %1090 = vrot.lane.b32.xlu1 %v4355_v12, %s4081_s29  ;;  %v3999_v57 = vpop.permute.xlu0 %3998 }
  0x92   : > { %v4000_v13 = vunpack.i.l.bf16 %v3999_v57 }
  0x93   : > { %v4471_v58 = vpop.permute.xlu2 %1274  ;;  %v985_v63 = vpop.permute.xlu1 %984 }
  0x94   : > { %v1561_v45 = vsel %vm1560_vm4, %v4208_v2, %v4000_v13  ;;  %v4512_v13 = vsel %vm452_vm0, %v479_v33, %v480_v17  ;;  %v723_v33 = vrot.slane %v573_v16, 2 }
  0x95   : > { %6684 = vst [vmem:[#allocation15_spill] sm:$0xff] %v4512_v13 }
  0x97   : > { %1186 = vrot.lane.b32.xlu0 %v4352_v8, %s6681_s16 }
  0x99   : > { %1282 = vrot.lane.b32.xlu2 %v4373_v18, %s6682_s25  ;;  %1108 = vrot.lane.b32.xlu1 %v4478_v0, %s4081_s29  ;;  %v4004_v30 = vpop.permute.xlu0 %4003 }
  0x9a   : > { %v4005_v39 = vunpack.i.l.bf16 %v4004_v30 }
  0x9b   : > { %v4493_v41 = vpop.permute.xlu2 %796  ;;  %v1081_v46 = vpop.permute.xlu1 %1080 }
  0x9c   : > { %v1594_v49 = vsel %vm1593_vm5, %v1561_v45, %v4005_v39  ;;  %v4517_v39 = vsel %vm618_vm2, %v640_v26, %v642_v43  ;;  %v664_v26 = vrot.slane %v4506_v14, 1 }
  0x9d   : > { %v1627_v4 = vsel %vm1626_vm6, %v1594_v49, %v985_v63  ;;  %v4006_v49 = vunpack.i.h.bf16 %v4004_v30  ;;  %v576_v30 = vsel %vm452_vm0, %v474_v34, 0.0  ;;  %v746_v34 = vrot.slane %v4512_v13, 2 }
  0x9e   : > { %v1660_v11 = vsel %vm1659_vm7, %v1627_v4, %v1081_v46 }
  0x9f   : > { %v1693_v20 = vsel %vm1692_vm8, %v1660_v11, %v4422_v40  ;;  %1204 = vrot.lane.b32.xlu0 %v4502_v60, %s6681_s16  ;;  %v665_v11 = vrot.slane %v4512_v13, 1  ;;  %v4001_v40 = vunpack.i.h.bf16 %v3999_v57 }
  0xa0   : > { %v1726_v63 = vsel %vm1725_vm9, %v1693_v20, %v4390_v29  ;;  %v4536_v29 = vsel %vm6648_vm3, %v721_v31, %v723_v33  ;;  %v657_v20 = vrot.slane %v576_v30, 1 }
  0xa1   : > { %1300 = vrot.lane.b32.xlu2 %v4506_v14, %s6682_s25  ;;  %1378 = vrot.lane.b32.xlu1 %v4517_v39, %s6685_s30  ;;  %v1369_v45 = vpop.permute.xlu0 %1368  ;;  %v4542_v16 = vsel %vm618_vm2, %v664_v26, %v665_v11  ;;  %v1562_v57 = vsel %vm1560_vm4, %v4203_v1, %v4001_v40 }
  0xa2   : > { %v1759_v43 = vsel %vm1758_vm10, %v1726_v63, %v1369_v45  ;;  %v1595_v31 = vsel %vm1593_vm5, %v1562_v57, %v4006_v49  ;;  %v4564_v40 = vsel %vm618_vm2, %v655_v42, %v657_v20  ;;  %v738_v57 = vrot.slane %v576_v30, 2 }
  0xa3   : > { %v1085_v46 = vpop.permute.xlu2 %1084  ;;  %v1465_v4 = vpop.permute.xlu1 %1464  ;;  %v1628_v63 = vsel %vm1626_vm6, %v1595_v31, %v4449_v51  ;;  %v4570_v51 = vsel %vm6648_vm3, %v745_v28, %v746_v34  ;;  %v577_v20 = vsel %vm452_vm0, %v477_v52, 0.0  ;;  %v1563_v30 = vsel %vm1560_vm4, %v4253_v22, %v4493_v41 }
  0xa4   : > { %v1792_v5 = vsel %vm1791_vm11, %v1759_v43, %v1465_v4  ;;  %v662_v48 = vrot.slane %v577_v20, 1 }
  0xa5   : > { %3792 = vmatmul.msk.f32.vlgmr.msra.gmra.mxu0 %vm6649_vm12, %v1792_v5 }
  0xa7   : > { %1474 = vrot.lane.b32.xlu0 %v4536_v29, %s4083_s12 }
  0xa9   : > { %1396 = vrot.lane.b32.xlu2 %v4542_v16, %s6685_s30  ;;  %804 = vrot.lane.b32.xlu1 %v4328_v59, %s4076_s15  ;;  %v1083_v5 = vpop.permute.xlu0 %1082 }
  0xaa   : > { %v1661_v45 = vsel %vm1659_vm7, %v1628_v63, %v1083_v5  ;;  %v4595_v63 = vld [vmem:[%s4225_s14 + $0x48] sm:$0xff] }
  0xab   : > { %v1373_v33 = vpop.permute.xlu2 %1372  ;;  %v1179_v26 = vpop.permute.xlu1 %1178 }
  0xac   : > { %v1694_v59 = vsel %vm1692_vm8, %v1661_v45, %v1179_v26  ;;  %v468_v45 = vrot.slane %v4595_v63, 7 }
  0xad   : > { %v1727_v43 = vsel %vm1725_vm9, %v1694_v59, %v4471_v58  ;;  %v392_v58 = vld [vmem:[%s4225_s14 + $0x40] sm:$0xff] }
  0xae   : > { %v467_v52 = vrot.slane %v392_v58, 7  ;;  %v743_v58 = vrot.slane %v577_v20, 2 }
  0xaf   : > { %900 = vrot.lane.b32.xlu0 %v4338_v62, %s4079_s24  ;;  %v4586_v62 = vsel %vm6648_vm3, %v736_v47, %v738_v57 }
  0xb0   : > { %v4614_v22 = vsel %vm452_vm0, %v467_v52, %v468_v45  ;;  %v4617_v41 = vsel %vm452_vm0, 0.0, %v467_v52 }
  0xb1   : > { %822 = vrot.lane.b32.xlu2 %v4564_v40, %s4076_s15  ;;  %1492 = vrot.lane.b32.xlu1 %v4570_v51, %s4083_s12  ;;  %v1371_v42 = vpop.permute.xlu0 %1370  ;;  %6687 = vst [vmem:[#allocation17_spill] sm:$0xff] %v4614_v22  ;;  %v645_v57 = vrot.slane %v4614_v22, 1 }
  0xb2   : > { %v1760_v49 = vsel %vm1758_vm10, %v1727_v43, %v1371_v42  ;;  %v4609_v42 = vsel %vm618_vm2, %v660_v61, %v662_v48 }
  0xb3   : > { %v895_v4 = vpop.permute.xlu2 %894  ;;  %v1467_v31 = vpop.permute.xlu1 %1466  ;;  %6686 = vst [vmem:[#allocation16_spill] sm:$0xff] %v4609_v42 }
  0xb4   : > { %v1793_v5 = vsel %vm1791_vm11, %v1760_v49, %v1467_v31  ;;  %v644_v49 = vrot.slane %v4617_v41, 1 }
  0xb5   : > { %3793 = vmatmul.msk.f32.gmra.mxu0 %vm6649_vm12, %v1793_v5 }
  0xb6   : > { %v4633_v48 = vsel %vm618_vm2, %v644_v49, %v645_v57 }
  0xb7   : > { %996 = vrot.lane.b32.xlu0 %v4376_v19, %s4078_s22 }
  0xb9   : > { %1092 = vrot.lane.b32.xlu2 %v4398_v35, %s4081_s29  ;;  %918 = vrot.lane.b32.xlu1 %v4586_v62, %s4079_s24  ;;  %v893_v47 = vpop.permute.xlu0 %892 }
  0xba   : > { %v1596_v59 = vsel %vm1593_vm5, %v1563_v30, %v893_v47 }
  0xbb   : > { %v1183_v28 = vpop.permute.xlu2 %1182  ;;  %v989_v26 = vpop.permute.xlu1 %988 }
  0xbc   : > { %v1629_v43 = vsel %vm1626_vm6, %v1596_v59, %v989_v26  ;;  %v4639_v26 = vsel %vm6648_vm3, %v741_v27, %v743_v58  ;;  %v726_v27 = vrot.slane %v4614_v22, 2 }
  0xbd   : > { %v1662_v31 = vsel %vm1659_vm7, %v1629_v43, %v1085_v46  ;;  %6688 = vst [vmem:[#allocation18_spill] sm:$0xff] %v4639_v26 }
  0xbf   : > { %1014 = vrot.lane.b32.xlu0 %v4465_v54, %s4078_s22 }
  0xc1   : > { %1110 = vrot.lane.b32.xlu2 %v4609_v42, %s4081_s29  ;;  %1188 = vrot.lane.b32.xlu1 %v4403_v36, %s6681_s16  ;;  %v1181_v61 = vpop.permute.xlu0 %1180 }
  0xc2   : > { %v1695_v30 = vsel %vm1692_vm8, %v1662_v31, %v1181_v61  ;;  %v725_v61 = vrot.slane %v4617_v41, 2  ;;  %v578_v31 = vsel %vm452_vm0, %v480_v17, 0.0 }
  0xc3   : > { %v1471_v5 = vpop.permute.xlu2 %1470  ;;  %v1277_v47 = vpop.permute.xlu1 %1276  ;;  %v748_v17 = vrot.slane %v578_v31, 2 }
  0xc4   : > { %v1728_v52 = vsel %vm1725_vm9, %v1695_v30, %v1277_v47  ;;  %v4658_v58 = vsel %vm6648_vm3, %v725_v61, %v726_v27  ;;  %v667_v30 = vrot.slane %v578_v31, 1 }
  0xc5   : > { %v1761_v20 = vsel %vm1758_vm10, %v1728_v52, %v1373_v33 }
  0xc7   : > { %1284 = vrot.lane.b32.xlu0 %v4617_v41, %s6682_s25 }
  0xc9   : > { %1380 = vrot.lane.b32.xlu2 %v4633_v48, %s6685_s30  ;;  %1206 = vrot.lane.b32.xlu1 %v4639_v26, %s6681_s16  ;;  %v1469_v46 = vpop.permute.xlu0 %1468 }
  0xca   : > { %v1794_v43 = vsel %vm1791_vm11, %v1761_v20, %v1469_v46 }
  0xcb   : > { %v993_v59 = vpop.permute.xlu2 %992  ;;  %v799_v49 = vpop.permute.xlu1 %798  ;;  %3794 = vmatmul.msk.f32.gmra.mxu0 %vm6649_vm12, %v1794_v43 }
  0xcc   : > { %v1564_v33 = vsel %vm1560_vm4, %v4256_v23, %v799_v49  ;;  %v4673_v23 = vsel %vm618_vm2, %v665_v11, %v667_v30 }
  0xcd   : > { %v1597_v47 = vsel %vm1593_vm5, %v1564_v33, %v895_v4 }
  0xcf   : > { %1302 = vrot.lane.b32.xlu0 %v4512_v13, %s6682_s25 }
  0xd1   : > { %806 = vrot.lane.b32.xlu2 %v4355_v12, %s4076_s15  ;;  %1476 = vrot.lane.b32.xlu1 %v4658_v58, %s4083_s12  ;;  %v991_v15 = vpop.permute.xlu0 %990  ;;  %v4678_v12 = vsel %vm6648_vm3, %v746_v34, %v748_v17 }
  0xd2   : > { %v1630_v46 = vsel %vm1626_vm6, %v1597_v47, %v991_v15 }
  0xd3   : > { %v1281_v52 = vpop.permute.xlu2 %1280  ;;  %v1087_v20 = vpop.permute.xlu1 %1086 }
  0xd4   : > { %v1663_v43 = vsel %vm1659_vm7, %v1630_v46, %v1087_v20 }
  0xd5   : > { %v1696_v11 = vsel %vm1692_vm8, %v1663_v43, %v1183_v28  ;;  %v574_v43 = vsel %vm452_vm0, %v468_v45, 0.0 }
  0xd7   : > { %1398 = vrot.lane.b32.xlu0 %v4673_v23, %s6685_s30 }
  0xd9   : > { %1494 = vrot.lane.b32.xlu2 %v4678_v12, %s4083_s12  ;;  %902 = vrot.lane.b32.xlu1 %v4352_v8, %s4079_s24  ;;  %v1279_v4 = vpop.permute.xlu0 %1278 }
  0xda   : > { %v1729_v61 = vsel %vm1725_vm9, %v1696_v11, %v1279_v4  ;;  %v402_v11 = vld [vmem:[%s4225_s14 + $0x90] sm:$0xff] }
  0xdb   : > { %v4689_v49 = vpop.permute.xlu2 %802  ;;  %v1375_v34 = vpop.permute.xlu1 %1374 }
  0xdc   : > { %v1762_v31 = vsel %vm1758_vm10, %v1729_v61, %v1375_v34  ;;  %v647_v61 = vrot.slane %v574_v43, 1 }
  0xdd   : > { %v1795_v33 = vsel %vm1791_vm11, %v1762_v31, %v1471_v5  ;;  %v728_v31 = vrot.slane %v574_v43, 2 }
  0xde   : > { %3795 = vmatmul.msk.f32.gmra.mxu0 %vm6649_vm12, %v1795_v33 }
  0xdf   : > { %824 = vrot.lane.b32.xlu0 %v4478_v0, %s4076_s15 }
  0xe1   : > { %920 = vrot.lane.b32.xlu2 %v4502_v60, %s4079_s24  ;;  %998 = vrot.lane.b32.xlu1 %v4373_v18, %s4078_s22  ;;  %v801_v8 = vpop.permute.xlu0 %800 }
  0xe2   : > { %v1565_v15 = vsel %vm1560_vm4, %v4248_v21, %v801_v8  ;;  %v482_v8 = vrot.slane %v402_v11, 7 }
  0xe3   : > { %v4700_v28 = vpop.permute.xlu2 %994  ;;  %v897_v30 = vpop.permute.xlu1 %896 }
  0xe4   : > { %v1598_v5 = vsel %vm1593_vm5, %v1565_v15, %v897_v30 }
  0xe5   : > { %v1631_v47 = vsel %vm1626_vm6, %v1598_v5, %v993_v59  ;;  %v4725_v59 = vld [vmem:[%s4225_s14 + $0x98] sm:$0xff] }
  0xe6   : > { %v6607_v15 = vrot.slane %v4725_v59, 7 }
  0xe7   : > { %1094 = vrot.lane.b32.xlu0 %v4517_v39, %s4081_s29 }
  0xe9   : > { %1190 = vrot.lane.b32.xlu2 %v4536_v29, %s6681_s16  ;;  %1016 = vrot.lane.b32.xlu1 %v4506_v14, %s4078_s22  ;;  %v1089_v17 = vpop.permute.xlu0 %1088 }
  0xea   : > { %v1664_v20 = vsel %vm1659_vm7, %v1631_v47, %v1089_v17  ;;  %v4736_v17 = vsel %vm618_vm2, %v645_v57, %v647_v61  ;;  %v4745_v47 = vsel %vm452_vm0, 0.0, %v482_v8 }
  0xeb   : > { %v4712_v46 = vpop.permute.xlu2 %1012  ;;  %v1185_v21 = vpop.permute.xlu1 %1184  ;;  %6689 = vst [vmem:[#allocation19_spill] sm:$0xff] %v4745_v47  ;;  %v750_v61 = vrot.slane %v4745_v47, 2 }
  0xec   : > { %v1697_v4 = vsel %vm1692_vm8, %v1664_v20, %v1185_v21  ;;  %v4752_v20 = vsel %vm452_vm0, %v482_v8, %v6607_v15  ;;  %v669_v21 = vrot.slane %v4745_v47, 1 }
  0xed   : > { %v1730_v63 = vsel %vm1725_vm9, %v1697_v4, %v1281_v52  ;;  %v4742_v52 = vsel %vm6648_vm3, %v726_v27, %v728_v31  ;;  %6690 = vst [vmem:[#allocation20_spill] sm:$0xff] %v4752_v20  ;;  %v6606_v43 = vrot.slane %v4752_v20, 1 }
  0xef   : > { %1112 = vrot.lane.b32.xlu0 %v4542_v16, %s4081_s29  ;;  %v4763_v11 = vsel %vm618_vm2, %v669_v21, %v6606_v43  ;;  %v394_v21 = vld [vmem:[%s4225_s14 + $0x50] sm:$0xff] }
  0xf0   : > { %v470_v43 = vrot.slane %v394_v21, 7 }
  0xf1   : > { %1208 = vrot.lane.b32.xlu2 %v4570_v51, %s6681_s16  ;;  %1286 = vrot.lane.b32.xlu1 %v4614_v22, %s6682_s25  ;;  %v1377_v34 = vpop.permute.xlu0 %1376 }
  0xf2   : > { %v1763_v45 = vsel %vm1758_vm10, %v1730_v63, %v1377_v34  ;;  %v6605_v34 = vrot.slane %v4752_v20, 2  ;;  %v4808_v25 = vsel %vm452_vm0, 0.0, %v470_v43 }
  0xf3   : > { %v1283_v33 = vpop.permute.xlu2 %1282  ;;  %v1473_v30 = vpop.permute.xlu1 %1472  ;;  %6691 = vst [vmem:[#allocation21_spill] sm:$0xff] %v4808_v25 }
  0xf4   : > { %v1796_v5 = vsel %vm1791_vm11, %v1763_v45, %v1473_v30  ;;  %v4776_v8 = vsel %vm6648_vm3, %v750_v61, %v6605_v34 }
  0xf5   : > { %3796 = vmatmul.msk.f32.gmra.mxu0 %vm6649_vm12, %v1796_v5  ;;  %v1566_v5 = vsel %vm1560_vm4, %v4277_v32, %v4689_v49 }
  0xf7   : > { %1382 = vrot.lane.b32.xlu0 %v4736_v17, %s6685_s30 }
  0xf9   : > { %1478 = vrot.lane.b32.xlu2 %v4742_v52, %s4083_s12  ;;  %1304 = vrot.lane.b32.xlu1 %v4745_v47, %s6682_s25  ;;  %v899_v57 = vpop.permute.xlu0 %898 }
  0xfa   : > { %v1599_v61 = vsel %vm1593_vm5, %v1566_v5, %v899_v57 }
  0xfb   : > { %v1301_v27 = vpop.permute.xlu2 %1300  ;;  %v821_v4 = vpop.permute.xlu1 %820  ;;  %v1632_v32 = vsel %vm1626_vm6, %v1599_v61, %v4700_v28  ;;  %v4817_v28 = vsel %vm452_vm0, %v470_v43, %v471_v7  ;;  %v649_v43 = vrot.slane %v4808_v25, 1 }
  0xfc   : > { %v1575_v10 = vsel %vm1560_vm4, %v4413_v38, %v821_v4 }
  0xff   : > { %808 = vrot.lane.b32.xlu0 %v4398_v35, %s4076_s15 }
 0x101   : > { %904 = vrot.lane.b32.xlu2 %v4403_v36, %s4079_s24  ;;  %1400 = vrot.lane.b32.xlu1 %v4763_v11, %s6685_s30  ;;  %v917_v63 = vpop.permute.xlu0 %916 }
 0x102   : > { %v1608_v21 = vsel %vm1593_vm5, %v1575_v10, %v917_v63 }
 0x103   : > { %v1397_v31 = vpop.permute.xlu2 %1396  ;;  %v1091_v45 = vpop.permute.xlu1 %1090  ;;  %v1641_v10 = vsel %vm1626_vm6, %v1608_v21, %v4712_v46 }
 0x104   : > { %v1665_v57 = vsel %vm1659_vm7, %v1632_v32, %v1091_v45 }
 0x107   : > { %1496 = vrot.lane.b32.xlu0 %v4776_v8, %s4083_s12 }
 0x109   : > { %1000 = vrot.lane.b32.xlu2 %v4617_v41, %s4078_s22  ;;  %826 = vrot.lane.b32.xlu1 %v4609_v42, %s4076_s15  ;;  %v1187_v35 = vpop.permute.xlu0 %1186 }
 0x10a   : > { %v1698_v5 = vsel %vm1692_vm8, %v1665_v57, %v1187_v35  ;;  %v6613_v57 = vrot.slane %v4817_v28, 1 }
 0x10b   : > { %v4784_v36 = vpop.permute.xlu2 %822  ;;  %v1109_v30 = vpop.permute.xlu1 %1108  ;;  %v1731_v45 = vsel %vm1725_vm9, %v1698_v5, %v1283_v33 }
 0x10c   : > { %v1674_v63 = vsel %vm1659_vm7, %v1641_v10, %v1109_v30  ;;  %v4839_v5 = vsel %vm618_vm2, %v649_v43, %v6613_v57  ;;  %v730_v30 = vrot.slane %v4808_v25, 2  ;;  %v575_v57 = vsel %vm452_vm0, %v471_v7, 0.0 }
 0x10d   : > { %v652_v7 = vrot.slane %v575_v57, 1 }
 0x10f   : > { %922 = vrot.lane.b32.xlu0 %v4639_v26, %s4079_s24 }
 0x111   : > { %1018 = vrot.lane.b32.xlu2 %v4512_v13, %s4078_s22  ;;  %1096 = vrot.lane.b32.xlu1 %v4633_v48, %s4081_s29  ;;  %v1205_v34 = vpop.permute.xlu0 %1204 }
 0x113   : > { %v4800_v15 = vpop.permute.xlu2 %1092  ;;  %v1379_v49 = vpop.permute.xlu1 %1378 }
 0x114   : > { %v1764_v35 = vsel %vm1758_vm10, %v1731_v45, %v1379_v49  ;;  %v1707_v49 = vsel %vm1692_vm8, %v1674_v63, %v1205_v34  ;;  %v6692_v45 = vrot.slane %v4725_v59, 7  ;;  %v6612_v34 = vrot.slane %v4817_v28, 2 }
 0x115   : > { %v1740_v46 = vsel %vm1725_vm9, %v1707_v49, %v1301_v27  ;;  %v6693_v63 = vrot.slane %v4752_v20, 1 }
 0x116   : > { %v1773_v43 = vsel %vm1758_vm10, %v1740_v46, %v1397_v31  ;;  %v4858_v27 = vsel %vm6648_vm3, %v730_v30, %v6612_v34 }
 0x117   : > { %1192 = vrot.lane.b32.xlu0 %v4658_v58, %s6681_s16 }
 0x119   : > { %1288 = vrot.lane.b32.xlu2 %v4808_v25, %s6682_s25  ;;  %1114 = vrot.lane.b32.xlu1 %v4673_v23, %s4081_s29  ;;  %v1475_v4 = vpop.permute.xlu0 %1474 }
 0x11a   : > { %v1797_v32 = vsel %vm1791_vm11, %v1764_v35, %v1475_v4  ;;  %v579_v35 = vsel %vm452_vm0, %v6692_v45, 0.0 }
 0x11b   : > { %v4826_v61 = vpop.permute.xlu2 %1110  ;;  %v805_v33 = vpop.permute.xlu1 %804  ;;  %3797 = vmatmul.msk.f32.gmra.mxu0 %vm6649_vm12, %v1797_v32  ;;  %v672_v4 = vrot.slane %v579_v35, 1  ;;  %v753_v46 = vrot.slane %v579_v35, 2 }
 0x11c   : > { %v1567_v35 = vsel %vm1560_vm4, %v4319_v56, %v805_v33 }
 0x11d   : > { %v4864_v49 = vsel %vm618_vm2, %v6693_v63, %v672_v4 }
 0x11f   : > { %1210 = vrot.lane.b32.xlu0 %v4678_v12, %s6681_s16 }
 0x121   : > { %1306 = vrot.lane.b32.xlu2 %v4752_v20, %s6682_s25  ;;  %1384 = vrot.lane.b32.xlu1 %v4839_v5, %s6685_s30  ;;  %v901_v21 = vpop.permute.xlu0 %900 }
 0x123   : > { %v1381_v59 = vpop.permute.xlu2 %1380  ;;  %v1493_v32 = vpop.permute.xlu1 %1492 }
 0x124   : > { %v1806_v10 = vsel %vm1791_vm11, %v1773_v43, %v1493_v32  ;;  %v6694_v32 = vrot.slane %v4752_v20, 2 }
 0x125   : > { %3806 = vmatmul.msk.f32.vlgmr.msra.gmra.mxu2 %vm6649_vm12, %v1806_v10 }
 0x126   : > { %v4877_v43 = vsel %vm6648_vm3, %v6694_v32, %v753_v46 }
 0x127   : > { %1480 = vrot.lane.b32.xlu0 %v4858_v27, %s4083_s12 }
 0x129   : > { %1402 = vrot.lane.b32.xlu2 %v4864_v49, %s6685_s30  ;;  %810 = vrot.lane.b32.xlu1 %v4517_v39, %s4076_s15  ;;  %v997_v31 = vpop.permute.xlu0 %996 }
 0x12b   : > { %v4872_v45 = vpop.permute.xlu2 %806  ;;  %v919_v30 = vpop.permute.xlu1 %918 }
 0x12f   : > { %906 = vrot.lane.b32.xlu0 %v4536_v29, %s4079_s24 }
 0x131   : > { %828 = vrot.lane.b32.xlu2 %v4542_v16, %s4076_s15  ;;  %1498 = vrot.lane.b32.xlu1 %v4877_v43, %s4083_s12  ;;  %v1015_v39 = vpop.permute.xlu0 %1014  ;;  %v1600_v16 = vsel %vm1593_vm5, %v1567_v35, %v901_v21  ;;  %v6695_v35 = vrot.slane %v4817_v28, 1 }
 0x132   : > { %v1633_v46 = vsel %vm1626_vm6, %v1600_v16, %v997_v31  ;;  %v404_v16 = vld [vmem:[%s4225_s14 + $0xa0] sm:$0xff] }
 0x133   : > { %v1495_v4 = vpop.permute.xlu2 %1494  ;;  %v1189_v10 = vpop.permute.xlu1 %1188  ;;  %v1666_v34 = vsel %vm1659_vm7, %v1633_v46, %v4800_v15  ;;  %v4927_v46 = vld [vmem:[%s4225_s14 + $0xa8] sm:$0xff] }
 0x134   : > { %v1699_v56 = vsel %vm1692_vm8, %v1666_v34, %v1189_v10 }
 0x137   : > { %1002 = vrot.lane.b32.xlu0 %v4614_v22, %s4078_s22 }
 0x139   : > { %1098 = vrot.lane.b32.xlu2 %v4736_v17, %s4081_s29  ;;  %924 = vrot.lane.b32.xlu1 %v4570_v51, %s4079_s24  ;;  %v1285_v29 = vpop.permute.xlu0 %1284  ;;  %v1576_v51 = vsel %vm1560_vm4, %v4410_v37, %v4784_v36 }
 0x13a   : > { %v1732_v33 = vsel %vm1725_vm9, %v1699_v56, %v1285_v29  ;;  %v1609_v34 = vsel %vm1593_vm5, %v1576_v51, %v919_v30  ;;  %v4923_v29 = vsel %vm618_vm2, %v6695_v35, %v652_v7  ;;  %v406_v35 = vld [vmem:[%s4225_s14 + $0xb0] sm:$0xff] }
 0x13b   : > { %v4894_v63 = vpop.permute.xlu2 %920  ;;  %v1207_v32 = vpop.permute.xlu1 %1206  ;;  %v1765_v31 = vsel %vm1758_vm10, %v1732_v33, %v1381_v59  ;;  %v1642_v10 = vsel %vm1626_vm6, %v1609_v34, %v1015_v39  ;;  %v485_v39 = vrot.slane %v404_v16, 7  ;;  %v6616_v33 = vrot.slane %v4927_v46, 7  ;;  %v4966_v16 = vld [vmem:[%s4225_s14 + $0xb8] sm:$0xff] }
 0x13c   : > { %v1675_v30 = vsel %vm1659_vm7, %v1642_v10, %v4826_v61  ;;  %v733_v34 = vrot.slane %v575_v57, 2  ;;  %v6696_v10 = vrot.slane %v4817_v28, 2 }
 0x13d   : > { %v1708_v59 = vsel %vm1692_vm8, %v1675_v30, %v1207_v32 }
 0x13f   : > { %1020 = vrot.lane.b32.xlu0 %v4745_v47, %s4078_s22 }
 0x141   : > { %1116 = vrot.lane.b32.xlu2 %v4763_v11, %s4081_s29  ;;  %1194 = vrot.lane.b32.xlu1 %v4742_v52, %s6681_s16  ;;  %v1303_v6 = vpop.permute.xlu0 %1302 }
 0x142   : > { %v1741_v56 = vsel %vm1725_vm9, %v1708_v59, %v1303_v6  ;;  %v4946_v6 = vsel %vm452_vm0, 0.0, %v485_v39 }
 0x143   : > { %v4913_v15 = vpop.permute.xlu2 %1190  ;;  %v1477_v21 = vpop.permute.xlu1 %1476  ;;  %v674_v57 = vrot.slane %v4946_v6, 1  ;;  %v755_v59 = vrot.slane %v4946_v6, 2 }
 0x144   : > { %v1798_v36 = vsel %vm1791_vm11, %v1765_v31, %v1477_v21  ;;  %v4951_v31 = vsel %vm452_vm0, %v485_v39, %v6616_v33 }
 0x145   : > { %3798 = vmatmul.msk.f32.gmra.mxu0 %vm6649_vm12, %v1798_v36  ;;  %v4956_v36 = vsel %vm6648_vm3, %v6696_v10, %v733_v34  ;;  %v6614_v39 = vrot.slane %v4951_v31, 2  ;;  %v6704_v60 = vrot.slane %v4951_v31, 1 }
 0x147   : > { %1290 = vrot.lane.b32.xlu0 %v4817_v28, %s6682_s25 }
 0x149   : > { %1386 = vrot.lane.b32.xlu2 %v4923_v29, %s6685_s30  ;;  %1212 = vrot.lane.b32.xlu1 %v4776_v8, %s6681_s16  ;;  %v1399_v51 = vpop.permute.xlu0 %1398 }
 0x14a   : > { %v1774_v61 = vsel %vm1758_vm10, %v1741_v56, %v1399_v51 }
 0x14b   : > { %v4941_v7 = vpop.permute.xlu2 %1208  ;;  %v903_v32 = vpop.permute.xlu1 %902  ;;  %v1807_v21 = vsel %vm1791_vm11, %v1774_v61, %v1495_v4  ;;  %v6615_v4 = vrot.slane %v4951_v31, 1  ;;  %v488_v61 = vrot.slane %v406_v35, 7 }
 0x14c   : > { %3807 = vmatmul.msk.f32.gmra.mxu2 %vm6649_vm12, %v1807_v21  ;;  %v4981_v21 = vsel %vm6648_vm3, %v755_v59, %v6614_v39 }
 0x14d   : > { %v4976_v34 = vsel %vm618_vm2, %v674_v57, %v6615_v4  ;;  %v4991_v35 = vsel %vm452_vm0, 0.0, %v488_v61 }
 0x14e   : > { %v679_v39 = vrot.slane %v4991_v35, 1 }
 0x14f   : > { %1308 = vrot.lane.b32.xlu0 %v4946_v6, %s6682_s25 }
 0x151   : > { %812 = vrot.lane.b32.xlu2 %v4633_v48, %s4076_s15  ;;  %1482 = vrot.lane.b32.xlu1 %v4956_v36, %s4083_s12  ;;  %v825_v30 = vpop.permute.xlu0 %824  ;;  %v6617_v48 = vrot.slane %v4966_v16, 7 }
 0x153   : > { %v1479_v56 = vpop.permute.xlu2 %1478  ;;  %v999_v51 = vpop.permute.xlu1 %998  ;;  %v4988_v10 = vsel %vm452_vm0, %v488_v61, %v6617_v48 }
 0x154   : > { %6697 = vst [vmem:[#allocation22_spill] sm:$0xff] %v4988_v10  ;;  %v6620_v4 = vrot.slane %v4988_v10, 1 }
 0x156   : > { %v5004_v61 = vsel %vm618_vm2, %v679_v39, %v6620_v4  ;;  %v760_v39 = vrot.slane %v4991_v35, 2  ;;  %v6627_v4 = vrot.slane %v4988_v10, 2 }
 0x157   : > { %1404 = vrot.lane.b32.xlu0 %v4976_v34, %s6685_s30 }
 0x159   : > { %1500 = vrot.lane.b32.xlu2 %v4981_v21, %s4083_s12  ;;  %908 = vrot.lane.b32.xlu1 %v4658_v58, %s4079_s24  ;;  %v1095_v57 = vpop.permute.xlu0 %1094  ;;  %v1568_v58 = vsel %vm1560_vm4, %v4316_v55, %v4872_v45  ;;  %v5025_v45 = vsel %vm6648_vm3, %v760_v39, %v6627_v4 }
 0x15b   : > { %v4997_v59 = vpop.permute.xlu2 %904  ;;  %v1017_v33 = vpop.permute.xlu1 %1016 }
 0x15f   : > { %830 = vrot.lane.b32.xlu0 %v4673_v23, %s4076_s15  ;;  %v1601_v23 = vsel %vm1593_vm5, %v1568_v58, %v903_v32  ;;  %v5035_v32 = vld [vmem:[%s4225_s14 + $0xc8] sm:$0xff] }
 0x160   : > { %v1634_v9 = vsel %vm1626_vm6, %v1601_v23, %v999_v51 }
 0x161   : > { %1004 = vrot.lane.b32.xlu2 %v4808_v25, %s4078_s22  ;;  %840 = vrot.lane.b32.xlu1 %v5004_v61, %s4076_s15  ;;  %v1113_v48 = vpop.permute.xlu0 %1112  ;;  %v1667_v55 = vsel %vm1659_vm7, %v1634_v9, %v1095_v57 }
 0x162   : > { %v1700_v2 = vsel %vm1692_vm8, %v1667_v55, %v4913_v15  ;;  %v6626_v15 = vrot.slane %v5035_v32, 7 }
 0x163   : > { %v5015_v3 = vpop.permute.xlu2 %1000  ;;  %v1287_v1 = vpop.permute.xlu1 %1286 }
 0x164   : > { %v1733_v51 = vsel %vm1725_vm9, %v1700_v2, %v1287_v1  ;;  %v1577_v1 = vsel %vm1560_vm4, %v4458_v53, %v825_v30 }
 0x167   : > { %926 = vrot.lane.b32.xlu0 %v4678_v12, %s4079_s24  ;;  %v491_v12 = vrot.slane %v408_v24, 7 }
 0x169   : > { %1100 = vrot.lane.b32.xlu2 %v4839_v5, %s4081_s29  ;;  %936 = vrot.lane.b32.xlu1 %v5025_v45, %s4079_s24  ;;  %v1383_v9 = vpop.permute.xlu0 %1382  ;;  %v5047_v55 = vsel %vm452_vm0, 0.0, %v491_v12  ;;  %v5056_v2 = vsel %vm452_vm0, %v491_v12, %v6626_v15 }
 0x16a   : > { %v1766_v57 = vsel %vm1758_vm10, %v1733_v51, %v1383_v9  ;;  %6698 = vst [vmem:[#allocation23_spill] sm:$0xff] %v5047_v55  ;;  %v684_v30 = vrot.slane %v5047_v55, 1  ;;  %v6629_v9 = vrot.slane %v5056_v2, 1 }
 0x16b   : > { %v5041_v58 = vpop.permute.xlu2 %1018  ;;  %v1305_v39 = vpop.permute.xlu1 %1304  ;;  %v1799_v23 = vsel %vm1791_vm11, %v1766_v57, %v1479_v56  ;;  %v1610_v56 = vsel %vm1593_vm5, %v1577_v1, %v4894_v63 }
 0x16c   : > { %3799 = vmatmul.msk.f32.gmra.mxu0 %vm6649_vm12, %v1799_v23  ;;  %v1643_v57 = vsel %vm1626_vm6, %v1610_v56, %v1017_v33  ;;  %v5073_v15 = vsel %vm618_vm2, %v684_v30, %v6629_v9  ;;  %v765_v56 = vrot.slane %v5047_v55, 2  ;;  %v6628_v30 = vrot.slane %v5056_v2, 2 }
 0x16d   : > { %v1676_v23 = vsel %vm1659_vm7, %v1643_v57, %v1113_v48 }
 0x16e   : > { %v1709_v4 = vsel %vm1692_vm8, %v1676_v23, %v4941_v7  ;;  %v410_v23 = vld [vmem:[%s4225_s14 + $0xd0] sm:$0xff] }
 0x16f   : > { %1022 = vrot.lane.b32.xlu0 %v4752_v20, %s4078_s22  ;;  %v1742_v63 = vsel %vm1725_vm9, %v1709_v4, %v1305_v39  ;;  %v5094_v4 = vsel %vm6648_vm3, %v765_v56, %v6628_v30  ;;  %v6699_v39 = vrot.slane %v4966_v16, 7 }
 0x171   : > { %1196 = vrot.lane.b32.xlu2 %v4858_v27, %s6681_s16  ;;  %1032 = vrot.lane.b32.xlu1 %v5047_v55, %s4078_s22  ;;  %v809_v24 = vpop.permute.xlu0 %808  ;;  %v6702_v55 = vrot.slane %v4988_v10, 2 }
 0x172   : > { %v1569_v42 = vsel %vm1560_vm4, %v4376_v19, %v809_v24 }
 0x173   : > { %v5064_v51 = vpop.permute.xlu2 %1288  ;;  %v1401_v12 = vpop.permute.xlu1 %1400 }
 0x174   : > { %v1775_v33 = vsel %vm1758_vm10, %v1742_v63, %v1401_v12  ;;  %v581_v12 = vsel %vm452_vm0, %v6699_v39, 0.0  ;;  %v5103_v63 = vld [vmem:[%s4225_s14 + $0xd8] sm:$0xff]  ;;  %v494_v39 = vrot.slane %v410_v23, 7 }
 0x175   : > { %v6633_v30 = vrot.slane %v5103_v63, 7  ;;  %v763_v26 = vrot.slane %v581_v12, 2 }
 0x176   : > { %v5123_v25 = vsel %vm452_vm0, 0.0, %v494_v39 }
 0x177   : > { %1118 = vrot.lane.b32.xlu0 %v4864_v49, %s4081_s29  ;;  %v5120_v20 = vsel %vm452_vm0, %v494_v39, %v6633_v30  ;;  %v689_v30 = vrot.slane %v5123_v25, 1  ;;  %v5139_v47 = vsel %vm6648_vm3, %v6702_v55, %v763_v26  ;;  %v1602_v26 = vsel %vm1593_vm5, %v1569_v42, %v4997_v59 }
 0x178   : > { %v6641_v39 = vrot.slane %v5120_v20, 1  ;;  %v770_v55 = vrot.slane %v5123_v25, 2  ;;  %v771_v24 = vrot.slane %v5120_v20, 2 }
 0x179   : > { %1292 = vrot.lane.b32.xlu2 %v4413_v38, %s6682_s25  ;;  %1128 = vrot.lane.b32.xlu1 %v5073_v15, %s4081_s29  ;;  %v1497_v48 = vpop.permute.xlu0 %1496 }
 0x17a   : > { %v1808_v7 = vsel %vm1791_vm11, %v1775_v33, %v1497_v48  ;;  %v682_v33 = vrot.slane %v581_v12, 1  ;;  %v5148_v22 = vsel %vm618_vm2, %v689_v30, %v6641_v39  ;;  %v5172_v39 = vsel %vm6648_vm3, %v770_v55, %v771_v24 }
 0x17b   : > { %v5085_v1 = vpop.permute.xlu2 %1306  ;;  %v827_v57 = vpop.permute.xlu1 %826  ;;  %3808 = vmatmul.msk.f32.gmra.mxu2 %vm6649_vm12, %v1808_v7  ;;  %v6700_v7 = vrot.slane %v4988_v10, 1  ;;  %6703 = vst [vmem:[#allocation24_spill] sm:$0xff] %v5148_v22  ;;  %v6705_v10 = vrot.slane %v4951_v31, 2 }
 0x17d   : > { %v5112_v16 = vsel %vm618_vm2, %v6700_v7, %v682_v33  ;;  %v6701_v33 = vrot.slane %v4927_v46, 7 }
 0x17f   : > { %1214 = vrot.lane.b32.xlu0 %v4877_v43, %s6681_s16  ;;  %v580_v7 = vsel %vm452_vm0, %v6701_v33, 0.0 }
 0x180   : > { %v677_v33 = vrot.slane %v580_v7, 1 }
 0x181   : > { %1388 = vrot.lane.b32.xlu2 %v4435_v44, %s6685_s30  ;;  %1224 = vrot.lane.b32.xlu1 %v5094_v4, %s6681_s16  ;;  %v923_v48 = vpop.permute.xlu0 %922 }
 0x182   : > { %v5153_v13 = vsel %vm618_vm2, %v6704_v60, %v677_v33  ;;  %v758_v60 = vrot.slane %v580_v7, 2 }
 0x183   : > { %v5114_v56 = vpop.permute.xlu2 %1402  ;;  %v1097_v9 = vpop.permute.xlu1 %1096 }
 0x184   : > { %v5177_v0 = vsel %vm6648_vm3, %v6705_v10, %v758_v60 }
 0x187   : > { %1310 = vrot.lane.b32.xlu0 %v4951_v31, %s6682_s25 }
 0x189   : > { %1484 = vrot.lane.b32.xlu2 %v4455_v50, %s4083_s12  ;;  %1320 = vrot.lane.b32.xlu1 %v5123_v25, %s6682_s25  ;;  %v1193_v23 = vpop.permute.xlu0 %1192 }
 0x18b   : > { %v5141_v46 = vpop.permute.xlu2 %828  ;;  %v1115_v12 = vpop.permute.xlu1 %1114 }
 0x18f   : > { %814 = vrot.lane.b32.xlu0 %v4736_v17, %s4076_s15  ;;  %v1635_v17 = vsel %vm1626_vm6, %v1602_v26, %v5015_v3  ;;  %v1578_v3 = vsel %vm1560_vm4, %v4465_v54, %v827_v57 }
 0x190   : > { %v1668_v42 = vsel %vm1659_vm7, %v1635_v17, %v1097_v9 }
 0x191   : > { %1416 = vrot.lane.b32.xlu2 %v5148_v22, %s6685_s30  ;;  %1406 = vrot.lane.b32.xlu1 %v5153_v13, %s6685_s30  ;;  %v1211_v19 = vpop.permute.xlu0 %1210  ;;  %v1701_v59 = vsel %vm1692_vm8, %v1668_v42, %v1193_v23  ;;  %v6706_v22 = vrot.slane %v5035_v32, 7  ;;  %v1611_v23 = vsel %vm1593_vm5, %v1578_v3, %v923_v48  ;;  %v6707_v32 = vrot.slane %v5056_v2, 1 }
 0x192   : > { %v1734_v26 = vsel %vm1725_vm9, %v1701_v59, %v5064_v51  ;;  %v1644_v51 = vsel %vm1626_vm6, %v1611_v23, %v5041_v58  ;;  %v6708_v59 = vrot.slane %v5056_v2, 2 }
 0x193   : > { %v5165_v30 = vpop.permute.xlu2 %1098  ;;  %v1385_v33 = vpop.permute.xlu1 %1384  ;;  %v582_v7 = vsel %vm452_vm0, %v6706_v22, 0.0  ;;  %v1677_v60 = vsel %vm1659_vm7, %v1644_v51, %v1115_v12 }
 0x194   : > { %v687_v9 = vrot.slane %v582_v7, 1  ;;  %v1767_v10 = vsel %vm1758_vm10, %v1734_v26, %v1385_v33  ;;  %v1710_v17 = vsel %vm1692_vm8, %v1677_v60, %v1211_v19  ;;  %v768_v33 = vrot.slane %v582_v7, 2 }
 0x195   : > { %v1743_v42 = vsel %vm1725_vm9, %v1710_v17, %v5085_v1  ;;  %v6709_v26 = vrot.slane %v5103_v63, 7 }
 0x196   : > { %v5197_v57 = vsel %vm618_vm2, %v6707_v32, %v687_v9  ;;  %v5216_v12 = vsel %vm6648_vm3, %v6708_v59, %v768_v33 }
 0x197   : > { %910 = vrot.lane.b32.xlu0 %v4742_v52, %s4079_s24 }
 0x199   : > { %1512 = vrot.lane.b32.xlu2 %v5172_v39, %s4083_s12  ;;  %1502 = vrot.lane.b32.xlu1 %v5177_v0, %s4083_s12  ;;  %v1481_v22 = vpop.permute.xlu0 %1480 }
 0x19a   : > { %v1800_v48 = vsel %vm1791_vm11, %v1767_v10, %v1481_v22  ;;  %v6710_v22 = vrot.slane %v5120_v20, 1 }
 0x19b   : > { %v1117_v52 = vpop.permute.xlu2 %1116  ;;  %v811_v55 = vpop.permute.xlu1 %810  ;;  %3800 = vmatmul.msk.f32.gmra.mxu0 %vm6649_vm12, %v1800_v48 }
 0x19c   : > { %v1570_v60 = vsel %vm1560_vm4, %v4373_v18, %v811_v55  ;;  %v1579_v18 = vsel %vm1560_vm4, %v4506_v14, %v5141_v46 }
 0x19f   : > { %832 = vrot.lane.b32.xlu0 %v4763_v11, %s4076_s15  ;;  %v1776_v11 = vsel %vm1758_vm10, %v1743_v42, %v5114_v56  ;;  %v583_v56 = vsel %vm452_vm0, %v6709_v26, 0.0 }
 0x1a0   : > { %v692_v10 = vrot.slane %v583_v56, 1  ;;  %v773_v51 = vrot.slane %v583_v56, 2 }
 0x1a1   : > { %1006 = vrot.lane.b32.xlu2 %v4817_v28, %s4078_s22  ;;  %842 = vrot.lane.b32.xlu1 %v5112_v16, %s4076_s15  ;;  %v907_v58 = vpop.permute.xlu0 %906 }
 0x1a2   : > { %v5240_v32 = vsel %vm618_vm2, %v6710_v22, %v692_v10  ;;  %v5251_v33 = vsel %vm6648_vm3, %v771_v24, %v773_v51  ;;  %v1603_v42 = vsel %vm1593_vm5, %v1570_v60, %v907_v58 }
 0x1a3   : > { %v1387_v19 = vpop.permute.xlu2 %1386  ;;  %v1499_v3 = vpop.permute.xlu1 %1498 }
 0x1a4   : > { %v1809_v7 = vsel %vm1791_vm11, %v1776_v11, %v1499_v3 }
 0x1a5   : > { %3809 = vmatmul.msk.f32.gmra.mxu2 %vm6649_vm12, %v1809_v7 }
 0x1a7   : > { %928 = vrot.lane.b32.xlu0 %v4776_v8, %s4079_s24 }
 0x1a9   : > { %1102 = vrot.lane.b32.xlu2 %v4923_v29, %s4081_s29  ;;  %938 = vrot.lane.b32.xlu1 %v5139_v47, %s4079_s24  ;;  %v1003_v1 = vpop.permute.xlu0 %1002 }
 0x1aa   : > { %v1636_v3 = vsel %vm1626_vm6, %v1603_v42, %v1003_v1 }
 0x1ab   : > { %v813_v9 = vpop.permute.xlu2 %812  ;;  %v925_v23 = vpop.permute.xlu1 %924  ;;  %v1669_v7 = vsel %vm1659_vm7, %v1636_v3, %v5165_v30 }
 0x1ac   : > { %v1612_v30 = vsel %vm1593_vm5, %v1579_v18, %v925_v23  ;;  %v1571_v3 = vsel %vm1560_vm4, %v4617_v41, %v813_v9 }
 0x1af   : > { %1024 = vrot.lane.b32.xlu0 %v4946_v6, %s4078_s22 }
 0x1b1   : > { %1198 = vrot.lane.b32.xlu2 %v4956_v36, %s6681_s16  ;;  %1034 = vrot.lane.b32.xlu1 %v5056_v2, %s4078_s22  ;;  %v1021_v8 = vpop.permute.xlu0 %1020 }
 0x1b2   : > { %v1645_v10 = vsel %vm1626_vm6, %v1612_v30, %v1021_v8 }
 0x1b3   : > { %v1501_v48 = vpop.permute.xlu2 %1500  ;;  %v1195_v63 = vpop.permute.xlu1 %1194  ;;  %v1678_v14 = vsel %vm1659_vm7, %v1645_v10, %v1117_v52 }
 0x1b4   : > { %v1702_v26 = vsel %vm1692_vm8, %v1669_v7, %v1195_v63 }
 0x1b7   : > { %1120 = vrot.lane.b32.xlu0 %v4976_v34, %s4081_s29 }
 0x1b9   : > { %1294 = vrot.lane.b32.xlu2 %v4410_v37, %s6682_s25  ;;  %1130 = vrot.lane.b32.xlu1 %v5197_v57, %s4081_s29  ;;  %v1291_v17 = vpop.permute.xlu0 %1290 }
 0x1ba   : > { %v1735_v24 = vsel %vm1725_vm9, %v1702_v26, %v1291_v17 }
 0x1bb   : > { %v1005_v59 = vpop.permute.xlu2 %1004  ;;  %v1213_v11 = vpop.permute.xlu1 %1212  ;;  %v1768_v56 = vsel %vm1758_vm10, %v1735_v24, %v1387_v19 }
 0x1bc   : > { %v1711_v46 = vsel %vm1692_vm8, %v1678_v14, %v1213_v11 }
 0x1bf   : > { %1216 = vrot.lane.b32.xlu0 %v4981_v21, %s6681_s16 }
 0x1c1   : > { %1390 = vrot.lane.b32.xlu2 %v4564_v40, %s6685_s30  ;;  %1226 = vrot.lane.b32.xlu1 %v5216_v12, %s6681_s16  ;;  %v1309_v55 = vpop.permute.xlu0 %1308 }
 0x1c2   : > { %v1744_v23 = vsel %vm1725_vm9, %v1711_v46, %v1309_v55 }
 0x1c3   : > { %v1101_v58 = vpop.permute.xlu2 %1100  ;;  %v1483_v1 = vpop.permute.xlu1 %1482 }
 0x1c4   : > { %v1801_v22 = vsel %vm1791_vm11, %v1768_v56, %v1483_v1 }
 0x1c5   : > { %3801 = vmatmul.msk.f32.gmra.mxu0 %vm6649_vm12, %v1801_v22  ;;  %v6711_v22 = vld [vmem:[#allocation24_spill] sm:$0xff] }
 0x1c7   : > { %1312 = vrot.lane.b32.xlu0 %v4991_v35, %s6682_s25 }
 0x1c9   : > { %1486 = vrot.lane.b32.xlu2 %v4586_v62, %s4083_s12  ;;  %1322 = vrot.lane.b32.xlu1 %v5120_v20, %s6682_s25  ;;  %v1405_v19 = vpop.permute.xlu0 %1404 }
 0x1ca   : > { %v1777_v8 = vsel %vm1758_vm10, %v1744_v23, %v1405_v19 }
 0x1cb   : > { %v1197_v63 = vpop.permute.xlu2 %1196  ;;  %v909_v51 = vpop.permute.xlu1 %908  ;;  %v1810_v52 = vsel %vm1791_vm11, %v1777_v8, %v1501_v48 }
 0x1cc   : > { %3810 = vmatmul.msk.f32.gmra.mxu2 %vm6649_vm12, %v1810_v52  ;;  %v1604_v11 = vsel %vm1593_vm5, %v1571_v3, %v909_v51 }
 0x1cd   : > { %v1637_v48 = vsel %vm1626_vm6, %v1604_v11, %v1005_v59 }
 0x1ce   : > { %v1670_v18 = vsel %vm1659_vm7, %v1637_v48, %v1101_v58 }
 0x1cf   : > { %816 = vrot.lane.b32.xlu0 %v4839_v5, %s4076_s15  ;;  %v1703_v41 = vsel %vm1692_vm8, %v1670_v18, %v1197_v63  ;;  %v6713_v18 = vld [vmem:[#allocation15_spill] sm:$0xff] }
 0x1d1   : > { %1418 = vrot.lane.b32.xlu2 %v5240_v32, %s6685_s30  ;;  %1408 = vrot.lane.b32.xlu1 %v5004_v61, %s6685_s30  ;;  %v831_v60 = vpop.permute.xlu0 %830 }
 0x1d3   : > { %v1293_v17 = vpop.permute.xlu2 %1292  ;;  %v841_v42 = vpop.permute.xlu1 %840 }
 0x1d7   : > { %912 = vrot.lane.b32.xlu0 %v4858_v27, %s4079_s24  ;;  %v1736_v27 = vsel %vm1725_vm9, %v1703_v41, %v1293_v17  ;;  %v5345_v17 = vld [vmem:[%s4225_s14 + $0xe8] sm:$0xff]  ;;  %v1580_v41 = vsel %vm1560_vm4, %v6713_v18, %v831_v60 }
 0x1d9   : > { %1514 = vrot.lane.b32.xlu2 %v5251_v33, %s4083_s12  ;;  %1504 = vrot.lane.b32.xlu1 %v5025_v45, %s4083_s12  ;;  %v927_v5 = vpop.permute.xlu0 %926 }
 0x1db   : > { %v1389_v7 = vpop.permute.xlu2 %1388  ;;  %v937_v26 = vpop.permute.xlu1 %936 }
 0x1dc   : > { %v1769_v59 = vsel %vm1758_vm10, %v1736_v27, %v1389_v7  ;;  %v498_v7 = vrot.slane %v5345_v17, 7  ;;  %v1613_v27 = vsel %vm1593_vm5, %v1580_v41, %v927_v5 }
 0x1df   : > { %834 = vrot.lane.b32.xlu0 %v4864_v49, %s4076_s15 }
 0x1e1   : > { %1008 = vrot.lane.b32.xlu2 %v4413_v38, %s4078_s22  ;;  %844 = vrot.lane.b32.xlu1 %v5073_v15, %s4076_s15  ;;  %v1023_v9 = vpop.permute.xlu0 %1022 }
 0x1e3   : > { %v1485_v24 = vpop.permute.xlu2 %1484  ;;  %v1033_v55 = vpop.permute.xlu1 %1032 }
 0x1e4   : > { %v1802_v58 = vsel %vm1791_vm11, %v1769_v59, %v1485_v24 }
 0x1e5   : > { %3802 = vmatmul.msk.f32.gmra.mxu0 %vm6649_vm12, %v1802_v58  ;;  %v6714_v58 = vld [vmem:[#allocation22_spill] sm:$0xff] }
 0x1e7   : > { %930 = vrot.lane.b32.xlu0 %v4877_v43, %s4079_s24 }
 0x1e9   : > { %1104 = vrot.lane.b32.xlu2 %v4435_v44, %s4081_s29  ;;  %940 = vrot.lane.b32.xlu1 %v5094_v4, %s4079_s24  ;;  %v1119_v38 = vpop.permute.xlu0 %1118  ;;  %v1585_v44 = vsel %vm1560_vm4, %v4991_v35, %v841_v42  ;;  %v6712_v42 = vld [vmem:[#allocation13_spill] sm:$0xff] }
 0x1ea   : > { %v1618_v10 = vsel %vm1593_vm5, %v1585_v44, %v937_v26 }
 0x1eb   : > { %v1417_v49 = vpop.permute.xlu2 %1416  ;;  %v1129_v30 = vpop.permute.xlu1 %1128 }
 0x1ef   : > { %1026 = vrot.lane.b32.xlu0 %v4951_v31, %s4078_s22 }
 0x1f1   : > { %1200 = vrot.lane.b32.xlu2 %v4455_v50, %s6681_s16  ;;  %1036 = vrot.lane.b32.xlu1 %v5123_v25, %s4078_s22  ;;  %v1215_v1 = vpop.permute.xlu0 %1214  ;;  %v1651_v50 = vsel %vm1626_vm6, %v1618_v10, %v1033_v55  ;;  %v1646_v55 = vsel %vm1626_vm6, %v1613_v27, %v1023_v9 }
 0x1f2   : > { %v1684_v46 = vsel %vm1659_vm7, %v1651_v50, %v1129_v30  ;;  %v6715_v30 = vld [vmem:[#allocation14_spill] sm:$0xff] }
 0x1f3   : > { %v1513_v43 = vpop.permute.xlu2 %1512  ;;  %v1225_v56 = vpop.permute.xlu1 %1224 }
 0x1f4   : > { %v1717_v19 = vsel %vm1692_vm8, %v1684_v46, %v1225_v56 }
 0x1f7   : > { %1122 = vrot.lane.b32.xlu0 %v5153_v13, %s4081_s29 }
 0x1f9   : > { %1296 = vrot.lane.b32.xlu2 %v4458_v53, %s6682_s25  ;;  %1132 = vrot.lane.b32.xlu1 %v6711_v22, %s4081_s29  ;;  %v1311_v14 = vpop.permute.xlu0 %1310  ;;  %v412_v53 = vld [vmem:[%s4225_s14 + $0xe0] sm:$0xff] }
 0x1fa   : > { %v497_v48 = vrot.slane %v412_v53, 7 }
 0x1fb   : > { %v1007_v23 = vpop.permute.xlu2 %1006  ;;  %v1321_v8 = vpop.permute.xlu1 %1320 }
 0x1fc   : > { %v1750_v63 = vsel %vm1725_vm9, %v1717_v19, %v1321_v8  ;;  %v5358_v59 = vsel %vm452_vm0, %v497_v48, %v498_v7  ;;  %v5361_v24 = vsel %vm452_vm0, 0.0, %v497_v48 }
 0x1fd   : > { %v1783_v51 = vsel %vm1758_vm10, %v1750_v63, %v1417_v49  ;;  %v1679_v49 = vsel %vm1659_vm7, %v1646_v55, %v1119_v38  ;;  %v695_v56 = vrot.slane %v5358_v59, 1  ;;  %v775_v46 = vrot.slane %v5361_v24, 2 }
 0x1fe   : > { %v1816_v52 = vsel %vm1791_vm11, %v1783_v51, %v1513_v43  ;;  %v1712_v60 = vsel %vm1692_vm8, %v1679_v49, %v1215_v1  ;;  %v694_v43 = vrot.slane %v5361_v24, 1  ;;  %v776_v19 = vrot.slane %v5358_v59, 2 }
 0x1ff   : > { %3816 = vmatmul.msk.f32.vlgmr.msra.gmra.mxu3 %vm6649_vm12, %v1816_v52  ;;  %1218 = vrot.lane.b32.xlu0 %v5177_v0, %s6681_s16  ;;  %v1745_v9 = vsel %vm1725_vm9, %v1712_v60, %v1311_v14  ;;  %v6716_v52 = vld [vmem:[#allocation17_spill] sm:$0xff] }
 0x200   : > { %v5381_v1 = vsel %vm618_vm2, %v694_v43, %v695_v56  ;;  %v5394_v51 = vsel %vm6648_vm3, %v775_v46, %v776_v19 }
 0x201   : > { %1392 = vrot.lane.b32.xlu2 %v6712_v42, %s6685_s30  ;;  %1228 = vrot.lane.b32.xlu1 %v5172_v39, %s6681_s16  ;;  %v815_v3 = vpop.permute.xlu0 %814 }
 0x203   : > { %v1103_v11 = vpop.permute.xlu2 %1102  ;;  %v1407_v26 = vpop.permute.xlu1 %1406 }
 0x204   : > { %v1778_v10 = vsel %vm1758_vm10, %v1745_v9, %v1407_v26 }
 0x207   : > { %1314 = vrot.lane.b32.xlu0 %v6714_v58, %s6682_s25 }
 0x209   : > { %1488 = vrot.lane.b32.xlu2 %v6715_v30, %s4083_s12  ;;  %1324 = vrot.lane.b32.xlu1 %v5361_v24, %s6682_s25  ;;  %v911_v5 = vpop.permute.xlu0 %910 }
 0x20b   : > { %v1199_v44 = vpop.permute.xlu2 %1198  ;;  %v1503_v50 = vpop.permute.xlu1 %1502 }
 0x20c   : > { %v1811_v38 = vsel %vm1791_vm11, %v1778_v10, %v1503_v50 }
 0x20d   : > { %3811 = vmatmul.msk.f32.gmra.mxu2 %vm6649_vm12, %v1811_v38 }
 0x20f   : > { %818 = vrot.lane.b32.xlu0 %v4923_v29, %s4076_s15  ;;  %v1572_v29 = vsel %vm1560_vm4, %v6716_v52, %v815_v3 }
 0x210   : > { %v1605_v53 = vsel %vm1593_vm5, %v1572_v29, %v911_v5  ;;  %v6718_v29 = vld [vmem:[#allocation19_spill] sm:$0xff] }
 0x211   : > { %1420 = vrot.lane.b32.xlu2 %v5381_v1, %s6685_s30  ;;  %1410 = vrot.lane.b32.xlu1 %v5112_v16, %s6685_s30  ;;  %v833_v14 = vpop.permute.xlu0 %832  ;;  %v1638_v48 = vsel %vm1626_vm6, %v1605_v53, %v1007_v23 }
 0x212   : > { %v1671_v41 = vsel %vm1659_vm7, %v1638_v48, %v1103_v11  ;;  %v1581_v53 = vsel %vm1560_vm4, %v6718_v29, %v833_v14 }
 0x213   : > { %v1295_v8 = vpop.permute.xlu2 %1294  ;;  %v843_v63 = vpop.permute.xlu1 %842  ;;  %v1704_v3 = vsel %vm1692_vm8, %v1671_v41, %v1199_v44 }
 0x217   : > { %914 = vrot.lane.b32.xlu0 %v4956_v36, %s4079_s24  ;;  %v1737_v36 = vsel %vm1725_vm9, %v1704_v3, %v1295_v8  ;;  %v6720_v3 = vld [vmem:[#allocation18_spill] sm:$0xff] }
 0x219   : > { %1516 = vrot.lane.b32.xlu2 %v5394_v51, %s4083_s12  ;;  %1506 = vrot.lane.b32.xlu1 %v5139_v47, %s4083_s12  ;;  %v929_v42 = vpop.permute.xlu0 %928 }
 0x21a   : > { %v1614_v48 = vsel %vm1593_vm5, %v1581_v53, %v929_v42 }
 0x21b   : > { %v1391_v26 = vpop.permute.xlu2 %1390  ;;  %v939_v18 = vpop.permute.xlu1 %938 }
 0x21c   : > { %v1770_v23 = vsel %vm1758_vm10, %v1737_v36, %v1391_v26 }
 0x21f   : > { %836 = vrot.lane.b32.xlu0 %v4976_v34, %s4076_s15 }
 0x221   : > { %1010 = vrot.lane.b32.xlu2 %v4410_v37, %s4078_s22  ;;  %846 = vrot.lane.b32.xlu1 %v5197_v57, %s4076_s15  ;;  %v1025_v27 = vpop.permute.xlu0 %1024 }
 0x222   : > { %v1647_v26 = vsel %vm1626_vm6, %v1614_v48, %v1025_v27 }
 0x223   : > { %v1487_v55 = vpop.permute.xlu2 %1486  ;;  %v1035_v49 = vpop.permute.xlu1 %1034 }
 0x224   : > { %v1803_v11 = vsel %vm1791_vm11, %v1770_v23, %v1487_v55 }
 0x225   : > { %3803 = vmatmul.msk.f32.gmra.mxu0 %vm6649_vm12, %v1803_v11 }
 0x227   : > { %932 = vrot.lane.b32.xlu0 %v4981_v21, %s4079_s24 }
 0x229   : > { %1106 = vrot.lane.b32.xlu2 %v4564_v40, %s4081_s29  ;;  %942 = vrot.lane.b32.xlu1 %v5216_v12, %s4079_s24  ;;  %v1121_v37 = vpop.permute.xlu0 %1120  ;;  %v1586_v40 = vsel %vm1560_vm4, %v6714_v58, %v843_v63 }
 0x22a   : > { %v1619_v43 = vsel %vm1593_vm5, %v1586_v40, %v939_v18  ;;  %v6719_v18 = vld [vmem:[#allocation23_spill] sm:$0xff]  ;;  %v1680_v41 = vsel %vm1659_vm7, %v1647_v26, %v1121_v37 }
 0x22b   : > { %v1419_v34 = vpop.permute.xlu2 %1418  ;;  %v1131_v30 = vpop.permute.xlu1 %1130 }
 0x22f   : > { %1028 = vrot.lane.b32.xlu0 %v4991_v35, %s4078_s22  ;;  %v1652_v35 = vsel %vm1626_vm6, %v1619_v43, %v1035_v49 }
 0x230   : > { %v1685_v9 = vsel %vm1659_vm7, %v1652_v35, %v1131_v30 }
 0x231   : > { %1202 = vrot.lane.b32.xlu2 %v4586_v62, %s6681_s16  ;;  %1038 = vrot.lane.b32.xlu1 %v5120_v20, %s4078_s22  ;;  %v1217_v60 = vpop.permute.xlu0 %1216 }
 0x232   : > { %v1713_v36 = vsel %vm1692_vm8, %v1680_v41, %v1217_v60 }
 0x233   : > { %v1515_v21 = vpop.permute.xlu2 %1514  ;;  %v1227_v5 = vpop.permute.xlu1 %1226 }
 0x234   : > { %v1718_v10 = vsel %vm1692_vm8, %v1685_v9, %v1227_v5  ;;  %v5500_v5 = vpop.f32.mrf.mxu0 }
 0x237   : > { %1124 = vrot.lane.b32.xlu0 %v5004_v61, %s4081_s29 }
 0x239   : > { %1298 = vrot.lane.b32.xlu2 %v4465_v54, %s6682_s25  ;;  %1134 = vrot.lane.b32.xlu1 %v5240_v32, %s4081_s29  ;;  %v1313_v62 = vpop.permute.xlu0 %1312  ;;  %v6717_v54 = vld [vmem:[#allocation16_spill] sm:$0xff] }
 0x23a   : > { %v1746_v42 = vsel %vm1725_vm9, %v1713_v36, %v1313_v62 }
 0x23b   : > { %v1009_v44 = vpop.permute.xlu2 %1008  ;;  %v1323_v50 = vpop.permute.xlu1 %1322 }
 0x23c   : > { %v1751_v38 = vsel %vm1725_vm9, %v1718_v10, %v1323_v50  ;;  %v5512_v9 = vpop.f32.mrf.mxu0 }
 0x23d   : > { %v1784_v61 = vsel %vm1758_vm10, %v1751_v38, %v1419_v34 }
 0x23e   : > { %v1817_v46 = vsel %vm1791_vm11, %v1784_v61, %v1515_v21 }
 0x23f   : > { %3817 = vmatmul.msk.f32.gmra.mxu3 %vm6649_vm12, %v1817_v46  ;;  %1220 = vrot.lane.b32.xlu0 %v5025_v45, %s6681_s16  ;;  %v584_v45 = vsel %vm452_vm0, %v498_v7, 0.0 }
 0x240   : > { %v697_v23 = vrot.slane %v584_v45, 1  ;;  %v778_v11 = vrot.slane %v584_v45, 2 }
 0x241   : > { %1394 = vrot.lane.b32.xlu2 %v6717_v54, %s6685_s30  ;;  %1230 = vrot.lane.b32.xlu1 %v5251_v33, %s6681_s16  ;;  %v817_v8 = vpop.permute.xlu0 %816 }
 0x242   : > { %v5474_v49 = vsel %vm618_vm2, %v695_v56, %v697_v23  ;;  %v5487_v60 = vsel %vm6648_vm3, %v776_v19, %v778_v11  ;;  %v6721_v56 = vld [vmem:[#allocation21_spill] sm:$0xff] }
 0x243   : > { %v1105_v63 = vpop.permute.xlu2 %1104  ;;  %v1409_v52 = vpop.permute.xlu1 %1408  ;;  %v1573_v21 = vsel %vm1560_vm4, %v6721_v56, %v817_v8 }
 0x244   : > { %v1779_v55 = vsel %vm1758_vm10, %v1746_v42, %v1409_v52  ;;  %v1950_v61 = vpop.f32.mrf.mxu0 }
 0x247   : > { %1316 = vrot.lane.b32.xlu0 %v6719_v18, %s6682_s25 }
 0x249   : > { %1490 = vrot.lane.b32.xlu2 %v6720_v3, %s4083_s12  ;;  %1326 = vrot.lane.b32.xlu1 %v5358_v59, %s6682_s25  ;;  %v913_v14 = vpop.permute.xlu0 %912 }
 0x24b   : > { %v1201_v27 = vpop.permute.xlu2 %1200  ;;  %v1505_v17 = vpop.permute.xlu1 %1504 }
 0x24c   : > { %v1812_v7 = vsel %vm1791_vm11, %v1779_v55, %v1505_v17  ;;  %v5539_v26 = vpop.f32.mrf.mxu0 }
 0x24d   : > { %3812 = vmatmul.msk.f32.gmra.mxu2 %vm6649_vm12, %v1812_v7 }
 0x24f   : > { %1412 = vrot.lane.b32.xlu0 %v5073_v15, %s6685_s30  ;;  %v1606_v15 = vsel %vm1593_vm5, %v1573_v21, %v913_v14 }
 0x250   : > { %v1639_v19 = vsel %vm1626_vm6, %v1606_v15, %v1009_v44 }
 0x251   : > { %1508 = vrot.lane.b32.xlu2 %v5094_v4, %s4083_s12  ;;  %1422 = vrot.lane.b32.xlu1 %v5474_v49, %s6685_s30  ;;  %v5482_v37 = vpop.permute.xlu0 %834  ;;  %v1672_v35 = vsel %vm1659_vm7, %v1639_v19, %v1105_v63 }
 0x253   : > { %v1297_v34 = vpop.permute.xlu2 %1296  ;;  %v845_v30 = vpop.permute.xlu1 %844 }
 0x257   : > { %1518 = vrot.lane.b32.xlu0 %v5487_v60, %s4083_s12 }
 0x259   : > { %848 = vrot.lane.b32.xlu2 %v6711_v22, %s4076_s15  ;;  %838 = vrot.lane.b32.xlu1 %v5153_v13, %s4076_s15  ;;  %v5498_v4 = vpop.permute.xlu0 %930  ;;  %v1705_v22 = vsel %vm1692_vm8, %v1672_v35, %v1201_v27  ;;  %v1956_v27 = vpop.f32.mrf.mxu0 }
 0x25a   : > { %v1738_v13 = vsel %vm1725_vm9, %v1705_v22, %v1297_v34 }
 0x25b   : > { %v1393_v40 = vpop.permute.xlu2 %1392  ;;  %v941_v43 = vpop.permute.xlu1 %940 }
 0x25c   : > { %v1771_v44 = vsel %vm1758_vm10, %v1738_v13, %v1393_v40  ;;  %v5589_v13 = vld [vmem:[%s6585_s2] ss:$0 sm:$0xff] }
 0x25f   : > { %934 = vrot.lane.b32.xlu0 %v5177_v0, %s4079_s24  ;;  %v414_v0 = vld [vmem:[%s4225_s14 + $0xf0] sm:$0xff] }
 0x260   : > { %v500_v54 = vrot.slane %v414_v0, 7 }
 0x261   : > { %1030 = vrot.lane.b32.xlu2 %v6714_v58, %s4078_s22  ;;  %944 = vrot.lane.b32.xlu1 %v5172_v39, %s4079_s24  ;;  %v1027_v62 = vpop.permute.xlu0 %1026  ;;  %v415_v58 = vld [vmem:[%s4225_s14 + $0xf8] sm:$0xff]  ;;  %v5573_v15 = vpop.f32.mrf.mxu0  ;;  %s6756_s14 = smov 16  }
 0x262   : > { %v501_v8 = vrot.slane %v415_v58, 7  ;;  %v5529_v29 = vsel %vm452_vm0, 0.0, %v500_v54 }
 0x263   : > { %v1489_v10 = vpop.permute.xlu2 %1488  ;;  %v1037_v50 = vpop.permute.xlu1 %1036  ;;  %v782_v53 = vrot.slane %v5529_v29, 1  ;;  %v787_v55 = vrot.slane %v5529_v29, 2 }
 0x264   : > { %v1804_v38 = vsel %vm1791_vm11, %v1771_v44, %v1489_v10  ;;  %v5526_v52 = vsel %vm452_vm0, %v500_v54, %v501_v8  ;;  %v1951_v10 = vadd.f32 %v5589_v13, %v1950_v61 }
 0x265   : > { %3804 = vmatmul.msk.f32.gmra.mxu0 %vm6649_vm12, %v1804_v38  ;;  %v783_v48 = vrot.slane %v5526_v52, 1  ;;  %v788_v17 = vrot.slane %v5526_v52, 2 }
 0x267   : > { %1040 = vrot.lane.b32.xlu0 %v5361_v24, %s4078_s22  ;;  %v5542_v3 = vsel %vm618_vm2, %v782_v53, %v783_v48 }
 0x269   : > { %1136 = vrot.lane.b32.xlu2 %v5381_v1, %s4081_s29  ;;  %1126 = vrot.lane.b32.xlu1 %v5112_v16, %s4081_s29  ;;  %v1123_v39 = vpop.permute.xlu0 %1122 }
 0x26b   : > { %v1421_v46 = vpop.permute.xlu2 %1420  ;;  %v1133_v63 = vpop.permute.xlu1 %1132 }
 0x26f   : > { %1222 = vrot.lane.b32.xlu0 %v5139_v47, %s6681_s16  ;;  %v1587_v47 = vsel %vm1560_vm4, %v6719_v18, %v845_v30 }
 0x270   : > { %v1620_v36 = vsel %vm1593_vm5, %v1587_v47, %v941_v43  ;;  %v6722_v43 = vld [vmem:[#allocation20_spill] sm:$0xff] }
 0x271   : > { %1318 = vrot.lane.b32.xlu2 %v5056_v2, %s6682_s25  ;;  %1232 = vrot.lane.b32.xlu1 %v5394_v51, %s6681_s16  ;;  %v1219_v16 = vpop.permute.xlu0 %1218  ;;  %v1653_v14 = vsel %vm1626_vm6, %v1620_v36, %v1037_v50  ;;  %v1582_v35 = vsel %vm1560_vm4, %v6722_v43, %v5482_v37  ;;  %v1954_v36 = vadd.f32 %v5589_v13, %v5539_v26 }
 0x272   : > { %v1686_v23 = vsel %vm1659_vm7, %v1653_v14, %v1133_v63  ;;  %v1615_v22 = vsel %vm1593_vm5, %v1582_v35, %v5498_v4  ;;  %v1957_v14 = vadd.f32 %v5589_v13, %v1956_v27 }
 0x273   : > { %v1517_v45 = vpop.permute.xlu2 %1516  ;;  %v1229_v41 = vpop.permute.xlu1 %1228  ;;  %v2043_v27 = vmax.f32 %v1954_v36, 0.0 }
 0x274   : > { %v1719_v7 = vsel %vm1692_vm8, %v1686_v23, %v1229_v41 }
 0x277   : > { %1328 = vrot.lane.b32.xlu0 %v5529_v29, %s6682_s25 }
 0x279   : > { %1424 = vrot.lane.b32.xlu2 %v5542_v3, %s6685_s30  ;;  %1414 = vrot.lane.b32.xlu1 %v5197_v57, %s6685_s30  ;;  %v1315_v42 = vpop.permute.xlu0 %1314  ;;  %v5564_v57 = vsel %vm6648_vm3, %v787_v55, %v788_v17  ;;  %v1948_v55 = vadd.f32 %v5589_v13, %v5512_v9 }
 0x27b   : > { %v5556_v18 = vpop.permute.xlu2 %1010  ;;  %v1325_v11 = vpop.permute.xlu1 %1324 }
 0x27c   : > { %v1752_v34 = vsel %vm1725_vm9, %v1719_v7, %v1325_v11 }
 0x27d   : > { %v1785_v30 = vsel %vm1758_vm10, %v1752_v34, %v1421_v46 }
 0x27e   : > { %v1818_v56 = vsel %vm1791_vm11, %v1785_v30, %v1517_v45 }
 0x27f   : > { %3818 = vmatmul.msk.f32.gmra.mxu3 %vm6649_vm12, %v1818_v56  ;;  %1510 = vrot.lane.b32.xlu0 %v5216_v12, %s4083_s12  ;;  %v585_v12 = vsel %vm452_vm0, %v501_v8, 0.0  ;;  %v2042_v8 = vmax.f32 %v1951_v10, 0.0 }
 0x280   : > { %v790_v63 = vrot.slane %v585_v12, 2 }
 0x281   : > { %850 = vrot.lane.b32.xlu2 %v5240_v32, %s4076_s15  ;;  %1520 = vrot.lane.b32.xlu1 %v5564_v57, %s4083_s12  ;;  %v819_v21 = vpop.permute.xlu0 %818  ;;  %v1648_v32 = vsel %vm1626_vm6, %v1615_v22, %v1027_v62  ;;  %v785_v62 = vrot.slane %v585_v12, 1 }
 0x282   : > { %v1681_v44 = vsel %vm1659_vm7, %v1648_v32, %v1123_v39  ;;  %v1945_v39 = vadd.f32 %v5589_v13, %v5500_v5  ;;  %v5621_v47 = vsel %vm6648_vm3, %v788_v17, %v790_v63  ;;  %v1574_v23 = vsel %vm1560_vm4, %v4817_v28, %v819_v21 }
 0x283   : > { %v5575_v19 = vpop.permute.xlu2 %1106  ;;  %v1411_v40 = vpop.permute.xlu1 %1410  ;;  %v1714_v37 = vsel %vm1692_vm8, %v1681_v44, %v1219_v16  ;;  %v5605_v54 = vsel %vm618_vm2, %v783_v48, %v785_v62  ;;  %v2044_v17 = vmax.f32 %v1957_v14, 0.0  ;;  %v2041_v21 = vmax.f32 %v1948_v55, 0.0 }
 0x284   : > { %v1747_v50 = vsel %vm1725_vm9, %v1714_v37, %v1315_v42  ;;  %v2040_v61 = vmax.f32 %v1945_v39, 0.0  ;;  %vm2602_vm3 = vcmask 1045509  }
 0x285   : > { %v1780_v0 = vsel %vm1758_vm10, %v1747_v50, %v1411_v40 }
 0x286   : > { %v5615_v16 = vmax.f32 %v2040_v61, %v2042_v8 }
 0x287   : > { %946 = vrot.lane.b32.xlu0 %v5251_v33, %s4079_s24  ;;  %v1962_v33 = vpop.f32.mrf.mxu0 }
 0x288   : > { %v1963_v48 = vadd.f32 %v5589_v13, %v1962_v33  ;;  %v2104_v42 = vrot.slane %v5615_v16, 2  ;;  %v2105_v26 = vrot.slane %v5615_v16, 4  ;;  %v2106_v43 = vrot.slane %v5615_v16, 6 }
 0x289   : > { %1138 = vrot.lane.b32.xlu2 %v5474_v49, %s4081_s29  ;;  %1042 = vrot.lane.b32.xlu1 %v5358_v59, %s4078_s22  ;;  %v915_v4 = vpop.permute.xlu0 %914  ;;  %v3824_v35 = vrot.slane %v5615_v16, 9 }
 0x28a   : > { %v2046_v7 = vmax.f32 %v1963_v48, 0.0  ;;  %v1607_v11 = vsel %vm1593_vm5, %v1574_v23, %v915_v4  ;;  %v3825_v34 = vrot.slane %v2104_v42, 9  ;;  %v3826_v22 = vrot.slane %v2105_v26, 9 }
 0x28b   : > { %v1203_v38 = vpop.permute.xlu2 %1202  ;;  %v1507_v58 = vpop.permute.xlu1 %1506  ;;  %v1640_v30 = vsel %vm1626_vm6, %v1607_v11, %v5556_v18  ;;  %v1960_v18 = vadd.f32 %v5589_v13, %v5573_v15  ;;  %v3827_v4 = vrot.slane %v2106_v43, 9  ;;  %v2392_v62 = vmax.f32 %v5615_v16, %v3824_v35  ;;  %v6725_v35 = vld [vmem:[#allocation9_spill] sm:$0xff] }
 0x28c   : > { %v1813_v46 = vsel %vm1791_vm11, %v1780_v0, %v1507_v58  ;;  %v5645_v40 = vmax.f32 %v2044_v17, %v2046_v7  ;;  %v1673_v32 = vsel %vm1659_vm7, %v1640_v30, %v5575_v19  ;;  %v2393_v44 = vmax.f32 %v2104_v42, %v3825_v34  ;;  %v6724_v30 = vld [vmem:[#allocation11_spill] sm:$0xff] }
 0x28d   : > { %3813 = vmatmul.msk.f32.gmra.mxu2 %vm6649_vm12, %v1813_v46  ;;  %v1706_v10 = vsel %vm1692_vm8, %v1673_v32, %v1203_v38  ;;  %v2394_v33 = vmax.f32 %v2105_v26, %v3826_v22  ;;  %v2045_v8 = vmax.f32 %v1960_v18, 0.0  ;;  %v2395_v42 = vmax.f32 %v2106_v43, %v3827_v4 }
 0x28e   : > { %v2110_v37 = vrot.slane %v5645_v40, 2  ;;  %v2111_v39 = vrot.slane %v5645_v40, 4  ;;  %v3832_v36 = vrot.slane %v5645_v40, 9  ;;  %v2112_v11 = vrot.slane %v5645_v40, 6 }
 0x28f   : > { %1234 = vrot.lane.b32.xlu0 %v5487_v60, %s6681_s16  ;;  %v1965_v53 = vpop.f32.mrf.mxu0  ;;  %v2533_v32 = vperm.slane %v2395_v42, 0 }
 0x290   : > { %v1966_v12 = vadd.f32 %v5589_v13, %v1965_v53  ;;  %v3833_v61 = vrot.slane %v2110_v37, 9  ;;  %v3834_v7 = vrot.slane %v2111_v39, 9 }
 0x291   : > { %1426 = vrot.lane.b32.xlu2 %v5605_v54, %s6685_s30  ;;  %1330 = vrot.lane.b32.xlu1 %v5526_v52, %s6682_s25  ;;  %v5613_v5 = vpop.permute.xlu0 %836 }
 0x292   : > { %v2047_v50 = vmax.f32 %v1966_v12, 0.0  ;;  %v2401_v26 = vmax.f32 %v2110_v37, %v3833_v61 }
 0x293   : > { %v1299_v45 = vpop.permute.xlu2 %1298  ;;  %v5618_v41 = vpop.permute.xlu1 %846 }
 0x294   : > { %v1739_v0 = vsel %vm1725_vm9, %v1706_v10, %v1299_v45  ;;  %v2532_v45 = vperm.slane %v2394_v33, 0  ;;  %v5682_v14 = vmax.f32 %v2045_v8, %v2047_v50  ;;  %v2539_v10 = vperm.slane %v2401_v26, 0 }
 0x296   : > { %v2113_v43 = vrot.slane %v5682_v14, 2  ;;  %v3836_v18 = vrot.slane %v5682_v14, 9  ;;  %v2114_v50 = vrot.slane %v5682_v14, 4 }
 0x297   : > { %1522 = vrot.lane.b32.xlu0 %v5621_v47, %s4083_s12  ;;  %v5641_v9 = vpop.f32.mrf.mxu0 }
 0x298   : > { %v2404_v8 = vmax.f32 %v5682_v14, %v3836_v18  ;;  %v6726_v18 = vld [vmem:[#allocation5_spill] sm:$0xff] }
 0x299   : > { %948 = vrot.lane.b32.xlu2 %v5394_v51, %s4079_s24  ;;  %852 = vrot.lane.b32.xlu1 %v5381_v1, %s4076_s15  ;;  %v5639_v28 = vpop.permute.xlu0 %932  ;;  %v5651_v1 = vmax.f32 %v2041_v21, %v2043_v27  ;;  %v6723_v27 = vld [vmem:[#allocation6_spill] sm:$0xff]  ;;  %v2400_v21 = vmax.f32 %v5645_v40, %v3832_v36 }
 0x29b   : > { %v1395_v56 = vpop.permute.xlu2 %1394  ;;  %v5647_v51 = vpop.permute.xlu1 %942  ;;  %v2107_v19 = vrot.slane %v5651_v1, 2  ;;  %v3828_v58 = vrot.slane %v5651_v1, 9  ;;  %v2108_v53 = vrot.slane %v5651_v1, 4  ;;  %v2109_v17 = vrot.slane %v5651_v1, 6 }
 0x29d   : > { %v3829_v48 = vrot.slane %v2107_v19, 9  ;;  %v2396_v55 = vmax.f32 %v5651_v1, %v3828_v58  ;;  %v3830_v34 = vrot.slane %v2108_v53, 9  ;;  %v2402_v1 = vmax.f32 %v2111_v39, %v3834_v7 }
 0x29e   : > { %v3831_v33 = vrot.slane %v2109_v17, 9  ;;  %v2538_v58 = vperm.slane %v2400_v21, 0 }
 0x29f   : > { %1044 = vrot.lane.b32.xlu0 %v5529_v29, %s4078_s22  ;;  %v2531_v29 = vperm.slane %v2393_v44, 0  ;;  %v5673_v38 = vpop.f32.mrf.mxu0  ;;  %v2534_v44 = vperm.slane %v2396_v55, 0 }
 0x2a0   : > { %v2399_v7 = vmax.f32 %v2109_v17, %v3831_v33 }
 0x2a1   : > { %1236 = vrot.lane.b32.xlu2 %v5564_v57, %s6681_s16  ;;  %1140 = vrot.lane.b32.xlu1 %v5542_v3, %s4081_s29  ;;  %v5669_v15 = vpop.permute.xlu0 %1028  ;;  %v1772_v57 = vsel %vm1758_vm10, %v1739_v0, %v1395_v56  ;;  %v2530_v3 = vperm.slane %v2392_v62, 0  ;;  %v2397_v56 = vmax.f32 %v2107_v19, %v3829_v48  ;;  %v3835_v62 = vrot.slane %v2112_v11, 9 }
 0x2a2   : > { %v2398_v19 = vmax.f32 %v2108_v53, %v3830_v34  ;;  %v1969_v53 = vadd.f32 %v5589_v13, %v5641_v9  ;;  %v3838_v48 = vrot.slane %v2114_v50, 9  ;;  %v2537_v17 = vperm.slane %v2399_v7, 0 }
 0x2a3   : > { %v1491_v46 = vpop.permute.xlu2 %1490  ;;  %v5676_v63 = vpop.permute.xlu1 %1038  ;;  %v2595_v23 = vsel %vm6650_vm13, %v2531_v29, %v2530_v3  ;;  %v2535_v29 = vperm.slane %v2397_v56, 0  ;;  %v2608_v3 = vsel %vm6650_vm13, %v2539_v10, %v2538_v58  ;;  %vm6651_vm13 = vcmask 1047559  }
 0x2a4   : > { %v1805_v16 = vsel %vm1791_vm11, %v1772_v57, %v1491_v46  ;;  %v2597_v12 = vsel %vm2596_vm14, %v2532_v45, %v2595_v23  ;;  %v3837_v57 = vrot.slane %v2113_v43, 9  ;;  %v2540_v46 = vperm.slane %v2402_v1, 0 }
 0x2a5   : > { %3805 = vmatmul.msk.f32.gmra.mxu0 %vm6649_vm12, %v1805_v16  ;;  %v2599_v0 = vsel %vm2598_vm15, %v2533_v32, %v2597_v12  ;;  %v2403_v16 = vmax.f32 %v2112_v11, %v3835_v62  ;;  %v2115_v45 = vrot.slane %v5682_v14, 6  ;;  %v2536_v36 = vperm.slane %v2398_v19, 0 }
 0x2a6   : > { %v2601_v61 = vsel %vm6653_vm1, %v2534_v44, %v2599_v0  ;;  %vm6652_vm12 = vcmask 1046534   ;;  %v2405_v42 = vmax.f32 %v2113_v43, %v3837_v57  ;;  %v2542_v11 = vperm.slane %v2404_v8, 0 }
 0x2a7   : > { %1332 = vrot.lane.b32.xlu0 %v6723_v27, %s6682_s25  ;;  %v1974_v37 = vpop.f32.mrf.mxu0  ;;  %v2603_v9 = vsel %vm2602_vm3, %v2535_v29, %v2601_v61  ;;  %v2541_v14 = vperm.slane %v2403_v16, 0  ;;  %v2048_v34 = vmax.f32 %v1969_v53, 0.0  ;;  %v2406_v56 = vmax.f32 %v2114_v50, %v3838_v48  ;;  %v6727_v16 = vld [vmem:[#allocation7_spill] sm:$0xff] }
 0x2a8   : > { %v1975_v39 = vadd.f32 %v5589_v13, %v1974_v37  ;;  %v2605_v43 = vsel %vm6652_vm12, %v2536_v36, %v2603_v9  ;;  %v1972_v10 = vadd.f32 %v5589_v13, %v5673_v38  ;;  %v6729_v53 = vrot.slane %v6723_v27, 1 }
 0x2a9   : > { %1524 = vrot.lane.b32.xlu2 %v6724_v30, %s4083_s12  ;;  %1428 = vrot.lane.b32.xlu1 %v6725_v35, %s6685_s30  ;;  %v5696_v22 = vpop.permute.xlu0 %1124  ;;  %v2607_v1 = vsel %vm6651_vm13, %v2537_v17, %v2605_v43  ;;  %v2544_v62 = vperm.slane %v2406_v56, 0  ;;  %v1588_v17 = vsel %vm1560_vm4, %v5056_v2, %v5618_v41 }
 0x2aa   : > { %v2050_v23 = vmax.f32 %v1975_v39, 0.0  ;;  %v1583_v39 = vsel %vm1560_vm4, %v4946_v6, %v5613_v5  ;;  %v2049_v8 = vmax.f32 %v1972_v10, 0.0 }
 0x2ab   : > { %v5700_v4 = vpop.permute.xlu2 %1508  ;;  %v5702_v40 = vpop.permute.xlu1 %1134 }
 0x2ac   : > { %v5726_v35 = vmax.f32 %v2048_v34, %v2050_v23  ;;  %v6730_v23 = vld [vmem:[#allocation10_spill] sm:$0xff]  ;;  %v6731_v34 = vld [vmem:[#allocation12_spill] sm:$0xff] }
 0x2ae   : > { %v2116_v33 = vrot.slane %v5726_v35, 2  ;;  %v2117_v57 = vrot.slane %v5726_v35, 4  ;;  %v3840_v36 = vrot.slane %v5726_v35, 9 }
 0x2af   : > { %854 = vrot.lane.b32.xlu0 %v5474_v49, %s4076_s15  ;;  %v2609_v49 = vsel %vm2596_vm14, %v2540_v46, %v2608_v3  ;;  %v1977_v21 = vpop.f32.mrf.mxu0  ;;  %v6728_v3 = vrot.slane %v6727_v16, 1  ;;  %s6660_s15 = smov 16  }
 0x2b0   : > { %v2610_v12 = vsel %vm2598_vm15, %v2541_v14, %v2609_v49  ;;  %v1978_v44 = vadd.f32 %v5589_v13, %v1977_v21  ;;  %v3841_v61 = vrot.slane %v2116_v33, 9  ;;  %v3842_v9 = vrot.slane %v2117_v57, 9 }
 0x2b1   : > { %1046 = vrot.lane.b32.xlu2 %v5526_v52, %s4078_s22  ;;  %950 = vrot.lane.b32.xlu1 %v5487_v60, %s4079_s24  ;;  %v1221_v55 = vpop.permute.xlu0 %1220  ;;  %v3839_v52 = vrot.slane %v2115_v45, 9  ;;  %v2543_v60 = vperm.slane %v2405_v42, 0  ;;  %v2611_v32 = vsel %vm6653_vm1, %v2542_v11, %v2610_v12  ;;  %v2118_v11 = vrot.slane %v5726_v35, 6  ;;  %s6656_s22 = smov 32   ;;  %s6658_s24 = smov 24  }
 0x2b2   : > { %v2051_v29 = vmax.f32 %v1978_v44, 0.0  ;;  %v2409_v49 = vmax.f32 %v2116_v33, %v3841_v61 }
 0x2b3   : > { %v5720_v26 = vpop.permute.xlu2 %848  ;;  %v5723_v30 = vpop.permute.xlu1 %1230  ;;  %v2407_v37 = vmax.f32 %v2115_v45, %v3839_v52  ;;  %v2612_v50 = vsel %vm2602_vm3, %v2543_v60, %v2611_v32  ;;  %v5756_v45 = vsel %vm618_vm2, %v6729_v53, %v6728_v3  ;;  %v2408_v60 = vmax.f32 %v5726_v35, %v3840_v36 }
 0x2b4   : > { %v2613_v46 = vsel %vm6652_vm12, %v2544_v62, %v2612_v50  ;;  %v5767_v42 = vmax.f32 %v2049_v8, %v2051_v29  ;;  %v6733_v35 = vrot.slane %v6727_v16, 2  ;;  %v6734_v62 = vrot.slane %v6723_v27, 2 }
 0x2b5   : > { %v2545_v38 = vperm.slane %v2407_v37, 0  ;;  %vm6735_vm12 = vcmask 1045504   ;;  %v3843_v41 = vrot.slane %v2118_v11, 9  ;;  %v2547_v10 = vperm.slane %v2409_v49, 0 }
 0x2b6   : > { %v2119_v12 = vrot.slane %v5767_v42, 2  ;;  %v3844_v37 = vrot.slane %v5767_v42, 9  ;;  %v5802_v2 = vsel %vm6735_vm12, %v6734_v62, %v6733_v35  ;;  %v2120_v33 = vrot.slane %v5767_v42, 4 }
 0x2b7   : > { %1142 = vrot.lane.b32.xlu0 %v5605_v54, %s4081_s29  ;;  %v2657_v54 = vrot.slane %v2607_v1, 7  ;;  %v2614_v7 = vsel %vm6651_vm13, %v2545_v38, %v2613_v46  ;;  %v2410_v1 = vmax.f32 %v2117_v57, %v3842_v9  ;;  %vm6732_vm13 = vcmask 72704   ;;  %s6654_s29 = smov 40  }
 0x2b8   : > { %v2658_v43 = vrot.slane %v2614_v7, 7  ;;  %v2546_v50 = vperm.slane %v2408_v60, 0  ;;  %v2411_v46 = vmax.f32 %v2118_v11, %v3843_v41  ;;  %vm6736_vm12 = vcmask 1041409  }
 0x2b9   : > { %1334 = vrot.lane.b32.xlu2 %v6726_v18, %s6682_s25  ;;  %1238 = vrot.lane.b32.xlu1 %v5621_v47, %s6681_s16  ;;  %v1317_v19 = vpop.permute.xlu0 %1316  ;;  %v1616_v47 = vsel %vm1593_vm5, %v1583_v39, %v5639_v28  ;;  %v5761_v6 = vsel %vm452_vm0, 0.0, %v2657_v54  ;;  %v5764_v5 = vsel %vm452_vm0, %v2657_v54, 0.0  ;;  %v1621_v18 = vsel %vm1593_vm5, %v1588_v17, %v5647_v51  ;;  %s4088_s16 = smov 56   ;;  %s4089_s25 = smov 48  }
 0x2ba   : > { %v1649_v48 = vsel %vm1626_vm6, %v1616_v47, %v5669_v15  ;;  %v2704_v21 = vrot.slane %v5761_v6, 1  ;;  %v3845_v54 = vrot.slane %v2119_v12, 9  ;;  %v5815_v57 = vsel %vm452_vm0, 0.0, %v2658_v43 }
 0x2bb   : > { %v5742_v0 = vpop.permute.xlu2 %1030  ;;  %v1327_v58 = vpop.permute.xlu1 %1326  ;;  %v1682_v28 = vsel %vm1659_vm7, %v1649_v48, %v5696_v22  ;;  %v2412_v39 = vmax.f32 %v5767_v42, %v3844_v37  ;;  %v2727_v3 = vrot.slane %v5764_v5, 2  ;;  %v3846_v53 = vrot.slane %v2120_v33, 9 }
 0x2bc   : > { %v1715_v15 = vsel %vm1692_vm8, %v1682_v28, %v1221_v55  ;;  %v2705_v55 = vrot.slane %v5764_v5, 1  ;;  %v2707_v36 = vrot.slane %v5815_v57, 1  ;;  %v2413_v7 = vmax.f32 %v2119_v12, %v3845_v54 }
 0x2bd   : > { %v1748_v14 = vsel %vm1725_vm9, %v1715_v15, %v1317_v19  ;;  %v2550_v9 = vperm.slane %v2412_v39, 0  ;;  %v2549_v11 = vperm.slane %v2411_v46, 0 }
 0x2be   : > { %v2706_v19 = vsel %vm618_vm2, %v2704_v21, %v2705_v55 }
 0x2bf   : > { %1430 = vrot.lane.b32.xlu0 %v6730_v23, %s6685_s30  ;;  %v2121_v23 = vrot.slane %v5767_v42, 6  ;;  %s4090_s30 = smov 64  }
 0x2c1   : > { %2755 = vrot.lane.b32.xlu2 %v5756_v45, %s4083_s12  ;;  %1526 = vrot.lane.b32.xlu1 %v6731_v34, %s4083_s12  ;;  %v1413_v22 = vpop.permute.xlu0 %1412  ;;  %v3847_v34 = vrot.slane %v2121_v23, 9 }
 0x2c2   : > { %v1781_v52 = vsel %vm1758_vm10, %v1748_v14, %v1413_v22  ;;  %v2414_v14 = vmax.f32 %v2120_v33, %v3846_v53  ;;  %v2551_v22 = vperm.slane %v2413_v7, 0 }
 0x2c3   : > { %v5782_v56 = vpop.permute.xlu2 %1136  ;;  %v1423_v32 = vpop.permute.xlu1 %1422  ;;  %v1814_v44 = vsel %vm1791_vm11, %v1781_v52, %v5700_v4  ;;  %v1654_v4 = vsel %vm1626_vm6, %v1621_v18, %v5676_v63  ;;  %v2548_v63 = vperm.slane %v2410_v1, 0 }
 0x2c4   : > { %3814 = vmatmul.msk.f32.gmra.mxu2 %vm6732_vm13, %v1814_v44  ;;  %v1687_v51 = vsel %vm1659_vm7, %v1654_v4, %v5702_v40  ;;  %v2682_v40 = vsel %vm452_vm0, %v2658_v43, 0.0  ;;  %v2729_v43 = vrot.slane %v5815_v57, 2  ;;  %v2552_v17 = vperm.slane %v2414_v14, 0 }
 0x2c5   : > { %v1720_v29 = vsel %vm1692_vm8, %v1687_v51, %v5723_v30  ;;  %v2615_v30 = vsel %vm6736_vm12, %v2547_v10, %v2546_v50  ;;  %v2708_v28 = vrot.slane %v2682_v40, 1  ;;  %vm6737_vm12 = vcmask 1045504  }
 0x2c6   : > { %v1753_v38 = vsel %vm1725_vm9, %v1720_v29, %v1327_v58  ;;  %v2726_v58 = vrot.slane %v5761_v6, 2  ;;  %v2616_v15 = vsel %vm2596_vm14, %v2548_v63, %v2615_v30  ;;  %v2730_v60 = vrot.slane %v2682_v40, 2 }
 0x2c7   : > { %2779 = vrot.lane.b32.xlu0 %v5802_v2, %s6660_s15  ;;  %v1786_v8 = vsel %vm1758_vm10, %v1753_v38, %v1423_v32  ;;  %v2709_v5 = vsel %vm618_vm2, %v2707_v36, %v2708_v28  ;;  %v2617_v52 = vsel %vm2598_vm15, %v2549_v11, %v2616_v15  ;;  %v2415_v32 = vmax.f32 %v2121_v23, %v3847_v34 }
 0x2c8   : > { %v2728_v49 = vsel %vm6737_vm12, %v2726_v58, %v2727_v3  ;;  %v2618_v42 = vsel %vm6653_vm1, %v2550_v9, %v2617_v52  ;;  %vm6740_vm1 = vcmask 1047559   ;;  %v1589_v40 = vsel %vm1560_vm4, %v5123_v25, %v5720_v26  ;;  %v1986_v3 = vpop.f32.mrf.mxu2 }
 0x2c9   : > { %2827 = vrot.lane.b32.xlu2 %v2706_v19, %s6656_s22  ;;  %2803 = vrot.lane.b32.xlu1 %v5761_v6, %s6658_s24  ;;  %v1519_v61 = vpop.permute.xlu0 %1518  ;;  %v2619_v44 = vsel %vm2602_vm3, %v2551_v22, %v2618_v42  ;;  %v2553_v37 = vperm.slane %v2415_v32, 0 }
 0x2ca   : > { %v1819_v16 = vsel %vm1791_vm11, %v1786_v8, %v1519_v61 }
 0x2cb   : > { %v5825_v47 = vpop.permute.xlu2 %1318  ;;  %v839_v48 = vpop.permute.xlu1 %838  ;;  %3819 = vmatmul.msk.f32.gmra.mxu3 %vm6732_vm13, %v1819_v16  ;;  %vm6738_vm13 = vmmov %vm6737_vm12  ;;  %vm6739_vm12 = vcmask 1046534  }
 0x2cc   : > { %v2731_v1 = vsel %vm6738_vm13, %v2729_v43, %v2730_v60  ;;  %v2620_v18 = vsel %vm6739_vm12, %v2552_v17, %v2619_v44  ;;  %v1584_v46 = vsel %vm1560_vm4, %v4951_v31, %v839_v48 }
 0x2cd   : > { %v2621_v62 = vsel %vm6740_vm1, %v2553_v37, %v2620_v18  ;;  %vm6741_vm1 = vmmov %vm6738_vm13  ;;  %vm6742_vm13 = vcmask 72704  }
 0x2ce   : > { %v2659_v4 = vrot.slane %v2621_v62, 7  ;;  %vm6743_vm12 = vmmov %vm6742_vm13 }
 0x2cf   : > { %2851 = vrot.lane.b32.xlu0 %v2728_v49, %s6654_s29 }
 0x2d0   : > { %v5854_v33 = vsel %vm452_vm0, 0.0, %v2659_v4  ;;  %v2683_v51 = vsel %vm452_vm0, %v2659_v4, 0.0  ;;  %v5898_v14 = vpop.f32.mrf.mxu2 }
 0x2d1   : > { %2899 = vrot.lane.b32.xlu2 %v2709_v5, %s4088_s16  ;;  %2875 = vrot.lane.b32.xlu1 %v5815_v57, %s4089_s25  ;;  %v935_v21 = vpop.permute.xlu0 %934  ;;  %v2732_v54 = vrot.slane %v5854_v33, 2  ;;  %v2733_v29 = vrot.slane %v2683_v51, 2  ;;  %v2710_v39 = vrot.slane %v5854_v33, 1  ;;  %v2711_v38 = vrot.slane %v2683_v51, 1 }
 0x2d2   : > { %v1617_v8 = vsel %vm1593_vm5, %v1584_v46, %v935_v21 }
 0x2d3   : > { %v1425_v55 = vpop.permute.xlu2 %1424  ;;  %v945_v12 = vpop.permute.xlu1 %944  ;;  %v5868_v30 = vsel %vm6741_vm1, %v2732_v54, %v2733_v29  ;;  %v5874_v61 = vsel %vm618_vm2, %v2710_v39, %v2711_v38  ;;  %v1650_v16 = vsel %vm1626_vm6, %v1617_v8, %v5742_v0  ;;  %vm6744_vm1 = vmmov %vm6743_vm12 }
 0x2d4   : > { %v1622_v31 = vsel %vm1593_vm5, %v1589_v40, %v945_v12 }
 0x2d7   : > { %2923 = vrot.lane.b32.xlu0 %v2731_v1, %s4090_s30 }
 0x2d8   : > { %v1992_v42 = vpop.f32.mrf.mxu2 }
 0x2d9   : > { %2781 = vrot.lane.b32.xlu2 %v2728_v49, %s6660_s15  ;;  %2757 = vrot.lane.b32.xlu1 %v2706_v19, %s4083_s12  ;;  %v1041_v35 = vpop.permute.xlu0 %1040 }
 0x2da   : > { %v1655_v26 = vsel %vm1626_vm6, %v1622_v31, %v1041_v35 }
 0x2db   : > { %v851_v41 = vpop.permute.xlu2 %850  ;;  %v1127_v10 = vpop.permute.xlu1 %1126  ;;  %v1688_v36 = vsel %vm1659_vm7, %v1655_v26, %v5782_v56 }
 0x2dc   : > { %v1683_v53 = vsel %vm1659_vm7, %v1650_v16, %v1127_v10  ;;  %v1590_v34 = vsel %vm1560_vm4, %v5120_v20, %v851_v41  ;;  %v1987_v10 = vadd.f32 %v5589_v13, %v1986_v3 }
 0x2de   : > { %v2054_v29 = vmax.f32 %v1987_v10, 0.0 }
 0x2df   : > { %2805 = vrot.lane.b32.xlu0 %v5815_v57, %s6658_s24 }
 0x2e0   : > { %v1995_v44 = vpop.f32.mrf.mxu2 }
 0x2e1   : > { %2853 = vrot.lane.b32.xlu2 %v2731_v1, %s6654_s29  ;;  %2829 = vrot.lane.b32.xlu1 %v2709_v5, %s6656_s22  ;;  %v1223_v50 = vpop.permute.xlu0 %1222 }
 0x2e2   : > { %v1716_v48 = vsel %vm1692_vm8, %v1683_v53, %v1223_v50 }
 0x2e3   : > { %v1233_v19 = vpop.permute.xlu1 %1232  ;;  %v1139_v63 = vpop.permute.xlu2 %1138  ;;  %v1749_v9 = vsel %vm1725_vm9, %v1716_v48, %v5825_v47 }
 0x2e4   : > { %v1721_v23 = vsel %vm1692_vm8, %v1688_v36, %v1233_v19 }
 0x2e7   : > { %2877 = vrot.lane.b32.xlu0 %v5854_v33, %s4089_s25 }
 0x2e8   : > { %v1998_v4 = vpop.f32.mrf.mxu2 }
 0x2e9   : > { %2925 = vrot.lane.b32.xlu2 %v5868_v30, %s4090_s30  ;;  %2901 = vrot.lane.b32.xlu1 %v5874_v61, %s4088_s16  ;;  %v1329_v25 = vpop.permute.xlu0 %1328  ;;  %v1999_v19 = vadd.f32 %v5589_v13, %v1998_v4  ;;  %v2460_v4 = vld [vmem:[%s6586_s3 + $0x20] sm:$0xff] }
 0x2ea   : > { %v1754_v7 = vsel %vm1725_vm9, %v1721_v23, %v1329_v25 }
 0x2eb   : > { %v1415_v58 = vpop.permute.xlu1 %1414  ;;  %v1427_v28 = vpop.permute.xlu2 %1426  ;;  %v1787_v49 = vsel %vm1758_vm10, %v1754_v7, %v1425_v55  ;;  %v2058_v46 = vmax.f32 %v1999_v19, 0.0  ;;  %v2464_v7 = vld [vmem:[%s6586_s3 + $0x40] sm:$0xff] }
 0x2ec   : > { %v1782_v0 = vsel %vm1758_vm10, %v1749_v9, %v1415_v58  ;;  %3053 = vmatpush.msra.mxu1 %v2464_v7 }
 0x2ef   : > { %2759 = vrot.lane.b32.xlu0 %v2709_v5, %s4083_s12 }
 0x2f0   : > { %v2001_v36 = vpop.f32.mrf.mxu2 }
 0x2f1   : > { %2807 = vrot.lane.b32.xlu2 %v5854_v33, %s6658_s24  ;;  %2783 = vrot.lane.b32.xlu1 %v2731_v1, %s6660_s15  ;;  %v1511_v15 = vpop.permute.xlu0 %1510  ;;  %v1980_v1 = vpop.f32.mrf.mxu0  ;;  %s6758_s15 = smov 32  }
 0x2f2   : > { %v1815_v56 = vsel %vm1791_vm11, %v1782_v0, %v1511_v15  ;;  %v1981_v35 = vadd.f32 %v5589_v13, %v1980_v1 }
 0x2f3   : > { %v1521_v11 = vpop.permute.xlu1 %1520  ;;  %3815 = vmatmul.msk.f32.gmra.mxu2 %vm6742_vm13, %v1815_v56  ;;  %v949_v47 = vpop.permute.xlu2 %948  ;;  %vm6745_vm13 = vmmov %vm6744_vm1 }
 0x2f4   : > { %v1820_v5 = vsel %vm1791_vm11, %v1787_v49, %v1521_v11  ;;  %v2052_v50 = vmax.f32 %v1981_v35, 0.0  ;;  %v2463_v11 = vld [vmem:[%s6586_s3 + $0x38] sm:$0xff]  ;;  %v2462_v49 = vld [vmem:[%s6586_s3 + $0x30] sm:$0xff] }
 0x2f5   : > { %3820 = vmatmul.msk.f32.gmra.mxu3 %vm6743_vm12, %v1820_v5  ;;  %3054 = vmatpush.msra.mxu1 %v2463_v11  ;;  %vm6746_vm12 = vcmask 1041409   ;;  %v2457_v11 = vld [vmem:[%s6586_s3 + $0x8] sm:$0xff] }
 0x2f6   : > { %v5922_v38 = vmax.f32 %v2052_v50, %v2054_v29 }
 0x2f7   : > { %2831 = vrot.lane.b32.xlu0 %v5874_v61, %s6656_s22  ;;  %3055 = vmatpush.msra.mxu1 %v2462_v49  ;;  %s6759_s22 = smov 40  }
 0x2f8   : > { %v2122_v26 = vrot.slane %v5922_v38, 2  ;;  %v2123_v3 = vrot.slane %v5922_v38, 4  ;;  %v3848_v15 = vrot.slane %v5922_v38, 9 }
 0x2f9   : > { %2855 = vrot.lane.b32.xlu1 %v5868_v30, %s6654_s29  ;;  %v947_v22 = vpop.permute.xlu0 %946  ;;  %s4092_s29 = smov 96  }
 0x2fa   : > { %v1623_v21 = vsel %vm1593_vm5, %v1590_v34, %v947_v22  ;;  %v3850_v34 = vrot.slane %v2123_v3, 9 }
 0x2fb   : > { %v1043_v52 = vpop.permute.xlu1 %1042  ;;  %v1237_v60 = vpop.permute.xlu2 %1236 }
 0x2fc   : > { %v1656_v55 = vsel %vm1626_vm6, %v1623_v21, %v1043_v52  ;;  %v2461_v21 = vld [vmem:[%s6586_s3 + $0x28] sm:$0xff] }
 0x2fd   : > { %v1689_v17 = vsel %vm1659_vm7, %v1656_v55, %v1139_v63  ;;  %v1993_v63 = vadd.f32 %v5589_v13, %v1992_v42  ;;  %v1996_v55 = vadd.f32 %v5589_v13, %v1995_v44  ;;  %3056 = vmatpush.msra.mxu1 %v2461_v21 }
 0x2ff   : > { %v2056_v31 = vmax.f32 %v1993_v63, 0.0  ;;  %3057 = vmatpush.msra.mxu1 %v2460_v4 }
 0x301   : > { %v1235_v43 = vpop.permute.xlu0 %1234 }
 0x302   : > { %v1722_v12 = vsel %vm1692_vm8, %v1689_v17, %v1235_v43  ;;  %v2124_v17 = vrot.slane %v5922_v38, 6 }
 0x303   : > { %v1331_v32 = vpop.permute.xlu1 %1330  ;;  %v1525_v51 = vpop.permute.xlu2 %1524 }
 0x304   : > { %v1755_v20 = vsel %vm1725_vm9, %v1722_v12, %v1331_v32  ;;  %v1990_v12 = vadd.f32 %v5589_v13, %v5898_v14  ;;  %v2416_v32 = vmax.f32 %v5922_v38, %v3848_v15  ;;  %v3851_v19 = vrot.slane %v2124_v17, 9 }
 0x305   : > { %v1788_v37 = vsel %vm1758_vm10, %v1755_v20, %v1427_v28  ;;  %v3849_v28 = vrot.slane %v2122_v26, 9 }
 0x306   : > { %v2055_v29 = vmax.f32 %v1990_v12, 0.0  ;;  %v2554_v63 = vperm.slane %v2416_v32, 0 }
 0x307   : > { %v2417_v42 = vmax.f32 %v2122_v26, %v3849_v28 }
 0x309   : > { %v1523_v18 = vpop.permute.xlu0 %1522  ;;  %v2555_v44 = vperm.slane %v2417_v42, 0 }
 0x30a   : > { %v1821_v62 = vsel %vm1791_vm11, %v1788_v37, %v1523_v18  ;;  %v2418_v37 = vmax.f32 %v2123_v3, %v3850_v34  ;;  %v2419_v3 = vmax.f32 %v2124_v17, %v3851_v19 }
 0x30b   : > { %v853_v41 = vpop.permute.xlu1 %852  ;;  %3821 = vmatmul.msk.f32.gmra.mxu3 %vm6744_vm1, %v1821_v62  ;;  %v5927_v16 = vpop.permute.xlu2 %1046  ;;  %v2622_v26 = vsel %vm6746_vm12, %v2555_v44, %v2554_v63 }
 0x30c   : > { %v1591_v54 = vsel %vm1560_vm4, %v5361_v24, %v853_v41  ;;  %v2080_v24 = vmax.f32 %v2056_v31, %v2058_v46  ;;  %v2557_v42 = vperm.slane %v2419_v3, 0 }
 0x30d   : > { %v1624_v40 = vsel %vm1593_vm5, %v1591_v54, %v949_v47  ;;  %v2002_v47 = vadd.f32 %v5589_v13, %v2001_v36 }
 0x30e   : > { %v2128_v9 = vrot.slane %v2080_v24, 2  ;;  %v2129_v5 = vrot.slane %v2080_v24, 4  ;;  %v2130_v52 = vrot.slane %v2080_v24, 6  ;;  %v3856_v43 = vrot.slane %v2080_v24, 9 }
 0x30f   : > { %v2059_v18 = vmax.f32 %v2002_v47, 0.0 }
 0x310   : > { %v3858_v1 = vrot.slane %v2129_v5, 9  ;;  %v3859_v41 = vrot.slane %v2130_v52, 9  ;;  %v2424_v14 = vmax.f32 %v2080_v24, %v3856_v43 }
 0x311   : > { %v1045_v39 = vpop.permute.xlu0 %1044 }
 0x312   : > { %v1657_v8 = vsel %vm1626_vm6, %v1624_v40, %v1045_v39  ;;  %v2458_v40 = vld [vmem:[%s6586_s3 + $0x10] sm:$0xff]  ;;  %v2426_v46 = vmax.f32 %v2129_v5, %v3858_v1  ;;  %v5971_v31 = vmax.f32 %v2130_v52, %v3859_v41 }
 0x313   : > { %v1141_v25 = vpop.permute.xlu1 %1140  ;;  %v5955_v20 = vpop.permute.xlu2 %1334 }
 0x314   : > { %v1690_v58 = vsel %vm1659_vm7, %v1657_v8, %v1141_v25  ;;  %v2556_v25 = vperm.slane %v2418_v37, 0  ;;  %v2564_v7 = vperm.slane %v2426_v46, 0 }
 0x315   : > { %v1723_v48 = vsel %vm1692_vm8, %v1690_v58, %v1237_v60  ;;  %v3857_v60 = vrot.slane %v2128_v9, 9 }
 0x317   : > { %v2425_v50 = vmax.f32 %v2128_v9, %v3857_v60  ;;  %v2456_v60 = vld [vmem:[%s6586_s3] sm:$0xff] }
 0x319   : > { %v1333_v53 = vpop.permute.xlu0 %1332  ;;  %v2563_v24 = vperm.slane %v2425_v50, 0 }
 0x31a   : > { %v1756_v23 = vsel %vm1725_vm9, %v1723_v48, %v1333_v53 }
 0x31b   : > { %v1429_v0 = vpop.permute.xlu1 %1428  ;;  %v2756_v49 = vpop.permute.xlu2 %2755 }
 0x31c   : > { %v1789_v56 = vsel %vm1758_vm10, %v1756_v23, %v1429_v0 }
 0x31d   : > { %v1822_v22 = vsel %vm1791_vm11, %v1789_v56, %v1525_v51  ;;  %v2057_v51 = vmax.f32 %v1996_v55, 0.0  ;;  %v2623_v56 = vsel %vm2596_vm14, %v2556_v25, %v2622_v26 }
 0x31e   : > { %3822 = vmatmul.msk.f32.gmra.mxu3 %vm6745_vm13, %v1822_v22  ;;  %vm2964_vm13 = vcmask 195584  }
 0x31f   : > { %v5969_v8 = vmax.f32 %v2057_v51, %v2059_v18 }
 0x321   : > { %v855_v35 = vpop.permute.xlu0 %854  ;;  %v2131_v9 = vrot.slane %v5969_v8, 2  ;;  %v3860_v0 = vrot.slane %v5969_v8, 9  ;;  %v2132_v17 = vrot.slane %v5969_v8, 4  ;;  %v2133_v50 = vrot.slane %v5969_v8, 6 }
 0x322   : > { %v1983_v62 = vpop.f32.mrf.mxu0  ;;  %v1592_v39 = vsel %vm1560_vm4, %v5358_v59, %v855_v35  ;;  %v2562_v59 = vperm.slane %v2424_v14, 0  ;;  %vm6747_vm4 = vmmov %vm6746_vm12  ;;  %v2624_v35 = vsel %vm2598_vm15, %v2557_v42, %v2623_v56  ;;  %v2947_v56 = vsel %vm1791_vm11, %v6723_v27, %v2756_v49 }
 0x323   : > { %v1984_v10 = vadd.f32 %v5589_v13, %v1983_v62  ;;  %v951_v54 = vpop.permute.xlu1 %950  ;;  %v2459_v13 = vld [vmem:[%s6586_s3 + $0x18] sm:$0xff]  ;;  %v2428_v18 = vmax.f32 %v5969_v8, %v3860_v0  ;;  %v3862_v19 = vrot.slane %v2132_v17, 9 }
 0x324   : > { %3058 = vmatpush.msra.mxu1 %v2459_v13  ;;  %v1625_v53 = vsel %vm1593_vm5, %v1592_v39, %v951_v54  ;;  %v2629_v52 = vsel %vm6747_vm4, %v2563_v24, %v2562_v59  ;;  %vm6748_vm5 = vcmask 1044484   ;;  %v2565_v13 = vperm.slane %v5971_v31, 0 }
 0x325   : > { %v2053_v38 = vmax.f32 %v1984_v10, 0.0  ;;  %v1658_v34 = vsel %vm1626_vm6, %v1625_v53, %v5927_v16  ;;  %v3861_v16 = vrot.slane %v2131_v9, 9  ;;  %v2630_v4 = vsel %vm2596_vm14, %v2564_v7, %v2629_v52 }
 0x326   : > { %3059 = vmatpush.msra.mxu1 %v2458_v40  ;;  %v2566_v54 = vperm.slane %v2428_v18, 0  ;;  %vm6749_vm6 = vcmask 1046534   ;;  %v3863_v59 = vrot.slane %v2133_v50, 9  ;;  %v2430_v24 = vmax.f32 %v2132_v17, %v3862_v19 }
 0x327   : > { %v2079_v58 = vmax.f32 %v2053_v38, %v2055_v29  ;;  %v2429_v38 = vmax.f32 %v2131_v9, %v3861_v16  ;;  %v2631_v3 = vsel %vm2598_vm15, %v2565_v13, %v2630_v4  ;;  %vm6754_vm12 = vmmov %vm6749_vm6  ;;  %vm2973_vm4 = vcmask 261120  }
 0x328   : > { %3060 = vmatpush.msra.mxu1 %v2457_v11 }
 0x329   : > { %v2125_v48 = vrot.slane %v2079_v58, 2  ;;  %v2126_v36 = vrot.slane %v2079_v58, 4  ;;  %v3852_v28 = vrot.slane %v2079_v58, 9  ;;  %v2127_v23 = vrot.slane %v2079_v58, 6  ;;  %v1143_v15 = vpop.permute.xlu0 %1142 }
 0x32a   : > { %v1691_v21 = vsel %vm1659_vm7, %v1658_v34, %v1143_v15  ;;  %3061 = vmatpush.msra.mxu1 %v2456_v60  ;;  %vm6750_vm7 = vcmask 1047559   ;;  %v2567_v53 = vperm.slane %v2429_v38, 0  ;;  %v2568_v15 = vperm.slane %v2430_v24, 0 }
 0x32b   : > { %v3853_v5 = vrot.slane %v2125_v48, 9  ;;  %v2420_v47 = vmax.f32 %v2079_v58, %v3852_v28  ;;  %v3854_v22 = vrot.slane %v2126_v36, 9  ;;  %v1239_v55 = vpop.permute.xlu1 %1238  ;;  %v3855_v43 = vrot.slane %v2127_v23, 9  ;;  %v2828_v58 = vpop.permute.xlu2 %2827 }
 0x32c   : > { %v1724_v62 = vsel %vm1692_vm8, %v1691_v21, %v1239_v55  ;;  %vm6751_vm8 = vmmov %vm6744_vm1  ;;  %vm2955_vm1 = vcmask 130048  }
 0x32d   : > { %v2558_v12 = vperm.slane %v2420_v47, 0  ;;  %v2421_v32 = vmax.f32 %v2125_v48, %v3853_v5  ;;  %v2422_v1 = vmax.f32 %v2126_v36, %v3854_v22  ;;  %v2423_v37 = vmax.f32 %v2127_v23, %v3855_v43 }
 0x32e   : > { %v1757_v63 = vsel %vm1725_vm9, %v1724_v62, %v5955_v20  ;;  %vm6752_vm9 = vmmov %vm6748_vm5  ;;  %v2431_v5 = vmax.f32 %v2133_v50, %v3863_v59 }
 0x32f   : > { %v2559_v41 = vperm.slane %v2421_v32, 0  ;;  %v2560_v44 = vperm.slane %v2422_v1, 0  ;;  %v2625_v10 = vsel %vm6748_vm5, %v2558_v12, %v2624_v35  ;;  %v2561_v51 = vperm.slane %v2423_v37, 0  ;;  %vm6755_vm5 = vmmov %vm6750_vm7 }
 0x330   : > { %v2632_v48 = vsel %vm6752_vm9, %v2566_v54, %v2631_v3  ;;  %v2569_v42 = vperm.slane %v2431_v5, 0  ;;  %vm6663_vm9 = vcmask 523264  }
 0x331   : > { %v2626_v14 = vsel %vm2602_vm3, %v2559_v41, %v2625_v10  ;;  %v1431_v29 = vpop.permute.xlu0 %1430  ;;  %v2633_v47 = vsel %vm2602_vm3, %v2567_v53, %v2632_v48  ;;  %v2004_v10 = vpop.f32.mrf.mxu2  ;;  %v6083_v53 = vld [vmem:[%s6585_s2] ss:$0 sm:$0xff] }
 0x332   : > { %v2627_v39 = vsel %vm6749_vm6, %v2560_v44, %v2626_v14  ;;  %v1790_v40 = vsel %vm1758_vm10, %v1757_v63, %v1431_v29  ;;  %vm6753_vm10 = vcmask 1045504   ;;  %v2634_v52 = vsel %vm6754_vm12, %v2568_v15, %v2633_v47 }
 0x333   : > { %v2628_v46 = vsel %vm6750_vm7, %v2561_v51, %v2627_v39  ;;  %v1527_v25 = vpop.permute.xlu1 %1526  ;;  %v2900_v21 = vpop.permute.xlu2 %2899  ;;  %v2635_v55 = vsel %vm6755_vm5, %v2569_v42, %v2634_v52  ;;  %vm2982_vm6 = vcmask 326656   ;;  %vm2991_vm7 = vcmask 392192  }
 0x334   : > { %v2660_v26 = vrot.slane %v2628_v46, 7  ;;  %v1823_v8 = vsel %vm1791_vm11, %v1790_v40, %v1527_v25  ;;  %v2661_v17 = vrot.slane %v2635_v55, 7  ;;  %vm6760_vm12 = vcmask 1045504   ;;  %v2016_v39 = vpop.f32.mrf.mxu3 }
 0x335   : > { %3823 = vmatmul.msk.f32.gmra.mxu3 %vm6751_vm8, %v1823_v8  ;;  %vm6664_vm8 = vcmask 457728   ;;  %v2017_v15 = vadd.f32 %v6083_v53, %v2016_v39  ;;  %vm6761_vm5 = vcmask 1041409  }
 0x336   : > { %v6006_v20 = vsel %vm452_vm0, 0.0, %v2660_v26  ;;  %v2684_v31 = vsel %vm452_vm0, %v2660_v26, 0.0  ;;  %v6039_v1 = vsel %vm452_vm0, 0.0, %v2661_v17 }
 0x337   : > { %2879 = vrot.lane.b32.xlu2 %v6006_v20, %s4089_s25  ;;  %v2713_v36 = vrot.slane %v6006_v20, 1  ;;  %v2714_v28 = vrot.slane %v2684_v31, 1  ;;  %v2735_v23 = vrot.slane %v6006_v20, 2  ;;  %v2736_v7 = vrot.slane %v2684_v31, 2 }
 0x338   : > { %v2716_v35 = vrot.slane %v6039_v1, 1  ;;  %v2738_v4 = vrot.slane %v6039_v1, 2  ;;  %v2064_v5 = vmax.f32 %v2017_v15, 0.0 }
 0x339   : > { %v2715_v9 = vsel %vm618_vm2, %v2713_v36, %v2714_v28  ;;  %v6016_v0 = vsel %vm6753_vm10, %v2735_v23, %v2736_v7  ;;  %v2780_v11 = vpop.permute.xlu0 %2779  ;;  %vm6662_vm10 = vcmask 588800   ;;  %v2007_v40 = vpop.f32.mrf.mxu2  ;;  %v2005_v36 = vadd.f32 %v6083_v53, %v2004_v10 }
 0x33a   : > { %2903 = vrot.lane.b32.xlu0 %v2715_v9, %s4088_s16  ;;  %2927 = vrot.lane.b32.xlu1 %v6016_v0, %s4090_s30  ;;  %v2956_v22 = vsel %vm2955_vm1, %v2947_v56, %v2780_v11 }
 0x33b   : > { %v2804_v34 = vpop.permute.xlu1 %2803  ;;  %v2782_v16 = vpop.permute.xlu2 %2781  ;;  %v2060_v7 = vmax.f32 %v2005_v36, 0.0 }
 0x33c   : > { %v2965_v49 = vsel %vm2964_vm13, %v2956_v22, %v2804_v34 }
 0x33d   : > { %v2974_v60 = vsel %vm2973_vm4, %v2965_v49, %v2828_v58  ;;  %v2019_v58 = vpop.f32.mrf.mxu3 }
 0x33f   : > { %2761 = vrot.lane.b32.xlu2 %v5874_v61, %s4083_s12 }
 0x341   : > { %v2852_v43 = vpop.permute.xlu0 %2851 }
 0x342   : > { %2785 = vrot.lane.b32.xlu0 %v5868_v30, %s6756_s14  ;;  %2809 = vrot.lane.b32.xlu1 %v6006_v20, %s6757_s13  ;;  %v2983_v12 = vsel %vm2982_vm6, %v2974_v60, %v2852_v43  ;;  %v2685_v30 = vsel %vm452_vm0, %v2661_v17, 0.0  ;;  %v2020_v43 = vadd.f32 %v6083_v53, %v2019_v58 }
 0x343   : > { %v2876_v61 = vpop.permute.xlu1 %2875  ;;  %v2717_v62 = vrot.slane %v2685_v30, 1  ;;  %v2739_v51 = vrot.slane %v2685_v30, 2  ;;  %v2854_v29 = vpop.permute.xlu2 %2853 }
 0x344   : > { %v2992_v32 = vsel %vm2991_vm7, %v2983_v12, %v2876_v61  ;;  %v2008_v61 = vadd.f32 %v6083_v53, %v2007_v40 }
 0x345   : > { %v3001_v37 = vsel %vm6664_vm8, %v2992_v32, %v2900_v21  ;;  %v6052_v14 = vsel %vm618_vm2, %v2716_v35, %v2717_v62  ;;  %v6059_v19 = vsel %vm6760_vm12, %v2738_v4, %v2739_v51  ;;  %v2022_v28 = vpop.f32.mrf.mxu3  ;;  %v2065_v35 = vmax.f32 %v2020_v43, 0.0  ;;  %vm6762_vm12 = vmmov %vm6761_vm5 }
 0x347   : > { %2833 = vrot.lane.b32.xlu2 %v2715_v9, %s6758_s15  ;;  %v2010_v24 = vpop.f32.mrf.mxu2 }
 0x348   : > { %v2011_v48 = vadd.f32 %v6083_v53, %v2010_v24 }
 0x349   : > { %v2924_v18 = vpop.permute.xlu0 %2923 }
 0x34a   : > { %2857 = vrot.lane.b32.xlu0 %v6016_v0, %s6759_s22  ;;  %2881 = vrot.lane.b32.xlu1 %v6039_v1, %s4089_s25  ;;  %v3010_v41 = vsel %vm6663_vm9, %v3001_v37, %v2924_v18  ;;  %v2062_v23 = vmax.f32 %v2011_v48, 0.0 }
 0x34b   : > { %v2758_v44 = vpop.permute.xlu1 %2757  ;;  %3888 = vmatmul.msk.f32.vlgmr.msra.gmra.mxu1 %vm6662_vm10, %v3010_v41  ;;  %v2926_v59 = vpop.permute.xlu2 %2925 }
 0x34c   : > { %v2948_v50 = vsel %vm1791_vm11, %v5761_v6, %v2758_v44 }
 0x34d   : > { %v2957_v63 = vsel %vm2955_vm1, %v2948_v50, %v2782_v16  ;;  %v2061_v50 = vmax.f32 %v2008_v61, 0.0 }
 0x34e   : > { %v2025_v52 = vpop.f32.mrf.mxu3 }
 0x34f   : > { %2905 = vrot.lane.b32.xlu2 %v6052_v14, %s4088_s16  ;;  %v2026_v55 = vadd.f32 %v6083_v53, %v2025_v52 }
 0x351   : > { %v2806_v54 = vpop.permute.xlu0 %2805  ;;  %v2067_v18 = vmax.f32 %v2026_v55, 0.0 }
 0x352   : > { %2763 = vrot.lane.b32.xlu1 %v2715_v9, %s4083_s12  ;;  %2929 = vrot.lane.b32.xlu0 %v6059_v19, %s4090_s30  ;;  %v2966_v38 = vsel %vm2964_vm13, %v2957_v63, %v2806_v54  ;;  %v2023_v9 = vadd.f32 %v6083_v53, %v2022_v28 }
 0x353   : > { %v2830_v13 = vpop.permute.xlu1 %2829 }
 0x354   : > { %v2975_v46 = vsel %vm2973_vm4, %v2966_v38, %v2830_v13  ;;  %v2066_v56 = vmax.f32 %v2023_v9, 0.0  ;;  %v6093_v38 = vmax.f32 %v2065_v35, %v2067_v18 }
 0x355   : > { %v2984_v25 = vsel %vm2982_vm6, %v2975_v46, %v2854_v29 }
 0x356   : > { %v2084_v47 = vmax.f32 %v2064_v5, %v2066_v56  ;;  %v3876_v48 = vrot.slane %v6093_v38, 9 }
 0x357   : > { %2787 = vrot.lane.b32.xlu2 %v6016_v0, %s6756_s14  ;;  %v2082_v0 = vmax.f32 %v2060_v7, %v2062_v23 }
 0x358   : > { %v2140_v21 = vrot.slane %v2084_v47, 2  ;;  %v2141_v17 = vrot.slane %v2084_v47, 4  ;;  %v2142_v44 = vrot.slane %v2084_v47, 6  ;;  %v3872_v10 = vrot.slane %v2084_v47, 9 }
 0x359   : > { %v2878_v6 = vpop.permute.xlu0 %2877  ;;  %v2134_v11 = vrot.slane %v2082_v0, 2  ;;  %v2135_v34 = vrot.slane %v2082_v0, 4  ;;  %v3864_v42 = vrot.slane %v2082_v0, 9  ;;  %v2136_v12 = vrot.slane %v2082_v0, 6 }
 0x35a   : > { %2811 = vrot.lane.b32.xlu0 %v6039_v1, %s6757_s13  ;;  %2835 = vrot.lane.b32.xlu1 %v6052_v14, %s6758_s15  ;;  %v2993_v26 = vsel %vm2991_vm7, %v2984_v25, %v2878_v6  ;;  %v3873_v30 = vrot.slane %v2140_v21, 9  ;;  %v3874_v4 = vrot.slane %v2141_v17, 9  ;;  %v3875_v46 = vrot.slane %v2142_v44, 9 }
 0x35b   : > { %v2902_v8 = vpop.permute.xlu1 %2901  ;;  %v3865_v22 = vrot.slane %v2134_v11, 9  ;;  %v3866_v49 = vrot.slane %v2135_v34, 9  ;;  %v2432_v32 = vmax.f32 %v2082_v0, %v3864_v42  ;;  %v3867_v51 = vrot.slane %v2136_v12, 9 }
 0x35c   : > { %v3002_v3 = vsel %vm6664_vm8, %v2993_v26, %v2902_v8  ;;  %v2441_v63 = vmax.f32 %v2140_v21, %v3873_v30  ;;  %v2440_v6 = vmax.f32 %v2084_v47, %v3872_v10  ;;  %v2442_v25 = vmax.f32 %v2141_v17, %v3874_v4 }
 0x35d   : > { %v3011_v31 = vsel %vm6663_vm9, %v3002_v3, %v2926_v59  ;;  %v2433_v60 = vmax.f32 %v2134_v11, %v3865_v22  ;;  %v2434_v16 = vmax.f32 %v2135_v34, %v3866_v49  ;;  %v2570_v54 = vperm.slane %v2432_v32, 0 }
 0x35e   : > { %3889 = vmatmul.msk.f32.gmra.mxu1 %vm6662_vm10, %v3011_v31  ;;  %v2435_v26 = vmax.f32 %v2136_v12, %v3867_v51  ;;  %v2579_v3 = vperm.slane %v2441_v63, 0  ;;  %v2143_v31 = vrot.slane %v6093_v38, 2  ;;  %v2443_v0 = vmax.f32 %v2142_v44, %v3875_v46 }
 0x35f   : > { %2859 = vrot.lane.b32.xlu2 %v6059_v19, %s6759_s22  ;;  %v2571_v62 = vperm.slane %v2433_v60, 0  ;;  %v2572_v39 = vperm.slane %v2434_v16, 0  ;;  %v2578_v15 = vperm.slane %v2440_v6, 0  ;;  %v2144_v11 = vrot.slane %v6093_v38, 4 }
 0x360   : > { %v2573_v56 = vperm.slane %v2435_v26, 0  ;;  %v2580_v52 = vperm.slane %v2442_v25, 0  ;;  %v3877_v42 = vrot.slane %v2143_v31, 9  ;;  %v2444_v21 = vmax.f32 %v6093_v38, %v3876_v48 }
 0x361   : > { %v2636_v13 = vsel %vm6761_vm5, %v2571_v62, %v2570_v54  ;;  %v2643_v55 = vsel %vm6762_vm12, %v2579_v3, %v2578_v15  ;;  %vm6763_vm5 = vcmask 1044484   ;;  %v2145_v32 = vrot.slane %v6093_v38, 6  ;;  %v2760_v48 = vpop.permute.xlu0 %2759 }
 0x362   : > { %v2637_v36 = vsel %vm2596_vm14, %v2572_v39, %v2636_v13  ;;  %v3878_v30 = vrot.slane %v2144_v11, 9  ;;  %v2582_v16 = vperm.slane %v2444_v21, 0  ;;  %vm6764_vm10 = vcmask 1046534   ;;  %vm6766_vm12 = vmmov %vm6763_vm5 }
 0x363   : > { %v2638_v49 = vsel %vm2598_vm15, %v2573_v56, %v2637_v36  ;;  %v2644_v35 = vsel %vm2596_vm14, %v2580_v52, %v2643_v55  ;;  %v2581_v62 = vperm.slane %v2443_v0, 0  ;;  %vm6765_vm9 = vcmask 1047559   ;;  %v2784_v36 = vpop.permute.xlu1 %2783 }
 0x364   : > { %v3879_v10 = vrot.slane %v2145_v32, 9  ;;  %v2446_v4 = vmax.f32 %v2144_v11, %v3878_v30  ;;  %v2949_v0 = vsel %vm1791_vm11, %v5815_v57, %v2760_v48 }
 0x365   : > { %v2645_v51 = vsel %vm2598_vm15, %v2581_v62, %v2644_v35 }
 0x366   : > { %v2646_v63 = vsel %vm6766_vm12, %v2582_v16, %v2645_v51  ;;  %v2584_v25 = vperm.slane %v2446_v4, 0  ;;  %v2447_v26 = vmax.f32 %v2145_v32, %v3879_v10 }
 0x376   : > { %v2013_v37 = vpop.f32.mrf.mxu2 }
 0x377   : > { %v2014_v41 = vadd.f32 %v6083_v53, %v2013_v37  ;;  %v2445_v37 = vmax.f32 %v2143_v31, %v3877_v42  ;;  %v2958_v42 = vsel %vm2955_vm1, %v2949_v0, %v2784_v36 }
 0x379   : > { %v2063_v29 = vmax.f32 %v2014_v41, 0.0 }
 0x37b   : > { %v2083_v40 = vmax.f32 %v2061_v50, %v2063_v29  ;;  %v2583_v29 = vperm.slane %v2445_v37, 0 }
 0x37d   : > { %v2137_v58 = vrot.slane %v2083_v40, 2  ;;  %v2138_v8 = vrot.slane %v2083_v40, 4  ;;  %v3868_v59 = vrot.slane %v2083_v40, 9  ;;  %v2139_v24 = vrot.slane %v2083_v40, 6 }
 0x37f   : > { %v3869_v28 = vrot.slane %v2137_v58, 9  ;;  %v2436_v23 = vmax.f32 %v2083_v40, %v3868_v59  ;;  %v3870_v7 = vrot.slane %v2138_v8, 9  ;;  %v3871_v9 = vrot.slane %v2139_v24, 9 }
 0x381   : > { %v2574_v5 = vperm.slane %v2436_v23, 0  ;;  %v2437_v47 = vmax.f32 %v2137_v58, %v3869_v28  ;;  %v2438_v34 = vmax.f32 %v2138_v8, %v3870_v7  ;;  %v2439_v22 = vmax.f32 %v2139_v24, %v3871_v9  ;;  %v2028_v8 = vpop.f32.mrf.mxu3  ;;  %v2808_v23 = vpop.permute.xlu2 %2807 }
 0x382   : > { %v2647_v58 = vsel %vm2602_vm3, %v2583_v29, %v2646_v63  ;;  %v2585_v24 = vperm.slane %v2447_v26, 0  ;;  %v2029_v21 = vadd.f32 %v6083_v53, %v2028_v8  ;;  %v2967_v55 = vsel %vm2964_vm13, %v2958_v42, %v2808_v23 }
 0x383   : > { %v2575_v43 = vperm.slane %v2437_v47, 0  ;;  %v2576_v60 = vperm.slane %v2438_v34, 0  ;;  %v2639_v17 = vsel %vm6763_vm5, %v2574_v5, %v2638_v49  ;;  %v2577_v12 = vperm.slane %v2439_v22, 0  ;;  %v2832_v5 = vpop.permute.xlu0 %2831  ;;  %v2856_v22 = vpop.permute.xlu1 %2855 }
 0x384   : > { %v2648_v59 = vsel %vm6764_vm10, %v2584_v25, %v2647_v58  ;;  %vm6768_vm5 = vcmask 1047559  }
 0x385   : > { %v2640_v61 = vsel %vm2602_vm3, %v2575_v43, %v2639_v17  ;;  %v2649_v3 = vsel %vm6768_vm5, %v2585_v24, %v2648_v59  ;;  %v2976_v43 = vsel %vm2973_vm4, %v2967_v55, %v2832_v5  ;;  %vm6772_vm5 = vcmask 1041409  }
 0x386   : > { %v2641_v18 = vsel %vm6764_vm10, %v2576_v60, %v2640_v61  ;;  %v2663_v31 = vrot.slane %v2649_v3, 7  ;;  %v2068_v60 = vmax.f32 %v2029_v21, 0.0  ;;  %vm6771_vm10 = vcmask 588800  }
 0x387   : > { %v2642_v41 = vsel %vm6765_vm9, %v2577_v12, %v2641_v18  ;;  %vm6767_vm9 = vcmask 1045504   ;;  %v2985_v12 = vsel %vm2982_vm6, %v2976_v43, %v2856_v22 }
 0x388   : > { %v2662_v44 = vrot.slane %v2642_v41, 7  ;;  %v6134_v7 = vsel %vm452_vm0, 0.0, %v2663_v31  ;;  %vm6769_vm12 = vmmov %vm6767_vm9 }
 0x389   : > { %v2722_v9 = vrot.slane %v6134_v7, 1  ;;  %v2744_v56 = vrot.slane %v6134_v7, 2 }
 0x38a   : > { %v6111_v50 = vsel %vm452_vm0, 0.0, %v2662_v44  ;;  %v2686_v54 = vsel %vm452_vm0, %v2662_v44, 0.0 }
 0x38b   : > { %2883 = vrot.lane.b32.xlu0 %v6111_v50, %s4089_s25  ;;  %v2741_v39 = vrot.slane %v6111_v50, 2  ;;  %v2742_v38 = vrot.slane %v2686_v54, 2  ;;  %v2719_v13 = vrot.slane %v6111_v50, 1  ;;  %v2720_v40 = vrot.slane %v2686_v54, 1 }
 0x38d   : > { %v2743_v46 = vsel %vm6767_vm9, %v2741_v39, %v2742_v38  ;;  %v2721_v6 = vsel %vm618_vm2, %v2719_v13, %v2720_v40  ;;  %vm6770_vm9 = vcmask 523264  }
 0x38e   : > { %2931 = vrot.lane.b32.xlu2 %v2743_v46, %s4090_s30  ;;  %2907 = vrot.lane.b32.xlu1 %v2721_v6, %s4088_s16  ;;  %v2031_v28 = vpop.f32.mrf.mxu3 }
 0x38f   : > { %v2032_v38 = vadd.f32 %v6083_v53, %v2031_v28 }
 0x391   : > { %v2880_v52 = vpop.permute.xlu2 %2879  ;;  %v2069_v59 = vmax.f32 %v2032_v38, 0.0 }
 0x392   : > { %v2994_v30 = vsel %vm2991_vm7, %v2985_v12, %v2880_v52 }
 0x393   : > { %2765 = vrot.lane.b32.xlu0 %v6052_v14, %s4083_s12  ;;  %v2687_v14 = vsel %vm452_vm0, %v2663_v31, 0.0 }
 0x394   : > { %v2745_v11 = vrot.slane %v2687_v14, 2 }
 0x396   : > { %2813 = vrot.lane.b32.xlu2 %v6111_v50, %s6757_s13  ;;  %2789 = vrot.lane.b32.xlu1 %v6059_v19, %s6756_s14  ;;  %v2723_v19 = vrot.slane %v2687_v14, 1  ;;  %v6153_v57 = vsel %vm6769_vm12, %v2744_v56, %v2745_v11  ;;  %vm6773_vm12 = vmmov %vm6770_vm9 }
 0x398   : > { %v6146_v34 = vsel %vm618_vm2, %v2722_v9, %v2723_v19 }
 0x399   : > { %v2762_v16 = vpop.permute.xlu2 %2761 }
 0x39a   : > { %v2950_v4 = vsel %vm1791_vm11, %v5854_v33, %v2762_v16 }
 0x39b   : > { %2837 = vrot.lane.b32.xlu0 %v2721_v6, %s6758_s15 }
 0x39e   : > { %2885 = vrot.lane.b32.xlu2 %v6134_v7, %s4089_s25  ;;  %2861 = vrot.lane.b32.xlu1 %v2743_v46, %s6759_s22 }
 0x3a1   : > { %v2034_v15 = vpop.f32.mrf.mxu3  ;;  %v2834_v13 = vpop.permute.xlu2 %2833 }
 0x3a2   : > { %v2035_v47 = vadd.f32 %v6083_v53, %v2034_v15 }
 0x3a3   : > { %2909 = vrot.lane.b32.xlu0 %v6146_v34, %s4088_s16 }
 0x3a4   : > { %v2070_v49 = vmax.f32 %v2035_v47, 0.0 }
 0x3a6   : > { %2767 = vrot.lane.b32.xlu2 %v2721_v6, %s4083_s12  ;;  %2933 = vrot.lane.b32.xlu1 %v6153_v57, %s4090_s30  ;;  %v2086_v17 = vmax.f32 %v2068_v60, %v2070_v49 }
 0x3a8   : > { %v2146_v37 = vrot.slane %v2086_v17, 2  ;;  %v2147_v62 = vrot.slane %v2086_v17, 4  ;;  %v3880_v51 = vrot.slane %v2086_v17, 9  ;;  %v2148_v29 = vrot.slane %v2086_v17, 6 }
 0x3a9   : > { %v2906_v11 = vpop.permute.xlu2 %2905 }
 0x3aa   : > { %v3881_v41 = vrot.slane %v2146_v37, 9  ;;  %v3882_v63 = vrot.slane %v2147_v62, 9  ;;  %v2448_v40 = vmax.f32 %v2086_v17, %v3880_v51  ;;  %v3883_v26 = vrot.slane %v2148_v29, 9 }
 0x3ab   : > { %2791 = vrot.lane.b32.xlu0 %v2743_v46, %s6756_s14 }
 0x3ac   : > { %v2904_v61 = vpop.permute.xlu0 %2903  ;;  %v2928_v32 = vpop.permute.xlu1 %2927  ;;  %v2449_v39 = vmax.f32 %v2146_v37, %v3881_v41  ;;  %v2450_v58 = vmax.f32 %v2147_v62, %v3882_v63  ;;  %v2586_v48 = vperm.slane %v2448_v40, 0  ;;  %v2451_v23 = vmax.f32 %v2148_v29, %v3883_v26  ;;  %v6203_v40 = vld [vmem:[%s6587_s4] ss:$0 sm:$0xff] }
 0x3ad   : > { %v3003_v18 = vsel %vm6664_vm8, %v2994_v30, %v2904_v61 }
 0x3ae   : > { %2839 = vrot.lane.b32.xlu2 %v6146_v34, %s6758_s15  ;;  %2815 = vrot.lane.b32.xlu1 %v6134_v7, %s6757_s13  ;;  %v3012_v35 = vsel %vm6770_vm9, %v3003_v18, %v2928_v32  ;;  %v2587_v8 = vperm.slane %v2449_v39, 0  ;;  %v2588_v14 = vperm.slane %v2450_v58, 0  ;;  %v2589_v42 = vperm.slane %v2451_v23, 0  ;;  %vm6774_vm9 = vmmov %vm6771_vm10 }
 0x3af   : > { %3890 = vmatmul.msk.f32.gmra.mxu1 %vm6771_vm10, %v3012_v35  ;;  %vm6775_vm10 = vcmask 1044484  }
 0x3b0   : > { %v2650_v19 = vsel %vm6772_vm5, %v2587_v8, %v2586_v48  ;;  %vm6776_vm5 = vcmask 1046534  }
 0x3b1   : > { %v2651_v49 = vsel %vm2596_vm14, %v2588_v14, %v2650_v19 }
 0x3b2   : > { %v2652_v16 = vsel %vm2598_vm15, %v2589_v42, %v2651_v49  ;;  %v3202_v49 = vld [vmem:[%s6588_s5 + $0x58] sm:$0xff] }
 0x3b3   : > { %2863 = vrot.lane.b32.xlu0 %v6153_v57, %s6759_s22 }
 0x3b4   : > { %v2786_v44 = vpop.permute.xlu0 %2785  ;;  %v2810_v10 = vpop.permute.xlu1 %2809 }
 0x3b5   : > { %v2959_v54 = vsel %vm2955_vm1, %v2950_v4, %v2786_v44 }
 0x3b6   : > { %v2968_v46 = vsel %vm2964_vm13, %v2959_v54, %v2810_v10 }
 0x3b7   : > { %v2977_v3 = vsel %vm2973_vm4, %v2968_v46, %v2834_v13 }
 0x3b8   : > { %v2037_v6 = vpop.f32.mrf.mxu3 }
 0x3b9   : > { %v2038_v25 = vadd.f32 %v6083_v53, %v2037_v6 }
 0x3bb   : > { %v2071_v33 = vmax.f32 %v2038_v25, 0.0 }
 0x3bc   : > { %v2858_v24 = vpop.permute.xlu0 %2857  ;;  %v2882_v31 = vpop.permute.xlu1 %2881 }
 0x3bd   : > { %v2986_v36 = vsel %vm2982_vm6, %v2977_v3, %v2858_v24  ;;  %v2087_v28 = vmax.f32 %v2069_v59, %v2071_v33 }
 0x3be   : > { %v2995_v9 = vsel %vm2991_vm7, %v2986_v36, %v2882_v31 }
 0x3bf   : > { %v2149_v53 = vrot.slane %v2087_v28, 2  ;;  %v3884_v0 = vrot.slane %v2087_v28, 9  ;;  %v2150_v15 = vrot.slane %v2087_v28, 4  ;;  %v2151_v56 = vrot.slane %v2087_v28, 6 }
 0x3c0   : > { %v3004_v21 = vsel %vm6664_vm8, %v2995_v9, %v2906_v11  ;;  %vm6777_vm8 = vcmask 1047559   ;;  %v6780_v11 = vld [vmem:[#allocation8_spill] sm:$0xff] }
 0x3c1   : > { %v2452_v5 = vmax.f32 %v2087_v28, %v3884_v0  ;;  %v3885_v47 = vrot.slane %v2149_v53, 9  ;;  %v3886_v22 = vrot.slane %v2150_v15, 9  ;;  %v3887_v52 = vrot.slane %v2151_v56, 9 }
 0x3c3   : > { %v2590_v55 = vperm.slane %v2452_v5, 0  ;;  %v2453_v60 = vmax.f32 %v2149_v53, %v3885_v47  ;;  %v2454_v17 = vmax.f32 %v2150_v15, %v3886_v22  ;;  %v2455_v12 = vmax.f32 %v2151_v56, %v3887_v52  ;;  %v2788_v47 = vpop.permute.xlu2 %2787 }
 0x3c4   : > { %v2930_v43 = vpop.permute.xlu0 %2929  ;;  %v3276_v5 = vrot.slane %v6780_v11, 4 }
 0x3c5   : > { %v3013_v61 = vsel %vm6773_vm12, %v3004_v21, %v2930_v43  ;;  %v2591_v32 = vperm.slane %v2453_v60, 0  ;;  %v2592_v30 = vperm.slane %v2454_v17, 0  ;;  %v2653_v18 = vsel %vm6775_vm10, %v2590_v55, %v2652_v16 }
 0x3c6   : > { %3891 = vmatmul.msk.f32.gmra.mxu1 %vm6774_vm9, %v3013_v61  ;;  %v2593_v37 = vperm.slane %v2455_v12, 0  ;;  %vm6778_vm12 = vcmask 1045504   ;;  %vm3281_vm9 = vcmask 1046532   ;;  %v3285_v21 = vrot.slane %v3276_v5, 5 }
 0x3c7   : > { %v2654_v35 = vsel %vm2602_vm3, %v2591_v32, %v2653_v18  ;;  %vm6781_vm3 = vcmask 1044480  }
 0x3c8   : > { %v2655_v62 = vsel %vm6776_vm5, %v2592_v30, %v2654_v35  ;;  %v3063_v13 = vpop.f32.mrf.mxu1  ;;  %v3304_v35 = vrot.slane %v3276_v5, 6  ;;  %vm3299_vm5 = vcmask 1041408  }
 0x3c9   : > { %v2656_v41 = vsel %vm6777_vm8, %v2593_v37, %v2655_v62  ;;  %v3064_v46 = vadd.f32 %v6203_v40, %v3063_v13  ;;  %vm3280_vm8 = vcmask 1042432  }
 0x3ca   : > { %v2664_v44 = vrot.slane %v2656_v41, 7  ;;  %vm6225_vm10 = vmor %vm3280_vm8, %vm3281_vm9  ;;  %vm6787_vm8 = vcmask 523264   ;;  %vm6788_vm9 = vcmask 588800  }
 0x3cb   : > { %v3087_v26 = vmax.f32 %v3064_v46, 0.0  ;;  %v2860_v16 = vpop.permute.xlu2 %2859 }
 0x3cc   : > { %v2680_v10 = vsel %vm452_vm0, 0.0, %v2664_v44  ;;  %v2688_v4 = vsel %vm452_vm0, %v2664_v44, 0.0  ;;  %v2812_v43 = vpop.permute.xlu0 %2811  ;;  %v3199_v44 = vld [vmem:[%s6588_s5 + $0x40] sm:$0xff] }
 0x3cd   : > { %2887 = vrot.lane.b32.xlu1 %v2680_v10, %s4089_s25  ;;  %v2749_v51 = vrot.slane %v2680_v10, 1  ;;  %v2752_v54 = vrot.slane %v2680_v10, 2  ;;  %v2753_v29 = vrot.slane %v2688_v4, 2  ;;  %v2750_v63 = vrot.slane %v2688_v4, 1 }
 0x3cf   : > { %v2754_v39 = vsel %vm6778_vm12, %v2752_v54, %v2753_v29  ;;  %v2751_v38 = vsel %vm618_vm2, %v2749_v51, %v2750_v63  ;;  %vm6779_vm2 = vcmask 1041409   ;;  %vm3300_vm12 = vcmask 1045508  }
 0x3d0   : > { %2935 = vrot.lane.b32.xlu0 %v2754_v39, %s4090_s30  ;;  %2911 = vrot.lane.b32.xlu2 %v2751_v38, %s4088_s16 }
 0x3d5   : > { %2769 = vrot.lane.b32.xlu1 %v6146_v34, %s4083_s12  ;;  %s4091_s12 = smov 80  }
 0x3d8   : > { %2817 = vrot.lane.b32.xlu0 %v2680_v10, %s6757_s13  ;;  %2793 = vrot.lane.b32.xlu2 %v6153_v57, %s6756_s14  ;;  %s6804_s13 = smov 112  }
 0x3db   : > { %v3066_v6 = vpop.f32.mrf.mxu1 }
 0x3dc   : > { %v3067_v25 = vadd.f32 %v6203_v40, %v3066_v6 }
 0x3dd   : > { %2841 = vrot.lane.b32.xlu1 %v2751_v38, %s6758_s15 }
 0x3de   : > { %v3088_v58 = vmax.f32 %v3067_v25, 0.0 }
 0x3e0   : > { %v3095_v34 = vmax.f32 %v3087_v26, %v3088_v58  ;;  %2889 = vrot.lane.b32.xlu0 %v6723_v27, %s4089_s25  ;;  %2865 = vrot.lane.b32.xlu2 %v2754_v39, %s6759_s22  ;;  %s3726_s22 = scalar_lea.hbm %s6594_s11, %s4175_s21 }
 0x3e2   : > { %v3103_v8 = vrot.slane %v3095_v34, 2  ;;  %v3104_v59 = vrot.slane %v3095_v34, 4  ;;  %v3105_v33 = vrot.slane %v3095_v34, 6  ;;  %v3896_v24 = vrot.slane %v3095_v34, 9 }
 0x3e4   : > { %v3897_v57 = vrot.slane %v3103_v8, 9  ;;  %v3898_v3 = vrot.slane %v3104_v59, 9  ;;  %v3899_v31 = vrot.slane %v3105_v33, 9  ;;  %v3175_v48 = vmax.f32 %v3095_v34, %v3896_v24 }
 0x3e5   : > { %2913 = vrot.lane.b32.xlu1 %v5756_v45, %s4088_s16  ;;  %v2764_v45 = vpop.permute.xlu1 %2763  ;;  %s6665_s16 = smov 112  }
 0x3e6   : > { %v3176_v36 = vmax.f32 %v3103_v8, %v3897_v57  ;;  %v3177_v28 = vmax.f32 %v3104_v59, %v3898_v3  ;;  %v3178_v23 = vmax.f32 %v3105_v33, %v3899_v31  ;;  %v3226_v14 = vperm.slane %v3175_v48, 0 }
 0x3e7   : > { %v2951_v55 = vsel %vm1791_vm11, %v6006_v20, %v2764_v45  ;;  %v3916_v20 = vrot.slane %v6780_v11, 10 }
 0x3e8   : > { %v3227_v9 = vperm.slane %v3176_v36, 0  ;;  %v3228_v19 = vperm.slane %v3177_v28, 0  ;;  %2937 = vrot.lane.b32.xlu2 %v5802_v2, %s4090_s30  ;;  %v3229_v27 = vperm.slane %v3178_v23, 0  ;;  %v3912_v2 = vrot.slane %v6780_v11, 9  ;;  %v2932_v38 = vpop.permute.xlu2 %2931 }
 0x3e9   : > { %v2960_v61 = vsel %vm2955_vm1, %v2951_v55, %v2788_v47 }
 0x3ea   : > { %v3242_v53 = vsel %vm6779_vm2, %v3227_v9, %v3226_v14  ;;  %v6233_v17 = vsel %vm6225_vm10, %v3912_v2, %v3285_v21  ;;  %v2969_v18 = vsel %vm2964_vm13, %v2960_v61, %v2812_v43  ;;  %vm6248_vm2 = vmor %vm3299_vm5, %vm3300_vm12 }
 0x3eb   : > { %v3243_v0 = vsel %vm2596_vm14, %v3228_v19, %v3242_v53  ;;  %v6254_v4 = vsel %vm6248_vm2, %v3916_v20, %v3304_v35 }
 0x3ec   : > { %v3244_v15 = vsel %vm2598_vm15, %v3229_v27, %v3243_v0 }
 0x3ed   : > { %v3254_v56 = vrot.slane %v3244_v15, 7  ;;  %v2836_v32 = vpop.permute.xlu1 %2835 }
 0x3ee   : > { %v2978_v62 = vsel %vm2973_vm4, %v2969_v18, %v2836_v32 }
 0x3ef   : > { %v3262_v22 = vsel %vm452_vm0, 0.0, %v3254_v56  ;;  %v2987_v51 = vsel %vm2982_vm6, %v2978_v62, %v2860_v16 }
 0x3f0   : > { %v3268_v52 = vsel %vm6781_vm3, %v3262_v22, 0.0  ;;  %vm6786_vm3 = vcmask 457728   ;;  %v2814_v34 = vpop.permute.xlu2 %2813 }
 0x3f1   : > { %v3277_v42 = vrot.slane %v3268_v52, 4  ;;  %3330 = vst [vmem:[#allocation1 + $0x1] ss:$2 sm:$0xff] %v3268_v52  ;;  %v3913_v12 = vrot.slane %v3268_v52, 9  ;;  %v3917_v54 = vrot.slane %v3268_v52, 10  ;;  %vm6789_vm12 = vmmov %vm6786_vm3 }
 0x3f3   : > { %v3289_v60 = vrot.slane %v3277_v42, 5  ;;  %v3308_v10 = vrot.slane %v3277_v42, 6 }
 0x3f5   : > { %v6241_v37 = vsel %vm6225_vm10, %v3913_v12, %v3289_v60  ;;  %v6261_v46 = vsel %vm6248_vm2, %v3917_v54, %v3308_v10 }
 0x3f8   : > { %v6236_v30 = vld.sshfl [vmem:[#allocation1] sm:$0xff pattern:$0x75316420]  ;;  %v2886_v36 = vpop.permute.xlu2 %2885 }
 0x3f9   : > { %3339 = vst [vmem:[#allocation1] ss:$2 sm:$0xff] %v6233_v17 }
 0x3fa   : > { %3341 = vst [vmem:[#allocation1 + $0x1] ss:$2 sm:$0xff] %v6241_v37 }
 0x3fd   : > { %v2884_v41 = vpop.permute.xlu0 %2883 }
 0x3fe   : > { %v2996_v29 = vsel %vm2991_vm7, %v2987_v51, %v2884_v41 }
 0x400   : > { %v2908_v63 = vpop.permute.xlu1 %2907 }
 0x401   : > { %v3346_v39 = vld.sshfl [vmem:[#allocation1] sm:$0xff pattern:$0x75316420]  ;;  %v3005_v13 = vsel %vm6786_vm3, %v2996_v29, %v2908_v63  ;;  %vm6790_vm3 = vmmov %vm6787_vm8 }
 0x402   : > { %3354 = vst [vmem:[#allocation1] ss:$2 sm:$0xff] %v6254_v4  ;;  %3348 = vrot.lane.b32.xlu0 %v3346_v39, %s6756_s14  ;;  %v3014_v6 = vsel %vm6787_vm8, %v3005_v13, %v2932_v38  ;;  %vm6791_vm8 = vmmov %vm6788_vm9 }
 0x403   : > { %3356 = vst [vmem:[#allocation1 + $0x1] ss:$2 sm:$0xff] %v6261_v46  ;;  %3892 = vmatmul.msk.f32.gmra.mxu1 %vm6788_vm9, %v3014_v6  ;;  %vm6792_vm9 = vmmov %vm6789_vm12 }
 0x405   : > { %v2766_v25 = vpop.permute.xlu0 %2765 }
 0x406   : > { %v2952_v59 = vsel %vm1791_vm11, %v6039_v1, %v2766_v25  ;;  %v2768_v1 = vpop.permute.xlu2 %2767 }
 0x407   : > { %v2953_v0 = vsel %vm1791_vm11, %v6111_v50, %v2768_v1 }
 0x408   : > { %v2790_v26 = vpop.permute.xlu1 %2789 }
 0x409   : > { %v2961_v33 = vsel %vm2955_vm1, %v2952_v59, %v2790_v26 }
 0x40a   : > { %v3361_v58 = vld.sshfl [vmem:[#allocation1] sm:$0xff pattern:$0x75316420]  ;;  %v2970_v57 = vsel %vm2964_vm13, %v2961_v33, %v2814_v34 }
 0x40b   : > { %3369 = vst [vmem:[#allocation1] ss:$2 sm:$0xff] %v3268_v52  ;;  %3363 = vrot.lane.b32.xlu1 %v3361_v58, %s6758_s15 }
 0x40d   : > { %v2838_v8 = vpop.permute.xlu0 %2837 }
 0x40e   : > { %v2979_v3 = vsel %vm2973_vm4, %v2970_v57, %v2838_v8  ;;  %v2840_v27 = vpop.permute.xlu2 %2839 }
 0x410   : > { %v2862_v24 = vpop.permute.xlu1 %2861 }
 0x411   : > { %v2988_v31 = vsel %vm2982_vm6, %v2979_v3, %v2862_v24 }
 0x412   : > { %v2997_v28 = vsel %vm2991_vm7, %v2988_v31, %v2886_v36 }
 0x415   : > { %v2910_v48 = vpop.permute.xlu0 %2909 }
 0x416   : > { %v3006_v23 = vsel %vm6789_vm12, %v2997_v28, %v2910_v48  ;;  %vm6793_vm12 = vmmov %vm6790_vm3 }
 0x418   : > { %v2934_v14 = vpop.permute.xlu1 %2933 }
 0x419   : > { %v3015_v9 = vsel %vm6790_vm3, %v3006_v23, %v2934_v14  ;;  %vm6794_vm3 = vmmov %vm6791_vm8 }
 0x41a   : > { %3893 = vmatmul.msk.f32.gmra.mxu1 %vm6791_vm8, %v3015_v9  ;;  %vm6795_vm8 = vcmask 1041409  }
 0x41d   : > { %v2792_v19 = vpop.permute.xlu0 %2791 }
 0x41e   : > { %v2962_v56 = vsel %vm2955_vm1, %v2953_v0, %v2792_v19 }
 0x420   : > { %v2816_v53 = vpop.permute.xlu1 %2815 }
 0x421   : > { %v2971_v47 = vsel %vm2964_vm13, %v2962_v56, %v2816_v53 }
 0x422   : > { %v2980_v22 = vsel %vm2973_vm4, %v2971_v47, %v2840_v27 }
 0x425   : > { %v2864_v15 = vpop.permute.xlu0 %2863 }
 0x426   : > { %v2989_v52 = vsel %vm2982_vm6, %v2980_v22, %v2864_v15 }
 0x42a   : > { %v2912_v5 = vpop.permute.xlu2 %2911 }
 0x42c   : > { %v3069_v45 = vpop.f32.mrf.mxu1 }
 0x42d   : > { %v3070_v21 = vadd.f32 %v6203_v40, %v3069_v45 }
 0x42f   : > { %v3089_v32 = vmax.f32 %v3070_v21, 0.0 }
 0x432   : > { %v2794_v61 = vpop.permute.xlu2 %2793 }
 0x43a   : > { %v2866_v58 = vpop.permute.xlu2 %2865 }
 0x43f   : > { %v2888_v42 = vpop.permute.xlu1 %2887 }
 0x440   : > { %v2998_v2 = vsel %vm2991_vm7, %v2989_v52, %v2888_v42 }
 0x441   : > { %v3007_v55 = vsel %vm6792_vm9, %v2998_v2, %v2912_v5 }
 0x442   : > { %v2936_v43 = vpop.permute.xlu0 %2935  ;;  %v2938_v9 = vpop.permute.xlu2 %2937 }
 0x443   : > { %v3072_v50 = vpop.f32.mrf.mxu1  ;;  %v3016_v12 = vsel %vm6793_vm12, %v3007_v55, %v2936_v43 }
 0x444   : > { %v3073_v60 = vadd.f32 %v6203_v40, %v3072_v50  ;;  %3894 = vmatmul.msk.f32.gmra.mxu1 %vm6794_vm3, %v3016_v12 }
 0x446   : > { %v3090_v16 = vmax.f32 %v3073_v60, 0.0 }
 0x447   : > { %v2770_v20 = vpop.permute.xlu1 %2769 }
 0x448   : > { %v3096_v18 = vmax.f32 %v3089_v32, %v3090_v16  ;;  %v2954_v51 = vsel %vm1791_vm11, %v6134_v7, %v2770_v20  ;;  %vm6796_vm11 = vcmask 1044480  }
 0x449   : > { %v2963_v26 = vsel %vm2955_vm1, %v2954_v51, %v2794_v61 }
 0x44a   : > { %v3106_v35 = vrot.slane %v3096_v18, 2  ;;  %v3107_v62 = vrot.slane %v3096_v18, 4  ;;  %v3108_v41 = vrot.slane %v3096_v18, 6  ;;  %v3900_v10 = vrot.slane %v3096_v18, 9  ;;  %v2818_v54 = vpop.permute.xlu0 %2817 }
 0x44b   : > { %v2972_v24 = vsel %vm2964_vm13, %v2963_v26, %v2818_v54  ;;  %vm6797_vm13 = vmmov %vm6792_vm9  ;;  %v3207_v26 = vld [vmem:[%s6588_s5 + $0x80] sm:$0xff] }
 0x44c   : > { %v3901_v29 = vrot.slane %v3106_v35, 9  ;;  %v3902_v63 = vrot.slane %v3107_v62, 9  ;;  %v3903_v39 = vrot.slane %v3108_v41, 9  ;;  %v3179_v38 = vmax.f32 %v3096_v18, %v3900_v10  ;;  %vm6798_vm9 = vmmov %vm6793_vm12 }
 0x44d   : > { %vm6799_vm12 = vmmov %vm6794_vm3 }
 0x44e   : > { %v3180_v13 = vmax.f32 %v3106_v35, %v3901_v29  ;;  %v3181_v6 = vmax.f32 %v3107_v62, %v3902_v63  ;;  %v3182_v25 = vmax.f32 %v3108_v41, %v3903_v39  ;;  %v3230_v34 = vperm.slane %v3179_v38, 0  ;;  %v3208_v38 = vld [vmem:[%s6588_s5 + $0x88] sm:$0xff]  ;;  %vm6801_vm3 = vmmov %vm6796_vm11 }
 0x44f   : > { %v2842_v33 = vpop.permute.xlu1 %2841  ;;  %3514 = vmatpush.msrb.mxu3 %v3208_v38  ;;  %v3204_v38 = vld [vmem:[%s6588_s5 + $0x68] sm:$0xff] }
 0x450   : > { %v3231_v8 = vperm.slane %v3180_v13, 0  ;;  %v3232_v59 = vperm.slane %v3181_v6, 0  ;;  %v3233_v57 = vperm.slane %v3182_v25, 0  ;;  %v2981_v3 = vsel %vm2973_vm4, %v2972_v24, %v2842_v33 }
 0x451   : > { %v2990_v23 = vsel %vm2982_vm6, %v2981_v3, %v2866_v58  ;;  %vm6800_vm6 = vmmov %vm6795_vm8  ;;  %3515 = vmatpush.msrb.mxu3 %v3207_v26 }
 0x452   : > { %v3245_v7 = vsel %vm6795_vm8, %v3231_v8, %v3230_v34  ;;  %v2890_v28 = vpop.permute.xlu0 %2889  ;;  %vm6802_vm8 = vmmov %vm6800_vm6 }
 0x453   : > { %v3246_v31 = vsel %vm2596_vm14, %v3232_v59, %v3245_v7  ;;  %v2999_v19 = vsel %vm2991_vm7, %v2990_v23, %v2890_v28 }
 0x454   : > { %v3247_v48 = vsel %vm2598_vm15, %v3233_v57, %v3246_v31 }
 0x455   : > { %v3255_v36 = vrot.slane %v3247_v48, 7 }
 0x457   : > { %v3263_v14 = vsel %vm452_vm0, 0.0, %v3255_v36  ;;  %v2914_v27 = vpop.permute.xlu1 %2913 }
 0x458   : > { %v3269_v1 = vsel %vm6796_vm11, %v3263_v14, 0.0  ;;  %v3008_v53 = vsel %vm6797_vm13, %v2999_v19, %v2914_v27  ;;  %vm6803_vm11 = vmmov %vm6801_vm3 }
 0x459   : > { %3332 = vst [vmem:[#allocation1 + $0x10] ss:$2 sm:$0xff] %v3269_v1  ;;  %v3278_v0 = vrot.slane %v3269_v1, 4  ;;  %v3017_v15 = vsel %vm6798_vm9, %v3008_v53, %v2938_v9  ;;  %v3914_v5 = vrot.slane %v3269_v1, 9  ;;  %v3918_v52 = vrot.slane %v3269_v1, 10 }
 0x45a   : > { %3371 = vst [vmem:[#allocation1 + $0x1] ss:$2 sm:$0xff] %v3269_v1  ;;  %3895 = vmatmul.msk.f32.gmra.mxu1 %vm6799_vm12, %v3017_v15 }
 0x45b   : > { %v3293_v56 = vrot.slane %v3278_v0, 5  ;;  %v3312_v22 = vrot.slane %v3278_v0, 6 }
 0x45d   : > { %v3294_v47 = vsel %vm6225_vm10, %v3914_v5, %v3293_v56  ;;  %v6312_v2 = vsel %vm6248_vm2, %v3918_v52, %v3312_v22 }
 0x461   : > { %v3376_v45 = vld.sshfl [vmem:[#allocation1] sm:$0xff pattern:$0x75316420] }
 0x462   : > { %3378 = vrot.lane.b32.xlu2 %v3376_v45, %s4089_s25  ;;  %3384 = vst [vmem:[#allocation1] ss:$2 sm:$0xff] %v6241_v37 }
 0x463   : > { %3386 = vst [vmem:[#allocation1 + $0x1] ss:$2 sm:$0xff] %v3294_v47 }
 0x46a   : > { %v3391_v42 = vld.sshfl [vmem:[#allocation1] sm:$0xff pattern:$0x75316420] }
 0x46b   : > { %3393 = vrot.lane.b32.xlu0 %v3391_v42, %s4090_s30  ;;  %3399 = vst [vmem:[#allocation1] ss:$2 sm:$0xff] %v6261_v46 }
 0x46c   : > { %3401 = vst [vmem:[#allocation1 + $0x1] ss:$2 sm:$0xff] %v6312_v2 }
 0x473   : > { %v3406_v21 = vld.sshfl [vmem:[#allocation1] sm:$0xff pattern:$0x75316420] }
 0x474   : > { %3408 = vrot.lane.b32.xlu1 %v3406_v21, %s4091_s12  ;;  %3414 = vst [vmem:[#allocation1] ss:$2 sm:$0xff] %v3269_v1 }
 0x480   : > { %v3075_v37 = vpop.f32.mrf.mxu1 }
 0x481   : > { %v3076_v55 = vadd.f32 %v6203_v40, %v3075_v37 }
 0x483   : > { %v3091_v60 = vmax.f32 %v3076_v55, 0.0 }
 0x497   : > { %v3078_v43 = vpop.f32.mrf.mxu1 }
 0x498   : > { %v3079_v50 = vadd.f32 %v6203_v40, %v3078_v43 }
 0x49a   : > { %v3092_v12 = vmax.f32 %v3079_v50, 0.0 }
 0x49c   : > { %v3097_v61 = vmax.f32 %v3091_v60, %v3092_v12 }
 0x49e   : > { %v3109_v32 = vrot.slane %v3097_v61, 2  ;;  %v3110_v16 = vrot.slane %v3097_v61, 4  ;;  %v3111_v18 = vrot.slane %v3097_v61, 6  ;;  %v3904_v46 = vrot.slane %v3097_v61, 9 }
 0x4a0   : > { %v3905_v20 = vrot.slane %v3109_v32, 9  ;;  %v3906_v35 = vrot.slane %v3110_v16, 9  ;;  %v3907_v62 = vrot.slane %v3111_v18, 9  ;;  %v3183_v41 = vmax.f32 %v3097_v61, %v3904_v46 }
 0x4a2   : > { %v3184_v10 = vmax.f32 %v3109_v32, %v3905_v20  ;;  %v3185_v51 = vmax.f32 %v3110_v16, %v3906_v35  ;;  %v3186_v54 = vmax.f32 %v3111_v18, %v3907_v62  ;;  %v3234_v29 = vperm.slane %v3183_v41, 0 }
 0x4a4   : > { %v3235_v63 = vperm.slane %v3184_v10, 0  ;;  %v3236_v39 = vperm.slane %v3185_v51, 0  ;;  %v3237_v13 = vperm.slane %v3186_v54, 0  ;;  %v3206_v10 = vld [vmem:[%s6588_s5 + $0x78] sm:$0xff]  ;;  %v3205_v51 = vld [vmem:[%s6588_s5 + $0x70] sm:$0xff] }
 0x4a5   : > { %3477 = vmatpush.msrb.mxu1 %v3206_v10 }
 0x4a6   : > { %v3248_v6 = vsel %vm6800_vm6, %v3235_v63, %v3234_v29 }
 0x4a7   : > { %v3249_v25 = vsel %vm2596_vm14, %v3236_v39, %v3248_v6  ;;  %3478 = vmatpush.msrb.mxu1 %v3205_v51 }
 0x4a8   : > { %v3250_v58 = vsel %vm2598_vm15, %v3237_v13, %v3249_v25  ;;  %v3203_v13 = vld [vmem:[%s6588_s5 + $0x60] sm:$0xff] }
 0x4a9   : > { %v3256_v34 = vrot.slane %v3250_v58, 7  ;;  %3479 = vmatpush.msrb.mxu1 %v3204_v38  ;;  %v3201_v58 = vld [vmem:[%s6588_s5 + $0x50] sm:$0xff] }
 0x4ab   : > { %v3264_v8 = vsel %vm452_vm0, 0.0, %v3256_v34  ;;  %3480 = vmatpush.msrb.mxu1 %v3203_v13  ;;  %v3200_v34 = vld [vmem:[%s6588_s5 + $0x48] sm:$0xff] }
 0x4ac   : > { %v3270_v59 = vsel %vm6801_vm3, %v3264_v8, 0.0  ;;  %v3198_v8 = vld [vmem:[%s6588_s5 + $0x38] sm:$0xff] }
 0x4ad   : > { %v3279_v33 = vrot.slane %v3270_v59, 4  ;;  %3334 = vst [vmem:[#allocation1 + $0x11] ss:$2 sm:$0xff] %v3270_v59  ;;  %v3915_v57 = vrot.slane %v3270_v59, 9  ;;  %v3919_v36 = vrot.slane %v3270_v59, 10  ;;  %3481 = vmatpush.msrb.mxu1 %v3202_v49 }
 0x4ae   : > { %3416 = vst [vmem:[#allocation1 + $0x1] ss:$2 sm:$0xff] %v3270_v59 }
 0x4af   : > { %v3297_v24 = vrot.slane %v3279_v33, 5  ;;  %v3316_v48 = vrot.slane %v3279_v33, 6  ;;  %3482 = vmatpush.msrb.mxu1 %v3201_v58  ;;  %v3197_v33 = vld [vmem:[%s6588_s5 + $0x30] sm:$0xff] }
 0x4b1   : > { %v6335_v3 = vsel %vm6225_vm10, %v3915_v57, %v3297_v24  ;;  %v6342_v23 = vsel %vm6248_vm2, %v3919_v36, %v3316_v48  ;;  %3483 = vmatpush.msrb.mxu1 %v3200_v34  ;;  %v3196_v24 = vld [vmem:[%s6588_s5 + $0x28] sm:$0xff]  ;;  %v3195_v57 = vld [vmem:[%s6588_s5 + $0x20] sm:$0xff] }
 0x4b2   : > { %v3192_v48 = vld [vmem:[%s6588_s5 + $0x8] sm:$0xff]  ;;  %v3191_v36 = vld [vmem:[%s6588_s5] sm:$0xff] }
 0x4b3   : > { %3484 = vmatpush.msrb.mxu1 %v3199_v44 }
 0x4b4   : > { %v6331_v7 = vld.sshfl [vmem:[#allocation1 + $0x10] sm:$0xff pattern:$0x75316420] }
 0x4b5   : > { %3343 = vst [vmem:[#allocation1 + $0x10] ss:$2 sm:$0xff] %v3294_v47  ;;  %v3421_v31 = vld.sshfl [vmem:[#allocation1] sm:$0xff pattern:$0x75316420]  ;;  %3485 = vmatpush.msrb.mxu1 %v3198_v8  ;;  %v3624_v8 = vld [vmem:[%s6590_s7 + $0x58] sm:$0xff] }
 0x4b6   : > { %3345 = vst [vmem:[#allocation1 + $0x11] ss:$2 sm:$0xff] %v6335_v3  ;;  %3423 = vrot.lane.b32.xlu2 %v3421_v31, %s4092_s29  ;;  %v3193_v31 = vld [vmem:[%s6588_s5 + $0x10] sm:$0xff] }
 0x4b7   : > { %3429 = vst [vmem:[#allocation1] ss:$2 sm:$0xff] %v3294_v47  ;;  %3486 = vmatpush.msrb.mxu1 %v3197_v33  ;;  %v3622_v33 = vld [vmem:[%s6590_s7 + $0x48] sm:$0xff] }
 0x4b8   : > { %3431 = vst [vmem:[#allocation1 + $0x1] ss:$2 sm:$0xff] %v6335_v3 }
 0x4b9   : > { %3487 = vmatpush.msrb.mxu1 %v3196_v24  ;;  %v3621_v24 = vld [vmem:[%s6590_s7 + $0x40] sm:$0xff] }
 0x4bb   : > { %3488 = vmatpush.msrb.mxu1 %v3195_v57  ;;  %v3652_v57 = vld [vmem:[%s6590_s7 + $0x78] sm:$0xff] }
 0x4bd   : > { %v3347_v28 = vld.sshfl [vmem:[#allocation1 + $0x10] sm:$0xff pattern:$0x75316420] }
 0x4be   : > { %3358 = vst [vmem:[#allocation1 + $0x10] ss:$2 sm:$0xff] %v6312_v2  ;;  %3350 = vrot.lane.b32.xlu1 %v3347_v28, %s6756_s14  ;;  %s3730_s14 = sshll.u32 %s3726_s22, 4  ;;  %s3731_s14 = int_to_ptr.hbm [resolvable:$true] %s3730_s14 }
 0x4bf   : > { %3360 = vst [vmem:[#allocation1 + $0x11] ss:$2 sm:$0xff] %v6342_v23  ;;  %v3436_v14 = vld.sshfl [vmem:[#allocation1] sm:$0xff pattern:$0x75316420]  ;;  %s4025_s0 = sshra.s32 %s3731_s14, 4  ;;  %s4026_s0 = int_to_ptr.hbm [resolvable:$true] %s4025_s0 }
 0x4c0   : > { %3438 = vrot.lane.b32.xlu0 %v3436_v14, %s6665_s16  ;;  %3444 = vst [vmem:[#allocation1] ss:$2 sm:$0xff] %v6312_v2  ;;  %v3349_v14 = vpop.permute.xlu0 %3348  ;;  %s377_s16 = sand.u32 1, %s4065_s18   ;;  %s4027_s1 = scalar_lea.hbm %s4026_s0, 1 }
 0x4c1   : > { %3446 = vst [vmem:[#allocation1 + $0x1] ss:$2 sm:$0xff] %v6342_v23  ;;  %v3081_v19 = vpop.f32.mrf.mxu1  ;;  %p4028_p11 = scmp.ne.s32.totalorder %s4026_s0, %s4027_s1  ;;  %p4032_p0 = scmp.lt.s32.totalorder %s4026_s0, %s6594_s11 }
 0x4c2   : > { %v3082_v27 = vadd.f32 %v6203_v40, %v3081_v19  ;;  %v3453_v19 = vsel %vm2955_vm1, %v6236_v30, %v3349_v14 }
 0x4c3   : > { %p4029_p12 = pnand %p4028_p11, %p4192_p5 }
 0x4c4   : > { %v3093_v15 = vmax.f32 %v3082_v27, 0.0 }
 0x4c5   : > { %p4030_p13 = pneg %p4029_p12 }
 0x4c6   : > { %v3362_v9 = vld.sshfl [vmem:[#allocation1 + $0x10] sm:$0xff pattern:$0x75316420] }
 0x4c7   : > { %3373 = vst [vmem:[#allocation1 + $0x10] ss:$2 sm:$0xff] %v3270_v59  ;;  %3365 = vrot.lane.b32.xlu2 %v3362_v9, %s6758_s15  ;;  %v3364_v9 = vpop.permute.xlu1 %3363  ;;  %s3718_s15 = scalar_lea.sflag [#allocation3], %s377_s16 }
 0x4c8   : > { %v3451_v1 = vld.sshfl [vmem:[#allocation1] sm:$0xff pattern:$0x75316420]  ;;  %v3455_v27 = vsel %vm2973_vm4, %v3453_v19, %v3364_v9 }
 0x4c9   : > { %3922 = vmatmul.msk.f32.vlgmr.msrb.gmra.mxu3 %vm2955_vm1, %v3451_v1  ;;  %v3379_v1 = vpop.permute.xlu2 %3378 }
 0x4d7   : > { %v3084_v53 = vpop.f32.mrf.mxu1 }
 0x4d8   : > { %v3085_v0 = vadd.f32 %v6203_v40, %v3084_v53 }
 0x4da   : > { %v3094_v56 = vmax.f32 %v3085_v0, 0.0  ;;  %v3457_v0 = vsel %vm2991_vm7, %v3455_v27, %v3379_v1 }
 0x4dc   : > { %v3098_v5 = vmax.f32 %v3093_v15, %v3094_v56 }
 0x4de   : > { %v3112_v45 = vrot.slane %v3098_v5, 2  ;;  %v3113_v47 = vrot.slane %v3098_v5, 4  ;;  %v3114_v22 = vrot.slane %v3098_v5, 6  ;;  %v3908_v52 = vrot.slane %v3098_v5, 9 }
 0x4e0   : > { %v3909_v42 = vrot.slane %v3112_v45, 9  ;;  %v3910_v2 = vrot.slane %v3113_v47, 9  ;;  %v3911_v21 = vrot.slane %v3114_v22, 9  ;;  %v3187_v37 = vmax.f32 %v3098_v5, %v3908_v52 }
 0x4e2   : > { %v3188_v55 = vmax.f32 %v3112_v45, %v3909_v42  ;;  %v3189_v43 = vmax.f32 %v3113_v47, %v3910_v2  ;;  %v3190_v50 = vmax.f32 %v3114_v22, %v3911_v21  ;;  %v3238_v60 = vperm.slane %v3187_v37, 0 }
 0x4e4   : > { %v3239_v12 = vperm.slane %v3188_v55, 0  ;;  %v3240_v61 = vperm.slane %v3189_v43, 0  ;;  %v3241_v32 = vperm.slane %v3190_v50, 0 }
 0x4e6   : > { %v3251_v40 = vsel %vm6802_vm8, %v3239_v12, %v3238_v60  ;;  %v3409_v53 = vpop.permute.xlu1 %3408 }
 0x4e7   : > { %v3252_v16 = vsel %vm2596_vm14, %v3240_v61, %v3251_v40  ;;  %vm3464_vm14 = vcmask 785408   ;;  %v3567_v40 = vld [vmem:[%s6590_s7 + $0x10] sm:$0xff] }
 0x4e8   : > { %v3253_v18 = vsel %vm2598_vm15, %v3241_v32, %v3252_v16  ;;  %vm6805_vm15 = vmmov %vm6798_vm9  ;;  %v3566_v16 = vld [vmem:[%s6590_s7 + $0x8] sm:$0xff] }
 0x4e9   : > { %v3257_v46 = vrot.slane %v3253_v18, 7  ;;  %v3565_v18 = vld [vmem:[%s6590_s7] sm:$0xff] }
 0x4eb   : > { %v3265_v20 = vsel %vm452_vm0, 0.0, %v3257_v46  ;;  %vm3461_vm0 = vcmask 654336   ;;  %v3596_v46 = vld [vmem:[%s6590_s7 + $0x38] sm:$0xff] }
 0x4ec   : > { %v3271_v35 = vsel %vm6803_vm11, %v3265_v20, 0.0  ;;  %v3595_v20 = vld [vmem:[%s6590_s7 + $0x30] sm:$0xff] }
 0x4ed   : > { %v3319_v62 = vrot.slane %v3271_v35, 4  ;;  %3375 = vst [vmem:[#allocation1 + $0x11] ss:$2 sm:$0xff] %v3271_v35  ;;  %v3920_v54 = vrot.slane %v3271_v35, 9  ;;  %v3921_v6 = vrot.slane %v3271_v35, 10 }
 0x4ef   : > { %v3322_v41 = vrot.slane %v3319_v62, 5  ;;  %v3326_v39 = vrot.slane %v3319_v62, 6  ;;  %v3593_v62 = vld [vmem:[%s6590_s7 + $0x20] sm:$0xff] }
 0x4f1   : > { %v3323_v63 = vsel %vm6225_vm10, %v3920_v54, %v3322_v41  ;;  %v3327_v26 = vsel %vm6248_vm2, %v3921_v6, %v3326_v39  ;;  %vm3467_vm10 = vcmask 916480   ;;  %vm6806_vm2 = vmmov %vm6798_vm9  ;;  %v4009_v41 = vld [vmem:[%s6589_s6] ss:$0 sm:$0xff] }
 0x4f4   : > { %v3377_v29 = vld.sshfl [vmem:[#allocation1 + $0x10] sm:$0xff pattern:$0x75316420] }
 0x4f5   : > { %3380 = vrot.lane.b32.xlu0 %v3377_v29, %s4089_s25  ;;  %3388 = vst [vmem:[#allocation1 + $0x10] ss:$2 sm:$0xff] %v6335_v3  ;;  %v3194_v3 = vld [vmem:[%s6588_s5 + $0x18] sm:$0xff]  ;;  %s378_s25 = scalar_lea.vmem [#allocation2], %s377_s16 }
 0x4f6   : > { %3390 = vst [vmem:[#allocation1 + $0x11] ss:$2 sm:$0xff] %v3323_v63  ;;  %3489 = vmatpush.msrb.mxu1 %v3194_v3  ;;  %v3651_v3 = vld [vmem:[%s6590_s7 + $0x70] sm:$0xff]  ;;  %s3728_s24 = sshll.u32 %s378_s25, 4  ;;  %s3729_s24 = int_to_ptr.vmem [resolvable:$true] %s3728_s24 }
 0x4f8   : > { %3490 = vmatpush.msrb.mxu1 %v3193_v31  ;;  %v3650_v31 = vld [vmem:[%s6590_s7 + $0x68] sm:$0xff] }
 0x4fa   : > { %3491 = vmatpush.msrb.mxu1 %v3192_v48 }
 0x4fc   : > { %3492 = vmatpush.msrb.mxu1 %v3191_v36 }
 0x4fd   : > { %v3392_v25 = vld.sshfl [vmem:[#allocation1 + $0x10] sm:$0xff pattern:$0x75316420] }
 0x4fe   : > { %3395 = vrot.lane.b32.xlu1 %v3392_v25, %s4090_s30  ;;  %3403 = vst [vmem:[#allocation1 + $0x10] ss:$2 sm:$0xff] %v6342_v23 }
 0x4ff   : > { %3405 = vst [vmem:[#allocation1 + $0x11] ss:$2 sm:$0xff] %v3327_v26 }
 0x506   : > { %v3407_v59 = vld.sshfl [vmem:[#allocation1 + $0x10] sm:$0xff pattern:$0x75316420] }
 0x507   : > { %3410 = vrot.lane.b32.xlu2 %v3407_v59, %s4091_s12  ;;  %3418 = vst [vmem:[#allocation1 + $0x10] ss:$2 sm:$0xff] %v3271_v35  ;;  %v3594_v35 = vld [vmem:[%s6590_s7 + $0x28] sm:$0xff]  ;;  %v3623_v59 = vld [vmem:[%s6590_s7 + $0x50] sm:$0xff] }
 0x508   : > { %3420 = vst [vmem:[#allocation1 + $0x11] ss:$2 sm:$0xff] %v6780_v11 }
 0x50f   : > { %v3422_v11 = vld.sshfl [vmem:[#allocation1 + $0x10] sm:$0xff pattern:$0x75316420] }
 0x510   : > { %3425 = vrot.lane.b32.xlu0 %v3422_v11, %s4092_s29  ;;  %3433 = vst [vmem:[#allocation1 + $0x10] ss:$2 sm:$0xff] %v3323_v63  ;;  %v3424_v15 = vpop.permute.xlu2 %3423  ;;  %v3649_v11 = vld [vmem:[%s6590_s7 + $0x60] sm:$0xff]  ;;  %s4031_s29 = scalar_lea.hbm %s6594_s11, 2 }
 0x511   : > { %3435 = vst [vmem:[#allocation1 + $0x11] ss:$2 sm:$0xff] %v6233_v17  ;;  %v3394_v17 = vpop.permute.xlu0 %3393  ;;  %p4033_p1 = scmp.lt.s32.totalorder %s4031_s29, %s4027_s1 }
 0x513   : > { %p4034_p2 = por %p4033_p1, %p4032_p0 }
 0x515   : > { %p4035_p3 = pnand %p4034_p2, %p4030_p13 }
 0x518   : > { %v3437_v28 = vld.sshfl [vmem:[#allocation1 + $0x10] sm:$0xff pattern:$0x75316420] }
 0x519   : > { %3440 = vrot.lane.b32.xlu1 %v3437_v28, %s6804_s13  ;;  %3448 = vst [vmem:[#allocation1 + $0x10] ss:$2 sm:$0xff] %v3327_v26 }
 0x51a   : > { %3450 = vst [vmem:[#allocation1 + $0x11] ss:$2 sm:$0xff] %v6254_v4  ;;  %v3459_v4 = vsel %vm6805_vm15, %v3457_v0, %v3394_v17 }
 0x51b   : > { %v3462_v56 = vsel %vm3461_vm0, %v3459_v4, %v3409_v53 }
 0x51c   : > { %v3465_v5 = vsel %vm3464_vm14, %v3462_v56, %v3424_v15 }
 0x521   : > { %v3452_v23 = vld.sshfl [vmem:[#allocation1 + $0x10] sm:$0xff pattern:$0x75316420]  ;;  %v3366_v52 = vpop.permute.xlu2 %3365 }
 0x522   : > { %3923 = vmatmul.msk.f32.gmra.mxu3 %vm2955_vm1, %v3452_v23 }
 0x530   : > { %v3351_v30 = vpop.permute.xlu1 %3350 }
 0x531   : > { %v3454_v42 = vsel %vm2955_vm1, %v6331_v7, %v3351_v30  ;;  %v3568_v7 = vld [vmem:[%s6590_s7 + $0x18] sm:$0xff]  ;;  %vm3538_vm1 = vcmask 1043458   ;;  %v3690_v30 = vld [vmem:[%s6592_s9 + $0x60] sm:$0xff] }
 0x532   : > { %v3439_v45 = vpop.permute.xlu0 %3438  ;;  %v3456_v21 = vsel %vm2973_vm4, %v3454_v42, %v3366_v52  ;;  %3584 = vmatpush.msra.mxu3 %v3568_v7  ;;  %v3688_v52 = vld [vmem:[%s6592_s9 + $0x50] sm:$0xff]  ;;  %v3687_v42 = vld [vmem:[%s6592_s9 + $0x48] sm:$0xff] }
 0x533   : > { %v3468_v47 = vsel %vm3467_vm10, %v3465_v5, %v3439_v45  ;;  %v3693_v5 = vld [vmem:[%s6592_s9 + $0x78] sm:$0xff]  ;;  %v3692_v45 = vld [vmem:[%s6592_s9 + $0x70] sm:$0xff] }
 0x534   : > { %3493 = vmatmul.f32.vlgmr.msrb.gmra.mxu1 %v3468_v47  ;;  %3585 = vmatpush.msra.mxu3 %v3567_v40  ;;  %v3691_v47 = vld [vmem:[%s6592_s9 + $0x68] sm:$0xff]  ;;  %v3564_v40 = vld [vmem:[%s6591_s8] sm:$0x1] }
 0x535   : > { %3695 = vmatpush.msrb.mxu2 %v3693_v5 }
 0x536   : > { %3586 = vmatpush.msra.mxu3 %v3566_v16 }
 0x537   : > { %3696 = vmatpush.msrb.mxu2 %v3692_v45 }
 0x538   : > { %3587 = vmatpush.msra.mxu3 %v3565_v18 }
 0x539   : > { %3697 = vmatpush.msrb.mxu2 %v3691_v47 }
 0x53a   : > { %3612 = vmatpush.msrb.mxu3 %v3596_v46 }
 0x53b   : > { %3698 = vmatpush.msrb.mxu2 %v3690_v30 }
 0x53c   : > { %3613 = vmatpush.msrb.mxu3 %v3595_v20 }
 0x53e   : > { %3614 = vmatpush.msrb.mxu3 %v3594_v35 }
 0x540   : > { %3615 = vmatpush.msrb.mxu3 %v3593_v62 }
 0x54c   : > { %v3517_v54 = vpop.f32.mrf.mxu3 }
 0x561   : > { %v3411_v50 = vpop.permute.xlu2 %3410 }
 0x567   : > { %v3381_v22 = vpop.permute.xlu0 %3380 }
 0x568   : > { %v3458_v37 = vsel %vm2991_vm7, %v3456_v21, %v3381_v22  ;;  %v3689_v22 = vld [vmem:[%s6592_s9 + $0x58] sm:$0xff] }
 0x569   : > { %3699 = vmatpush.msrb.mxu2 %v3689_v22  ;;  %v3685_v21 = vld [vmem:[%s6592_s9 + $0x38] sm:$0xff] }
 0x56b   : > { %3700 = vmatpush.msrb.mxu2 %v3688_v52 }
 0x56d   : > { %3701 = vmatpush.msrb.mxu2 %v3687_v42 }
 0x570   : > { %v3396_v2 = vpop.permute.xlu1 %3395 }
 0x571   : > { %v3460_v55 = vsel %vm6806_vm2, %v3458_v37, %v3396_v2  ;;  %v3686_v2 = vld [vmem:[%s6592_s9 + $0x40] sm:$0xff]  ;;  %v3684_v37 = vld [vmem:[%s6592_s9 + $0x30] sm:$0xff] }
 0x572   : > { %v3463_v60 = vsel %vm3461_vm0, %v3460_v55, %v3411_v50  ;;  %3702 = vmatpush.msrb.mxu2 %v3686_v2  ;;  %v3683_v55 = vld [vmem:[%s6592_s9 + $0x28] sm:$0xff]  ;;  %v3681_v50 = vld [vmem:[%s6592_s9 + $0x18] sm:$0xff] }
 0x574   : > { %3703 = vmatpush.msrb.mxu2 %v3685_v21 }
 0x576   : > { %3704 = vmatpush.msrb.mxu2 %v3684_v37 }
 0x578   : > { %3705 = vmatpush.msrb.mxu2 %v3683_v55 }
 0x582   : > { %v3426_v43 = vpop.permute.xlu0 %3425 }
 0x583   : > { %v3466_v12 = vsel %vm3464_vm14, %v3463_v60, %v3426_v43  ;;  %v3682_v43 = vld [vmem:[%s6592_s9 + $0x20] sm:$0xff]  ;;  %v3680_v60 = vld [vmem:[%s6592_s9 + $0x10] sm:$0xff] }
 0x584   : > { %3706 = vmatpush.msrb.mxu2 %v3682_v43 }
 0x586   : > { %3707 = vmatpush.msrb.mxu2 %v3681_v50 }
 0x588   : > { %3708 = vmatpush.msrb.mxu2 %v3680_v60 }
 0x58b   : > { %v3441_v61 = vpop.permute.xlu1 %3440 }
 0x58c   : > { %v3469_v32 = vsel %vm3467_vm10, %v3466_v12, %v3441_v61  ;;  %v3679_v12 = vld [vmem:[%s6592_s9 + $0x8] sm:$0xff]  ;;  %v3678_v61 = vld [vmem:[%s6592_s9] sm:$0xff] }
 0x58d   : > { %3496 = vmatmul.f32.gmra.mxu1 %v3469_v32  ;;  %3709 = vmatpush.msrb.mxu2 %v3679_v12 }
 0x58f   : > { %3710 = vmatpush.msrb.mxu2 %v3678_v61 }
 0x5a5   : > { %v3520_v28 = vpop.f32.mrf.mxu3 }
 0x5b1   : > { %v3494_v10 = vpop.f32.mrf.mxu1 }
 0x5b2   : > { %v3495_v51 = vadd.f32 %v4009_v41, %v3494_v10  ;;  %v3694_v10 = vld [vmem:[%s6593_s10] sm:$0x1] }
 0x5b4   : > { %v3518_v29 = vadd.f32 %v3517_v54, %v3495_v51 }
 0x5b6   : > { %v3523_v63 = vmax.f32 %v3518_v29, 0.0 }
 0x5b8   : > { %v3527_v39 = vrot.slane %v3523_v63, 4 }
 0x5ba   : > { %v3531_v38 = vmax.f32 %v3523_v63, %v3527_v39 }
 0x5bc   : > { %v3535_v13 = vrot.slane %v3531_v38, 2 }
 0x5be   : > { %v3537_v6 = vsel %vm3299_vm5, %v3531_v38, %v3535_v13  ;;  %v3539_v49 = vsel %vm3538_vm1, %v3531_v38, %v3535_v13 }
 0x5bf   : > { %v3924_v25 = vrot.slane %v3537_v6, 9  ;;  %v3540_v26 = vrot.slane %v3539_v49, 2 }
 0x5c1   : > { %v3560_v58 = vmax.f32 %v3537_v6, %v3924_v25  ;;  %v3925_v34 = vrot.slane %v3540_v26, 9 }
 0x5c3   : > { %3928 = vmatmul.msk.f32.vlgmr.msra.gmra.mxu3 %vm2973_vm4, %v3560_v58  ;;  %v3561_v44 = vmax.f32 %v3540_v26, %v3925_v34 }
 0x5c4   : > { %3640 = vmatpush.msra.mxu3 %v3624_v8 }
 0x5c6   : > { %3641 = vmatpush.msra.mxu3 %v3623_v59 }
 0x5c8   : > { %3642 = vmatpush.msra.mxu3 %v3622_v33 }
 0x5ca   : > { %3643 = vmatpush.msra.mxu3 %v3621_v24 }
 0x5cb   : > { %3929 = vmatmul.msk.f32.vlgmr.msrb.gmra.mxu3 %vm2973_vm4, %v3561_v44 }
 0x5cc   : > { %3668 = vmatpush.msrb.mxu3 %v3652_v57 }
 0x5ce   : > { %3669 = vmatpush.msrb.mxu3 %v3651_v3 }
 0x5d0   : > { %3670 = vmatpush.msrb.mxu3 %v3650_v31 }
 0x5d2   : > { %3671 = vmatpush.msrb.mxu3 %v3649_v11 }
 0x60a   : > { %v3497_v48 = vpop.f32.mrf.mxu1 }
 0x60b   : > { %v3498_v36 = vadd.f32 %v4009_v41, %v3497_v48 }
 0x60d   : > { %v3521_v23 = vadd.f32 %v3520_v28, %v3498_v36 }
 0x60f   : > { %v3524_v14 = vmax.f32 %v3521_v23, 0.0 }
 0x611   : > { %v3528_v9 = vrot.slane %v3524_v14, 4 }
 0x613   : > { %v3532_v1 = vmax.f32 %v3524_v14, %v3528_v9 }
 0x615   : > { %v3536_v17 = vrot.slane %v3532_v1, 2 }
 0x617   : > { %v3541_v19 = vsel %vm3299_vm5, %v3532_v1, %v3536_v17  ;;  %v3542_v27 = vsel %vm3538_vm1, %v3532_v1, %v3536_v17 }
 0x618   : > { %v3926_v53 = vrot.slane %v3541_v19, 9  ;;  %v3543_v0 = vrot.slane %v3542_v27, 2 }
 0x61a   : > { %v3562_v15 = vmax.f32 %v3541_v19, %v3926_v53  ;;  %v3927_v4 = vrot.slane %v3543_v0, 9 }
 0x61c   : > { %3930 = vmatmul.msk.f32.vlgmr.msra.gmra.mxu3 %vm2973_vm4, %v3562_v15  ;;  %v3563_v56 = vmax.f32 %v3543_v0, %v3927_v4 }
 0x624   : > { %3931 = vmatmul.msk.f32.vlgmr.msrb.gmra.mxu3 %vm2973_vm4, %v3563_v56  ;;  %vm3715_vm4 = vcmask 24576  }
 0x646   : > { %v3589_v32 = vpop.f32.mrf.mxu3 }
 0x647   : > { %v3592_v18 = vadd.f32 %v3589_v32, %v3564_v40 }
 0x64e   : > { %v3617_v7 = vpop.f32.mrf.mxu3 }
 0x64f   : > { %v3620_v46 = vadd.f32 %v3617_v7, %v3592_v18 }
 0x69f   : > { %v3645_v16 = vpop.f32.mrf.mxu3 }
 0x6a0   : > { %v3648_v20 = vadd.f32 %v3645_v16, %v3620_v46 }
 0x6a7   : > { %v3673_v35 = vpop.f32.mrf.mxu3 }
 0x6a8   : > { %v3676_v62 = vadd.f32 %v3673_v35, %v3648_v20 }
 0x6aa   : > { %v3677_v41 = vmax.f32 %v3676_v62, 0.0 }
 0x6ac   : > { %3711 = vmatmul.f32.vlgmr.msrb.gmra.mxu2 %v3677_v41 }
 0x72f   : > { %v3712_v51 = vpop.f32.mrf.mxu2 }
 0x730   : > { %v3713_v54 = vadd.f32 %v3712_v51, %v3694_v10 }
 0x732   : > { %3716 = vst.msk [vmem:[%s378_s25] sm:$0x1] %vm3715_vm4, %v3713_v54 }
 0x733   : > { %4038 = shalt.err (!%p4035_p3)
}
 0x734   : > { %3939 = dma.vmem_to_hbm [thread:$0]  (%p4192_p5), %s3729_s24, 16, %s3731_s14, %s3718_s15  }
 0x735 PF: > { %p3945_p4 = scmp.ge.s32.totalorder %s4073_s20, 2  ;;  %s3742_s16 = sand.u32 1, %s4061_s17  }
 0x736   : > { %s3743_s12 = scalar_lea.sflag [#allocation3], %s3742_s16 }
 0x737   : > { %p3942_p7 = pnand %p3945_p4, %p4196_p6 }
 0x739   : > { %p3943_p8 = pneg %p3942_p7 }
 0x73b   : > { %4056 = dma.done.wait (%p3943_p8), %s3743_s12, 16  }
 0x73c   : > { %4058 = vsyncadd (%p3943_p8), %s3743_s12, 4294967280  ;;  %p21_p9 = scmp.ge.s32.totalorder %s4179_s23, 4   ;;  %s6807_s17 = smov %s4065_s18 }
 0x73d   : > { %s6808_s18 = smov %s4069_s19  ;;  %s6809_s19 = smov %s4190_s26 }
 0x73e   : > { %s6810_s20 = smov %s4179_s23  ;;  %23 = sbr.rel (!%p21_p9) target bundleno = 6 (0x6), region = 126 }
 0x743   :  { %3748 = vsyncpa [#allocation3], 1 }
 0x744   :  { %3750 = vsyncpa [#allocation3 + $0x1], 1 }

</bundles_post_ra>
